<compile_context>
chip_gen: v7x
topology: tpu7x:2x2x1
jax: 0.10.0
libtpu: 0.0.40
codegen_flags: <defaults>
</compile_context>

<pallas_src>
import jax
import jax.numpy as jnp
from jax import lax
from jax.experimental import pallas as pl
from jax.experimental.pallas import tpu as pltpu


# ---------------------------------------------------------------------------
# Kernel factory: whole group (head + residual tails) for one image per step.
# All tap / offset math is static Python; blocks are unrolled.
# ---------------------------------------------------------------------------
def _make_group_kernel(Ho, Wo, Wp2, base, num_tail):
    M = Ho * Wp2          # rows of the "full padded width" compute layout

    def kernel(*refs):
        subs = refs[0:4]                              # 4 parity sub-grids (head)
        w1h, b1h, w2h, b2h = refs[4:8]                # head weights (BN folded)
        if num_tail:
            w1t, b1t, w2t, b2t = refs[8:12]           # stacked tail weights
            out_ref = refs[12]
            abuf = refs[13]                           # flat padded activation (VMEM)
        else:
            out_ref = refs[8]

        # validity mask over the full-width row layout (junk cols j >= Wo)
        col = lax.broadcasted_iota(jnp.int32, (M, 1), 0) % Wp2
        col_valid = col < Wo

        def conv_block(tap_x, tap_w, b1, w2, b2):
            """3x3 conv as 9 per-tap MXU matmuls (f32 acc, bias-initialized),
            ReLU, then 1x1 conv (+ folded BN / re_zero bias)."""
            acc = b1                                   # (1, cmid) f32
            for t in range(9):
                acc = acc + jnp.dot(tap_x(t), tap_w(t),
                                    preferred_element_type=jnp.float32)
            h = jnp.maximum(acc, 0.0).astype(jnp.bfloat16)
            return jnp.dot(h, w2, preferred_element_type=jnp.float32) + b2

        # ---------------- head: stride-2 FusedMBConv (no residual) ----------
        def head_tap(t):
            kh, kw = t // 3, t % 3
            si = (kh % 2) * 2 + (kw % 2)               # parity sub-grid index
            off = (kh // 2) * Wp2 + (kw // 2)          # static, contiguous slice
            return subs[si][0, pl.ds(off, M), :]       # (M, Cin) bf16

        y = conv_block(head_tap, lambda t: w1h[t],
                       b1h[...], w2h[...], b2h[...])
        y = jnp.where(col_valid, y, 0.0)

        # ------------- tail: stride-1 residual blocks, activations in VMEM --
        for blk in range(num_tail):
            # materialize the previous output as a zero-padded flat image;
            # the masked junk columns land exactly on the halo positions.
            abuf[...] = jnp.zeros_like(abuf)
            abuf[pl.ds(base, M), :] = y                # sublane-aligned store

            def tap(t):
                kh, kw = t // 3, t % 3
                off = base - Wp2 - 1 + kh * Wp2 + kw   # static, contiguous
                return abuf[pl.ds(off, M), :].astype(jnp.bfloat16)

            body = conv_block(tap,
                              lambda t, blk=blk: w1t[blk, t],
                              b1t[blk], w2t[blk], b2t[blk])
            # x + drop_path(re_zero * body(x)):  DropPath = identity (eval),
            # re_zero folded into w2t/b2t; residual is the value already held.
            y = y + body
            y = jnp.where(col_valid, y, 0.0)

        out_ref[0] = y

    return kernel


# ---------------------------------------------------------------------------
# pallas_call builder (runs at jit-trace time; shapes are static Python ints)
# ---------------------------------------------------------------------------
def _build_group_call(N, H, W, Cin, Cmid_h, Cout, Cmid_t, num_tail):
    k = 3
    Hp, Wp = H + 2, W + 2
    Ho = (Hp - k) // 2 + 1
    Wo = (Wp - k) // 2 + 1
    Hp2, Wp2 = Ho + 2, Wo + 2                 # padded spatial shape for the tails
    M = Ho * Wp2                              # full-width compute rows
    base = ((Wp2 + 1 + 7) // 8) * 8           # aligned origin of the interior
    R = ((base + M + Wp2 + 1 + 7) // 8) * 8   # flat activation buffer rows
    sub_len = Hp2 * Wp2                       # parity sub-grids padded to (Hp2,Wp2)

    in_specs = [pl.BlockSpec((1, sub_len, Cin), lambda n: (n, 0, 0))
                for _ in range(4)]
    in_specs += [
        pl.BlockSpec((k * k, Cin, Cmid_h), lambda n: (0, 0, 0)),   # head W1 taps
        pl.BlockSpec((1, Cmid_h), lambda n: (0, 0)),               # head b1 (f32)
        pl.BlockSpec((Cmid_h, Cout), lambda n: (0, 0)),            # head W2
        pl.BlockSpec((1, Cout), lambda n: (0, 0)),                 # head b2 (f32)
    ]
    scratch = []
    if num_tail:
        in_specs += [
            pl.BlockSpec((num_tail, k * k, Cout, Cmid_t), lambda n: (0, 0, 0, 0)),
            pl.BlockSpec((num_tail, 1, Cmid_t), lambda n: (0, 0, 0)),
            pl.BlockSpec((num_tail, Cmid_t, Cout), lambda n: (0, 0, 0)),
            pl.BlockSpec((num_tail, 1, Cout), lambda n: (0, 0, 0)),
        ]
        scratch = [pltpu.VMEM((R, Cout), jnp.float32)]

    call = pl.pallas_call(
        _make_group_kernel(Ho, Wo, Wp2, base, num_tail),
        grid=(N,),
        in_specs=in_specs,
        out_specs=pl.BlockSpec((1, M, Cout), lambda n: (n, 0, 0)),
        out_shape=jax.ShapeDtypeStruct((N, M, Cout), jnp.float32),
        scratch_shapes=scratch,
        compiler_params=pltpu.CompilerParams(
            dimension_semantics=("parallel",),    # feeds both v7x TensorCores
            vmem_limit_bytes=32 * 1024 * 1024,    # tiny usage; fits every gen
        ),
    )
    return call, Ho, Wo, Hp2, Wp2


# ---------------------------------------------------------------------------
# Forward (jitted): transpose/pad/parity-split + one pallas_call + crop
# ---------------------------------------------------------------------------
def _group_forward(x_nchw, params):
    N, Cin, H, W = x_nchw.shape
    head = params["head"]
    Cmid_h = head["w1"].shape[-1]
    Cout = head["w2"].shape[-1]
    tail = params.get("tail", None)
    num_tail = tail["w1"].shape[0] if tail is not None else 0
    Cmid_t = tail["w1"].shape[-1] if tail is not None else 0

    call, Ho, Wo, Hp2, Wp2 = _build_group_call(
        N, H, W, Cin, Cmid_h, Cout, Cmid_t, num_tail)

    # One-time zero halo + parity (space-to-depth) split for the stride-2 head,
    # padded so the sub-grid width equals the tail buffer width (fused by XLA).
    x = jnp.transpose(x_nchw, (0, 2, 3, 1))               # NCHW -> NHWC
    xp = jnp.pad(x, ((0, 0), (1, 1), (1, 1), (0, 0)))
    subs = []
    for a in range(2):
        for b in range(2):
            s = xp[:, a::2, b::2, :]
            hs, ws = s.shape[1], s.shape[2]
            s = jnp.pad(s, ((0, 0), (0, Hp2 - hs), (0, Wp2 - ws), (0, 0)))
            subs.append(s.reshape(N, Hp2 * Wp2, Cin).astype(jnp.bfloat16))

    args = subs + [head["w1"], head["b1"], head["w2"], head["b2"]]
    if num_tail:
        args += [tail["w1"], tail["b1"], tail["w2"], tail["b2"]]

    y = call(*args)                                       # (N, Ho*Wp2, Cout) f32
    y = y.reshape(N, Ho, Wp2, Cout)[:, :, :Wo, :]         # drop junk columns
    return jnp.transpose(y, (0, 3, 1, 2))                 # NHWC -> NCHW


fused_irb_group = jax.jit(_group_forward)


# ---------------------------------------------------------------------------
# Parameters: torch-equivalent init + eval-mode BatchNorm folding (f32 logical)
# ---------------------------------------------------------------------------
def make_fused_mbconv_params(key, cin, cout, expansion, with_rezero,
                             re_zero_init=0.0):
    cmid = cin * expansion
    eps = 1e-5
    ks = jax.random.split(key, 11)

    # ConvBNAct: Conv2d(cin, cmid, 3, pad=1, bias=False) + BN + ReLU
    w1 = jax.random.normal(ks[0], (cmid, cin, 3, 3), jnp.float32) / jnp.sqrt(9.0 * cin)
    g1 = jax.random.uniform(ks[1], (cmid,), jnp.float32, 0.5, 1.5)
    be1 = jax.random.normal(ks[2], (cmid,), jnp.float32) * 0.1
    rm1 = jax.random.normal(ks[3], (cmid,), jnp.float32) * 0.1
    rv1 = jax.random.uniform(ks[4], (cmid,), jnp.float32, 0.5, 1.5)

    # Conv2d(cmid, cout, 1) with bias, then BatchNorm2d(cout)
    w2 = jax.random.normal(ks[5], (cout, cmid, 1, 1), jnp.float32) / jnp.sqrt(1.0 * cmid)
    b2 = jax.random.normal(ks[6], (cout,), jnp.float32) * 0.1
    g2 = jax.random.uniform(ks[7], (cout,), jnp.float32, 0.5, 1.5)
    be2 = jax.random.normal(ks[8], (cout,), jnp.float32) * 0.1
    rm2 = jax.random.normal(ks[9], (cout,), jnp.float32) * 0.1
    rv2 = jax.random.uniform(ks[10], (cout,), jnp.float32, 0.5, 1.5)

    # fold BN1 into conv1 (conv has no bias)
    s1 = g1 / jnp.sqrt(rv1 + eps)
    w1_f = w1 * s1[:, None, None, None]
    b1_f = be1 - rm1 * s1
    # (cout, cin, kh, kw) -> (kh, kw, cin, cmid) -> (9, cin, cmid): per-tap mats
    w1_taps = jnp.transpose(w1_f, (2, 3, 1, 0)).reshape(9, cin, cmid)

    # fold BN2 into conv2 (conv has bias b2)
    s2 = g2 / jnp.sqrt(rv2 + eps)
    w2_mat = (w2[:, :, 0, 0] * s2[:, None]).T             # (cmid, cout)
    b2_f = s2 * (b2 - rm2) + be2

    params = dict(w1=w1_taps, b1=b1_f, w2=w2_mat, b2=b2_f)
    if with_rezero:
        # torch initializes re_zero to 0.0 (identity residual); keep that default.
        params["re_zero"] = jnp.array([re_zero_init], jnp.float32)
    return params


def prepare_group_params(block_params):
    """Fold re_zero into the tail 1x1 convs, cast matmul operands to bf16,
    stack the tail blocks.  No channel padding in HBM (native channel counts)."""
    def prep(p, fold_rz):
        w1, b1, w2, b2 = p["w1"], p["b1"], p["w2"], p["b2"]
        if fold_rz:
            rz = p["re_zero"][0]
            w2 = w2 * rz
            b2 = b2 * rz
        return dict(w1=w1.astype(jnp.bfloat16),
                    b1=b1.reshape(1, -1).astype(jnp.float32),
                    w2=w2.astype(jnp.bfloat16),
                    b2=b2.reshape(1, -1).astype(jnp.float32))

    out = dict(head=prep(block_params[0], False))
    tails = block_params[1:]
    if tails:
        for p in tails:
            # residual path requires LOGICAL in_channels == out_channels
            assert p["w1"].shape[1] == p["w2"].shape[1], \
                "residual FusedMBConv requires in_channels == out_channels"
        tp = [prep(p, True) for p in tails]
        out["tail"] = dict(w1=jnp.stack([t["w1"] for t in tp]),
                           b1=jnp.stack([t["b1"] for t in tp]),
                           w2=jnp.stack([t["w2"] for t in tp]),
                           b2=jnp.stack([t["b2"] for t in tp]))
    return out


# ---------------------------------------------------------------------------
# Pure-JAX reference (lax.conv, f32, unfolded re_zero) for verification
# ---------------------------------------------------------------------------
def _ref_block(x_nhwc, p, stride, residual):
    _, cin, cmid = p["w1"].shape
    cout = p["w2"].shape[1]
    w1 = p["w1"].reshape(3, 3, cin, cmid)                  # HWIO
    h = lax.conv_general_dilated(
        x_nhwc, w1, (stride, stride), [(1, 1), (1, 1)],
        dimension_numbers=("NHWC", "HWIO", "NHWC"))
    h = jnp.maximum(h + p["b1"].reshape(1, 1, 1, cmid), 0.0)
    y = jnp.einsum("nhwc,cd->nhwd", h, p["w2"]) + p["b2"].reshape(1, 1, 1, cout)
    if residual:
        y = x_nhwc + p["re_zero"][0] * y
    return y


def _ref_group(x_nchw, block_params):
    x = jnp.transpose(x_nchw, (0, 2, 3, 1))
    x = _ref_block(x, block_params[0], 2, False)
    for p in block_params[1:]:
        x = _ref_block(x, p, 1, True)
    return jnp.transpose(x, (0, 3, 1, 2))


# ---------------------------------------------------------------------------
if __name__ == "__main__":
    key = jax.random.PRNGKey(0)
    kx, kp = jax.random.split(key)

    N, Cin, H, W = 2, 4, 16, 16
    Cout, num_blocks, expansion = 8, 3, 4

    x = jax.random.normal(kx, (N, Cin, H, W), jnp.float32)

    bkeys = jax.random.split(kp, num_blocks)
    block_params = [make_fused_mbconv_params(bkeys[0], Cin, Cout, expansion,
                                             with_rezero=False)]
    for i in range(1, num_blocks):
        # NOTE: torch initializes re_zero to 0.0 (module default, kept above);
        # we pass a nonzero value here only so the residual body is exercised
        # numerically in this test (the reference uses the same value).
        block_params.append(
            make_fused_mbconv_params(bkeys[i], Cout, Cout, expansion,
                                     with_rezero=True, re_zero_init=0.1 * i))

    prepared = prepare_group_params(block_params)

    out = fused_irb_group(x, prepared)
    out = jax.block_until_ready(out)

    ref = _ref_group(x, block_params)
    assert out.shape == (N, Cout, H // 2, W // 2), out.shape

    # bf16 matmul operands vs f32 reference: check relative L2 error.
    diff = out - ref
    rel_l2 = float(jnp.sqrt(jnp.sum(diff * diff)) /
                   (jnp.sqrt(jnp.sum(ref * ref)) + 1e-12))
    max_abs = float(jnp.max(jnp.abs(diff)))
    if rel_l2 < 2e-2:
        print("KERNEL_OK")
    else:
        print(f"MISMATCH rel_l2={rel_l2} max_abs_err={max_abs}")
</pallas_src>

<mosaic_0001>
module attributes {stable_mosaic.version = 11 : i64} {
  func.func @kernel(%arg0: i32, %arg1: memref<1x100x4xbf16, #tpu.memory_space<vmem>>, %arg2: memref<1x100x4xbf16, #tpu.memory_space<vmem>>, %arg3: memref<1x100x4xbf16, #tpu.memory_space<vmem>>, %arg4: memref<1x100x4xbf16, #tpu.memory_space<vmem>>, %arg5: memref<9x4x16xbf16, #tpu.memory_space<vmem>>, %arg6: memref<1x16xf32, #tpu.memory_space<vmem>>, %arg7: memref<16x8xbf16, #tpu.memory_space<vmem>>, %arg8: memref<1x8xf32, #tpu.memory_space<vmem>>, %arg9: memref<2x9x8x32xbf16, #tpu.memory_space<vmem>>, %arg10: memref<2x1x32xf32, #tpu.memory_space<vmem>>, %arg11: memref<2x32x8xbf16, #tpu.memory_space<vmem>>, %arg12: memref<2x1x8xf32, #tpu.memory_space<vmem>>, %arg13: memref<1x80x8xf32, #tpu.memory_space<vmem>>, %arg14: memref<112x8xf32, #tpu.memory_space<vmem>>) attributes {dimension_semantics = [#tpu.dimension_semantics<parallel>], iteration_bounds = array<i64: 2>, scalar_prefetch = 0 : i64, scratch_operands = 1 : i64, tpu.core_type = #tpu.core_type<tc>, window_params = [{transform_indices = @transform_0, window_bounds = array<i64: 1, 100, 4>}, {transform_indices = @transform_1, window_bounds = array<i64: 1, 100, 4>}, {transform_indices = @transform_2, window_bounds = array<i64: 1, 100, 4>}, {transform_indices = @transform_3, window_bounds = array<i64: 1, 100, 4>}, {pipeline_mode = #tpu.pipeline_mode<synchronous>, transform_indices = @transform_4, window_bounds = array<i64: 9, 4, 16>}, {pipeline_mode = #tpu.pipeline_mode<synchronous>, transform_indices = @transform_5, window_bounds = array<i64: 1, 16>}, {pipeline_mode = #tpu.pipeline_mode<synchronous>, transform_indices = @transform_6, window_bounds = array<i64: 16, 8>}, {pipeline_mode = #tpu.pipeline_mode<synchronous>, transform_indices = @transform_7, window_bounds = array<i64: 1, 8>}, {pipeline_mode = #tpu.pipeline_mode<synchronous>, transform_indices = @transform_8, window_bounds = array<i64: 2, 9, 8, 32>}, {pipeline_mode = #tpu.pipeline_mode<synchronous>, transform_indices = @transform_9, window_bounds = array<i64: 2, 1, 32>}, {pipeline_mode = #tpu.pipeline_mode<synchronous>, transform_indices = @transform_10, window_bounds = array<i64: 2, 32, 8>}, {pipeline_mode = #tpu.pipeline_mode<synchronous>, transform_indices = @transform_11, window_bounds = array<i64: 2, 1, 8>}, {transform_indices = @transform_12, window_bounds = array<i64: 1, 80, 8>}]} {
    %0 = tpu.iota {dimensions = array<i32: 0>} : vector<80x1xi32>
    %c10_i32 = arith.constant 10 : i32
    %c0_i32 = arith.constant 0 : i32
    %1 = arith.cmpi eq, %c10_i32, %c0_i32 : i32
    %c1_i32 = arith.constant 1 : i32
    %2 = arith.select %1, %c1_i32, %c10_i32 : i32
    %3 = vector.broadcast %2 : i32 to vector<80x1xi32>
    %4 = arith.remsi %0, %3 : vector<80x1xi32>
    %c0_i32_0 = arith.constant 0 : i32
    %5 = vector.broadcast %c0_i32_0 : i32 to vector<80x1xi32>
    %6 = arith.cmpi ne, %4, %5 : vector<80x1xi32>
    %c0_i32_1 = arith.constant 0 : i32
    %7 = vector.broadcast %c0_i32_1 : i32 to vector<80x1xi32>
    %8 = arith.cmpi slt, %4, %7 : vector<80x1xi32>
    %c0_i32_2 = arith.constant 0 : i32
    %9 = arith.cmpi slt, %2, %c0_i32_2 : i32
    %10 = vector.broadcast %9 : i1 to vector<80x1xi1>
    %11 = vector.broadcast %10 : vector<80x1xi1> to vector<80x1xi1>
    %12 = arith.xori %8, %11 : vector<80x1xi1>
    %13 = arith.andi %12, %6 : vector<80x1xi1>
    %14 = vector.broadcast %2 : i32 to vector<80x1xi32>
    %15 = arith.addi %4, %14 : vector<80x1xi32>
    %16 = arith.select %13, %15, %4 : vector<80x1xi1>, vector<80x1xi32>
    %c8_i32 = arith.constant 8 : i32
    %17 = vector.broadcast %c8_i32 : i32 to vector<80x1xi32>
    %18 = arith.cmpi slt, %16, %17 : vector<80x1xi32>
    %c0 = arith.constant 0 : index
    %c0_3 = arith.constant 0 : index
    %19 = vector.load %arg6[%c0, %c0_3] : memref<1x16xf32, #tpu.memory_space<vmem>>, vector<1x16xf32>
    %c0_4 = arith.constant 0 : index
    %c0_5 = arith.constant 0 : index
    %20 = vector.load %arg7[%c0_4, %c0_5] : memref<16x8xbf16, #tpu.memory_space<vmem>>, vector<16x8xbf16>
    %c0_6 = arith.constant 0 : index
    %c0_7 = arith.constant 0 : index
    %21 = vector.load %arg8[%c0_6, %c0_7] : memref<1x8xf32, #tpu.memory_space<vmem>>, vector<1x8xf32>
    %c0_8 = arith.constant 0 : index
    %c0_9 = arith.constant 0 : index
    %c0_10 = arith.constant 0 : index
    %22 = vector.load %arg1[%c0_8, %c0_9, %c0_10] : memref<1x100x4xbf16, #tpu.memory_space<vmem>>, vector<1x80x4xbf16>
    %23 = vector.shape_cast %22 : vector<1x80x4xbf16> to vector<80x4xbf16>
    %c0_11 = arith.constant 0 : index
    %c0_12 = arith.constant 0 : index
    %c0_13 = arith.constant 0 : index
    %24 = vector.load %arg5[%c0_11, %c0_12, %c0_13] : memref<9x4x16xbf16, #tpu.memory_space<vmem>>, vector<1x4x16xbf16>
    %25 = vector.shape_cast %24 : vector<1x4x16xbf16> to vector<4x16xbf16>
    %cst = arith.constant dense<0.000000e+00> : vector<80x16xf32>
    %26 = tpu.matmul %23, %25, %cst {dimension_numbers = #tpu.dot_dimension_numbers<[1], [0], [0], [1], [0, 0, 1, 1], [], []>} : vector<80x4xbf16>, vector<4x16xbf16>, vector<80x16xf32> -> vector<80x16xf32>
    %27 = vector.broadcast %19 : vector<1x16xf32> to vector<80x16xf32>
    %28 = arith.addf %27, %26 : vector<80x16xf32>
    %c0_14 = arith.constant 0 : index
    %c0_15 = arith.constant 0 : index
    %c0_16 = arith.constant 0 : index
    %29 = vector.load %arg2[%c0_14, %c0_15, %c0_16] : memref<1x100x4xbf16, #tpu.memory_space<vmem>>, vector<1x80x4xbf16>
    %30 = vector.shape_cast %29 : vector<1x80x4xbf16> to vector<80x4xbf16>
    %c1 = arith.constant 1 : index
    %c0_17 = arith.constant 0 : index
    %c0_18 = arith.constant 0 : index
    %31 = vector.load %arg5[%c1, %c0_17, %c0_18] : memref<9x4x16xbf16, #tpu.memory_space<vmem>>, vector<1x4x16xbf16>
    %32 = vector.shape_cast %31 : vector<1x4x16xbf16> to vector<4x16xbf16>
    %cst_19 = arith.constant dense<0.000000e+00> : vector<80x16xf32>
    %33 = tpu.matmul %30, %32, %cst_19 {dimension_numbers = #tpu.dot_dimension_numbers<[1], [0], [0], [1], [0, 0, 1, 1], [], []>} : vector<80x4xbf16>, vector<4x16xbf16>, vector<80x16xf32> -> vector<80x16xf32>
    %34 = arith.addf %28, %33 : vector<80x16xf32>
    %c0_20 = arith.constant 0 : index
    %c1_21 = arith.constant 1 : index
    %c0_22 = arith.constant 0 : index
    %35 = vector.load %arg1[%c0_20, %c1_21, %c0_22] : memref<1x100x4xbf16, #tpu.memory_space<vmem>>, vector<1x80x4xbf16>
    %36 = vector.shape_cast %35 : vector<1x80x4xbf16> to vector<80x4xbf16>
    %c2 = arith.constant 2 : index
    %c0_23 = arith.constant 0 : index
    %c0_24 = arith.constant 0 : index
    %37 = vector.load %arg5[%c2, %c0_23, %c0_24] : memref<9x4x16xbf16, #tpu.memory_space<vmem>>, vector<1x4x16xbf16>
    %38 = vector.shape_cast %37 : vector<1x4x16xbf16> to vector<4x16xbf16>
    %cst_25 = arith.constant dense<0.000000e+00> : vector<80x16xf32>
    %39 = tpu.matmul %36, %38, %cst_25 {dimension_numbers = #tpu.dot_dimension_numbers<[1], [0], [0], [1], [0, 0, 1, 1], [], []>} : vector<80x4xbf16>, vector<4x16xbf16>, vector<80x16xf32> -> vector<80x16xf32>
    %40 = arith.addf %34, %39 : vector<80x16xf32>
    %c0_26 = arith.constant 0 : index
    %c0_27 = arith.constant 0 : index
    %c0_28 = arith.constant 0 : index
    %41 = vector.load %arg3[%c0_26, %c0_27, %c0_28] : memref<1x100x4xbf16, #tpu.memory_space<vmem>>, vector<1x80x4xbf16>
    %42 = vector.shape_cast %41 : vector<1x80x4xbf16> to vector<80x4xbf16>
    %c3 = arith.constant 3 : index
    %c0_29 = arith.constant 0 : index
    %c0_30 = arith.constant 0 : index
    %43 = vector.load %arg5[%c3, %c0_29, %c0_30] : memref<9x4x16xbf16, #tpu.memory_space<vmem>>, vector<1x4x16xbf16>
    %44 = vector.shape_cast %43 : vector<1x4x16xbf16> to vector<4x16xbf16>
    %cst_31 = arith.constant dense<0.000000e+00> : vector<80x16xf32>
    %45 = tpu.matmul %42, %44, %cst_31 {dimension_numbers = #tpu.dot_dimension_numbers<[1], [0], [0], [1], [0, 0, 1, 1], [], []>} : vector<80x4xbf16>, vector<4x16xbf16>, vector<80x16xf32> -> vector<80x16xf32>
    %46 = arith.addf %40, %45 : vector<80x16xf32>
    %c0_32 = arith.constant 0 : index
    %c0_33 = arith.constant 0 : index
    %c0_34 = arith.constant 0 : index
    %47 = vector.load %arg4[%c0_32, %c0_33, %c0_34] : memref<1x100x4xbf16, #tpu.memory_space<vmem>>, vector<1x80x4xbf16>
    %48 = vector.shape_cast %47 : vector<1x80x4xbf16> to vector<80x4xbf16>
    %c4 = arith.constant 4 : index
    %c0_35 = arith.constant 0 : index
    %c0_36 = arith.constant 0 : index
    %49 = vector.load %arg5[%c4, %c0_35, %c0_36] : memref<9x4x16xbf16, #tpu.memory_space<vmem>>, vector<1x4x16xbf16>
    %50 = vector.shape_cast %49 : vector<1x4x16xbf16> to vector<4x16xbf16>
    %cst_37 = arith.constant dense<0.000000e+00> : vector<80x16xf32>
    %51 = tpu.matmul %48, %50, %cst_37 {dimension_numbers = #tpu.dot_dimension_numbers<[1], [0], [0], [1], [0, 0, 1, 1], [], []>} : vector<80x4xbf16>, vector<4x16xbf16>, vector<80x16xf32> -> vector<80x16xf32>
    %52 = arith.addf %46, %51 : vector<80x16xf32>
    %c0_38 = arith.constant 0 : index
    %c1_39 = arith.constant 1 : index
    %c0_40 = arith.constant 0 : index
    %53 = vector.load %arg3[%c0_38, %c1_39, %c0_40] : memref<1x100x4xbf16, #tpu.memory_space<vmem>>, vector<1x80x4xbf16>
    %54 = vector.shape_cast %53 : vector<1x80x4xbf16> to vector<80x4xbf16>
    %c5 = arith.constant 5 : index
    %c0_41 = arith.constant 0 : index
    %c0_42 = arith.constant 0 : index
    %55 = vector.load %arg5[%c5, %c0_41, %c0_42] : memref<9x4x16xbf16, #tpu.memory_space<vmem>>, vector<1x4x16xbf16>
    %56 = vector.shape_cast %55 : vector<1x4x16xbf16> to vector<4x16xbf16>
    %cst_43 = arith.constant dense<0.000000e+00> : vector<80x16xf32>
    %57 = tpu.matmul %54, %56, %cst_43 {dimension_numbers = #tpu.dot_dimension_numbers<[1], [0], [0], [1], [0, 0, 1, 1], [], []>} : vector<80x4xbf16>, vector<4x16xbf16>, vector<80x16xf32> -> vector<80x16xf32>
    %58 = arith.addf %52, %57 : vector<80x16xf32>
    %c0_44 = arith.constant 0 : index
    %c10 = arith.constant 10 : index
    %c0_45 = arith.constant 0 : index
    %59 = vector.load %arg1[%c0_44, %c10, %c0_45] : memref<1x100x4xbf16, #tpu.memory_space<vmem>>, vector<1x80x4xbf16>
    %60 = vector.shape_cast %59 : vector<1x80x4xbf16> to vector<80x4xbf16>
    %c6 = arith.constant 6 : index
    %c0_46 = arith.constant 0 : index
    %c0_47 = arith.constant 0 : index
    %61 = vector.load %arg5[%c6, %c0_46, %c0_47] : memref<9x4x16xbf16, #tpu.memory_space<vmem>>, vector<1x4x16xbf16>
    %62 = vector.shape_cast %61 : vector<1x4x16xbf16> to vector<4x16xbf16>
    %cst_48 = arith.constant dense<0.000000e+00> : vector<80x16xf32>
    %63 = tpu.matmul %60, %62, %cst_48 {dimension_numbers = #tpu.dot_dimension_numbers<[1], [0], [0], [1], [0, 0, 1, 1], [], []>} : vector<80x4xbf16>, vector<4x16xbf16>, vector<80x16xf32> -> vector<80x16xf32>
    %64 = arith.addf %58, %63 : vector<80x16xf32>
    %c0_49 = arith.constant 0 : index
    %c10_50 = arith.constant 10 : index
    %c0_51 = arith.constant 0 : index
    %65 = vector.load %arg2[%c0_49, %c10_50, %c0_51] : memref<1x100x4xbf16, #tpu.memory_space<vmem>>, vector<1x80x4xbf16>
    %66 = vector.shape_cast %65 : vector<1x80x4xbf16> to vector<80x4xbf16>
    %c7 = arith.constant 7 : index
    %c0_52 = arith.constant 0 : index
    %c0_53 = arith.constant 0 : index
    %67 = vector.load %arg5[%c7, %c0_52, %c0_53] : memref<9x4x16xbf16, #tpu.memory_space<vmem>>, vector<1x4x16xbf16>
    %68 = vector.shape_cast %67 : vector<1x4x16xbf16> to vector<4x16xbf16>
    %cst_54 = arith.constant dense<0.000000e+00> : vector<80x16xf32>
    %69 = tpu.matmul %66, %68, %cst_54 {dimension_numbers = #tpu.dot_dimension_numbers<[1], [0], [0], [1], [0, 0, 1, 1], [], []>} : vector<80x4xbf16>, vector<4x16xbf16>, vector<80x16xf32> -> vector<80x16xf32>
    %70 = arith.addf %64, %69 : vector<80x16xf32>
    %c0_55 = arith.constant 0 : index
    %c11 = arith.constant 11 : index
    %c0_56 = arith.constant 0 : index
    %71 = vector.load %arg1[%c0_55, %c11, %c0_56] : memref<1x100x4xbf16, #tpu.memory_space<vmem>>, vector<1x80x4xbf16>
    %72 = vector.shape_cast %71 : vector<1x80x4xbf16> to vector<80x4xbf16>
    %c8 = arith.constant 8 : index
    %c0_57 = arith.constant 0 : index
    %c0_58 = arith.constant 0 : index
    %73 = vector.load %arg5[%c8, %c0_57, %c0_58] : memref<9x4x16xbf16, #tpu.memory_space<vmem>>, vector<1x4x16xbf16>
    %74 = vector.shape_cast %73 : vector<1x4x16xbf16> to vector<4x16xbf16>
    %cst_59 = arith.constant dense<0.000000e+00> : vector<80x16xf32>
    %75 = tpu.matmul %72, %74, %cst_59 {dimension_numbers = #tpu.dot_dimension_numbers<[1], [0], [0], [1], [0, 0, 1, 1], [], []>} : vector<80x4xbf16>, vector<4x16xbf16>, vector<80x16xf32> -> vector<80x16xf32>
    %76 = arith.addf %70, %75 : vector<80x16xf32>
    %cst_60 = arith.constant 0.000000e+00 : f32
    %77 = vector.broadcast %cst_60 : f32 to vector<80x16xf32>
    %78 = arith.maximumf %76, %77 : vector<80x16xf32>
    %79 = arith.truncf %78 : vector<80x16xf32> to vector<80x16xbf16>
    %cst_61 = arith.constant dense<0.000000e+00> : vector<80x8xf32>
    %80 = tpu.matmul %79, %20, %cst_61 {dimension_numbers = #tpu.dot_dimension_numbers<[1], [0], [0], [1], [0, 0, 1, 1], [], []>} : vector<80x16xbf16>, vector<16x8xbf16>, vector<80x8xf32> -> vector<80x8xf32>
    %81 = vector.broadcast %21 : vector<1x8xf32> to vector<80x8xf32>
    %82 = arith.addf %80, %81 : vector<80x8xf32>
    %cst_62 = arith.constant 0.000000e+00 : f32
    %83 = vector.shape_cast %18 : vector<80x1xi1> to vector<80x1xi1>
    %84 = vector.broadcast %83 : vector<80x1xi1> to vector<80x8xi1>
    %85 = vector.broadcast %cst_62 : f32 to vector<80x8xf32>
    %86 = arith.select %84, %82, %85 : vector<80x8xi1>, vector<80x8xf32>
    %cst_63 = arith.constant 0.000000e+00 : f32
    %87 = vector.broadcast %cst_63 : f32 to vector<112x8xf32>
    %c0_64 = arith.constant 0 : index
    %c0_65 = arith.constant 0 : index
    %88 = vector.load %arg14[%c0_64, %c0_65] : memref<112x8xf32, #tpu.memory_space<vmem>>, vector<112x8xf32>
    tpu.vector_store %arg14[%c0_64, %c0_65], %87 {strides = array<i32>} : memref<112x8xf32, #tpu.memory_space<vmem>>, vector<112x8xf32>,
    %c16 = arith.constant 16 : index
    %c0_66 = arith.constant 0 : index
    %89 = vector.load %arg14[%c16, %c0_66] : memref<112x8xf32, #tpu.memory_space<vmem>>, vector<80x8xf32>
    tpu.vector_store %arg14[%c16, %c0_66], %86 {strides = array<i32>} : memref<112x8xf32, #tpu.memory_space<vmem>>, vector<80x8xf32>,
    %c0_67 = arith.constant 0 : index
    %c0_68 = arith.constant 0 : index
    %c0_69 = arith.constant 0 : index
    %90 = vector.load %arg10[%c0_67, %c0_68, %c0_69] : memref<2x1x32xf32, #tpu.memory_space<vmem>>, vector<1x1x32xf32>
    %91 = vector.shape_cast %90 : vector<1x1x32xf32> to vector<1x32xf32>
    %c0_70 = arith.constant 0 : index
    %c0_71 = arith.constant 0 : index
    %c0_72 = arith.constant 0 : index
    %92 = vector.load %arg11[%c0_70, %c0_71, %c0_72] : memref<2x32x8xbf16, #tpu.memory_space<vmem>>, vector<1x32x8xbf16>
    %93 = vector.shape_cast %92 : vector<1x32x8xbf16> to vector<32x8xbf16>
    %c0_73 = arith.constant 0 : index
    %c0_74 = arith.constant 0 : index
    %c0_75 = arith.constant 0 : index
    %94 = vector.load %arg12[%c0_73, %c0_74, %c0_75] : memref<2x1x8xf32, #tpu.memory_space<vmem>>, vector<1x1x8xf32>
    %95 = vector.shape_cast %94 : vector<1x1x8xf32> to vector<1x8xf32>
    %c5_76 = arith.constant 5 : index
    %c0_77 = arith.constant 0 : index
    %96 = vector.load %arg14[%c5_76, %c0_77] : memref<112x8xf32, #tpu.memory_space<vmem>>, vector<80x8xf32>
    %97 = arith.truncf %96 : vector<80x8xf32> to vector<80x8xbf16>
    %c0_78 = arith.constant 0 : index
    %c0_79 = arith.constant 0 : index
    %c0_80 = arith.constant 0 : index
    %c0_81 = arith.constant 0 : index
    %98 = vector.load %arg9[%c0_78, %c0_79, %c0_80, %c0_81] : memref<2x9x8x32xbf16, #tpu.memory_space<vmem>>, vector<1x1x8x32xbf16>
    %99 = vector.shape_cast %98 : vector<1x1x8x32xbf16> to vector<8x32xbf16>
    %cst_82 = arith.constant dense<0.000000e+00> : vector<80x32xf32>
    %100 = tpu.matmul %97, %99, %cst_82 {dimension_numbers = #tpu.dot_dimension_numbers<[1], [0], [0], [1], [0, 0, 1, 1], [], []>} : vector<80x8xbf16>, vector<8x32xbf16>, vector<80x32xf32> -> vector<80x32xf32>
    %101 = vector.broadcast %91 : vector<1x32xf32> to vector<80x32xf32>
    %102 = arith.addf %101, %100 : vector<80x32xf32>
    %c6_83 = arith.constant 6 : index
    %c0_84 = arith.constant 0 : index
    %103 = vector.load %arg14[%c6_83, %c0_84] : memref<112x8xf32, #tpu.memory_space<vmem>>, vector<80x8xf32>
    %104 = arith.truncf %103 : vector<80x8xf32> to vector<80x8xbf16>
    %c0_85 = arith.constant 0 : index
    %c1_86 = arith.constant 1 : index
    %c0_87 = arith.constant 0 : index
    %c0_88 = arith.constant 0 : index
    %105 = vector.load %arg9[%c0_85, %c1_86, %c0_87, %c0_88] : memref<2x9x8x32xbf16, #tpu.memory_space<vmem>>, vector<1x1x8x32xbf16>
    %106 = vector.shape_cast %105 : vector<1x1x8x32xbf16> to vector<8x32xbf16>
    %cst_89 = arith.constant dense<0.000000e+00> : vector<80x32xf32>
    %107 = tpu.matmul %104, %106, %cst_89 {dimension_numbers = #tpu.dot_dimension_numbers<[1], [0], [0], [1], [0, 0, 1, 1], [], []>} : vector<80x8xbf16>, vector<8x32xbf16>, vector<80x32xf32> -> vector<80x32xf32>
    %108 = arith.addf %102, %107 : vector<80x32xf32>
    %c7_90 = arith.constant 7 : index
    %c0_91 = arith.constant 0 : index
    %109 = vector.load %arg14[%c7_90, %c0_91] : memref<112x8xf32, #tpu.memory_space<vmem>>, vector<80x8xf32>
    %110 = arith.truncf %109 : vector<80x8xf32> to vector<80x8xbf16>
    %c0_92 = arith.constant 0 : index
    %c2_93 = arith.constant 2 : index
    %c0_94 = arith.constant 0 : index
    %c0_95 = arith.constant 0 : index
    %111 = vector.load %arg9[%c0_92, %c2_93, %c0_94, %c0_95] : memref<2x9x8x32xbf16, #tpu.memory_space<vmem>>, vector<1x1x8x32xbf16>
    %112 = vector.shape_cast %111 : vector<1x1x8x32xbf16> to vector<8x32xbf16>
    %cst_96 = arith.constant dense<0.000000e+00> : vector<80x32xf32>
    %113 = tpu.matmul %110, %112, %cst_96 {dimension_numbers = #tpu.dot_dimension_numbers<[1], [0], [0], [1], [0, 0, 1, 1], [], []>} : vector<80x8xbf16>, vector<8x32xbf16>, vector<80x32xf32> -> vector<80x32xf32>
    %114 = arith.addf %108, %113 : vector<80x32xf32>
    %c15 = arith.constant 15 : index
    %c0_97 = arith.constant 0 : index
    %115 = vector.load %arg14[%c15, %c0_97] : memref<112x8xf32, #tpu.memory_space<vmem>>, vector<80x8xf32>
    %116 = arith.truncf %115 : vector<80x8xf32> to vector<80x8xbf16>
    %c0_98 = arith.constant 0 : index
    %c3_99 = arith.constant 3 : index
    %c0_100 = arith.constant 0 : index
    %c0_101 = arith.constant 0 : index
    %117 = vector.load %arg9[%c0_98, %c3_99, %c0_100, %c0_101] : memref<2x9x8x32xbf16, #tpu.memory_space<vmem>>, vector<1x1x8x32xbf16>
    %118 = vector.shape_cast %117 : vector<1x1x8x32xbf16> to vector<8x32xbf16>
    %cst_102 = arith.constant dense<0.000000e+00> : vector<80x32xf32>
    %119 = tpu.matmul %116, %118, %cst_102 {dimension_numbers = #tpu.dot_dimension_numbers<[1], [0], [0], [1], [0, 0, 1, 1], [], []>} : vector<80x8xbf16>, vector<8x32xbf16>, vector<80x32xf32> -> vector<80x32xf32>
    %120 = arith.addf %114, %119 : vector<80x32xf32>
    %c16_103 = arith.constant 16 : index
    %c0_104 = arith.constant 0 : index
    %121 = vector.load %arg14[%c16_103, %c0_104] : memref<112x8xf32, #tpu.memory_space<vmem>>, vector<80x8xf32>
    %122 = arith.truncf %121 : vector<80x8xf32> to vector<80x8xbf16>
    %c0_105 = arith.constant 0 : index
    %c4_106 = arith.constant 4 : index
    %c0_107 = arith.constant 0 : index
    %c0_108 = arith.constant 0 : index
    %123 = vector.load %arg9[%c0_105, %c4_106, %c0_107, %c0_108] : memref<2x9x8x32xbf16, #tpu.memory_space<vmem>>, vector<1x1x8x32xbf16>
    %124 = vector.shape_cast %123 : vector<1x1x8x32xbf16> to vector<8x32xbf16>
    %cst_109 = arith.constant dense<0.000000e+00> : vector<80x32xf32>
    %125 = tpu.matmul %122, %124, %cst_109 {dimension_numbers = #tpu.dot_dimension_numbers<[1], [0], [0], [1], [0, 0, 1, 1], [], []>} : vector<80x8xbf16>, vector<8x32xbf16>, vector<80x32xf32> -> vector<80x32xf32>
    %126 = arith.addf %120, %125 : vector<80x32xf32>
    %c17 = arith.constant 17 : index
    %c0_110 = arith.constant 0 : index
    %127 = vector.load %arg14[%c17, %c0_110] : memref<112x8xf32, #tpu.memory_space<vmem>>, vector<80x8xf32>
    %128 = arith.truncf %127 : vector<80x8xf32> to vector<80x8xbf16>
    %c0_111 = arith.constant 0 : index
    %c5_112 = arith.constant 5 : index
    %c0_113 = arith.constant 0 : index
    %c0_114 = arith.constant 0 : index
    %129 = vector.load %arg9[%c0_111, %c5_112, %c0_113, %c0_114] : memref<2x9x8x32xbf16, #tpu.memory_space<vmem>>, vector<1x1x8x32xbf16>
    %130 = vector.shape_cast %129 : vector<1x1x8x32xbf16> to vector<8x32xbf16>
    %cst_115 = arith.constant dense<0.000000e+00> : vector<80x32xf32>
    %131 = tpu.matmul %128, %130, %cst_115 {dimension_numbers = #tpu.dot_dimension_numbers<[1], [0], [0], [1], [0, 0, 1, 1], [], []>} : vector<80x8xbf16>, vector<8x32xbf16>, vector<80x32xf32> -> vector<80x32xf32>
    %132 = arith.addf %126, %131 : vector<80x32xf32>
    %c25 = arith.constant 25 : index
    %c0_116 = arith.constant 0 : index
    %133 = vector.load %arg14[%c25, %c0_116] : memref<112x8xf32, #tpu.memory_space<vmem>>, vector<80x8xf32>
    %134 = arith.truncf %133 : vector<80x8xf32> to vector<80x8xbf16>
    %c0_117 = arith.constant 0 : index
    %c6_118 = arith.constant 6 : index
    %c0_119 = arith.constant 0 : index
    %c0_120 = arith.constant 0 : index
    %135 = vector.load %arg9[%c0_117, %c6_118, %c0_119, %c0_120] : memref<2x9x8x32xbf16, #tpu.memory_space<vmem>>, vector<1x1x8x32xbf16>
    %136 = vector.shape_cast %135 : vector<1x1x8x32xbf16> to vector<8x32xbf16>
    %cst_121 = arith.constant dense<0.000000e+00> : vector<80x32xf32>
    %137 = tpu.matmul %134, %136, %cst_121 {dimension_numbers = #tpu.dot_dimension_numbers<[1], [0], [0], [1], [0, 0, 1, 1], [], []>} : vector<80x8xbf16>, vector<8x32xbf16>, vector<80x32xf32> -> vector<80x32xf32>
    %138 = arith.addf %132, %137 : vector<80x32xf32>
    %c26 = arith.constant 26 : index
    %c0_122 = arith.constant 0 : index
    %139 = vector.load %arg14[%c26, %c0_122] : memref<112x8xf32, #tpu.memory_space<vmem>>, vector<80x8xf32>
    %140 = arith.truncf %139 : vector<80x8xf32> to vector<80x8xbf16>
    %c0_123 = arith.constant 0 : index
    %c7_124 = arith.constant 7 : index
    %c0_125 = arith.constant 0 : index
    %c0_126 = arith.constant 0 : index
    %141 = vector.load %arg9[%c0_123, %c7_124, %c0_125, %c0_126] : memref<2x9x8x32xbf16, #tpu.memory_space<vmem>>, vector<1x1x8x32xbf16>
    %142 = vector.shape_cast %141 : vector<1x1x8x32xbf16> to vector<8x32xbf16>
    %cst_127 = arith.constant dense<0.000000e+00> : vector<80x32xf32>
    %143 = tpu.matmul %140, %142, %cst_127 {dimension_numbers = #tpu.dot_dimension_numbers<[1], [0], [0], [1], [0, 0, 1, 1], [], []>} : vector<80x8xbf16>, vector<8x32xbf16>, vector<80x32xf32> -> vector<80x32xf32>
    %144 = arith.addf %138, %143 : vector<80x32xf32>
    %c27 = arith.constant 27 : index
    %c0_128 = arith.constant 0 : index
    %145 = vector.load %arg14[%c27, %c0_128] : memref<112x8xf32, #tpu.memory_space<vmem>>, vector<80x8xf32>
    %146 = arith.truncf %145 : vector<80x8xf32> to vector<80x8xbf16>
    %c0_129 = arith.constant 0 : index
    %c8_130 = arith.constant 8 : index
    %c0_131 = arith.constant 0 : index
    %c0_132 = arith.constant 0 : index
    %147 = vector.load %arg9[%c0_129, %c8_130, %c0_131, %c0_132] : memref<2x9x8x32xbf16, #tpu.memory_space<vmem>>, vector<1x1x8x32xbf16>
    %148 = vector.shape_cast %147 : vector<1x1x8x32xbf16> to vector<8x32xbf16>
    %cst_133 = arith.constant dense<0.000000e+00> : vector<80x32xf32>
    %149 = tpu.matmul %146, %148, %cst_133 {dimension_numbers = #tpu.dot_dimension_numbers<[1], [0], [0], [1], [0, 0, 1, 1], [], []>} : vector<80x8xbf16>, vector<8x32xbf16>, vector<80x32xf32> -> vector<80x32xf32>
    %150 = arith.addf %144, %149 : vector<80x32xf32>
    %cst_134 = arith.constant 0.000000e+00 : f32
    %151 = vector.broadcast %cst_134 : f32 to vector<80x32xf32>
    %152 = arith.maximumf %150, %151 : vector<80x32xf32>
    %153 = arith.truncf %152 : vector<80x32xf32> to vector<80x32xbf16>
    %cst_135 = arith.constant dense<0.000000e+00> : vector<80x8xf32>
    %154 = tpu.matmul %153, %93, %cst_135 {dimension_numbers = #tpu.dot_dimension_numbers<[1], [0], [0], [1], [0, 0, 1, 1], [], []>} : vector<80x32xbf16>, vector<32x8xbf16>, vector<80x8xf32> -> vector<80x8xf32>
    %155 = vector.broadcast %95 : vector<1x8xf32> to vector<80x8xf32>
    %156 = arith.addf %154, %155 : vector<80x8xf32>
    %157 = arith.addf %86, %156 : vector<80x8xf32>
    %cst_136 = arith.constant 0.000000e+00 : f32
    %158 = vector.shape_cast %18 : vector<80x1xi1> to vector<80x1xi1>
    %159 = vector.broadcast %158 : vector<80x1xi1> to vector<80x8xi1>
    %160 = vector.broadcast %cst_136 : f32 to vector<80x8xf32>
    %161 = arith.select %159, %157, %160 : vector<80x8xi1>, vector<80x8xf32>
    %cst_137 = arith.constant 0.000000e+00 : f32
    %162 = vector.broadcast %cst_137 : f32 to vector<112x8xf32>
    %c0_138 = arith.constant 0 : index
    %c0_139 = arith.constant 0 : index
    %163 = vector.load %arg14[%c0_138, %c0_139] : memref<112x8xf32, #tpu.memory_space<vmem>>, vector<112x8xf32>
    tpu.vector_store %arg14[%c0_138, %c0_139], %162 {strides = array<i32>} : memref<112x8xf32, #tpu.memory_space<vmem>>, vector<112x8xf32>,
    %c16_140 = arith.constant 16 : index
    %c0_141 = arith.constant 0 : index
    %164 = vector.load %arg14[%c16_140, %c0_141] : memref<112x8xf32, #tpu.memory_space<vmem>>, vector<80x8xf32>
    tpu.vector_store %arg14[%c16_140, %c0_141], %161 {strides = array<i32>} : memref<112x8xf32, #tpu.memory_space<vmem>>, vector<80x8xf32>,
    %c1_142 = arith.constant 1 : index
    %c0_143 = arith.constant 0 : index
    %c0_144 = arith.constant 0 : index
    %165 = vector.load %arg10[%c1_142, %c0_143, %c0_144] : memref<2x1x32xf32, #tpu.memory_space<vmem>>, vector<1x1x32xf32>
    %166 = vector.shape_cast %165 : vector<1x1x32xf32> to vector<1x32xf32>
    %c1_145 = arith.constant 1 : index
    %c0_146 = arith.constant 0 : index
    %c0_147 = arith.constant 0 : index
    %167 = vector.load %arg11[%c1_145, %c0_146, %c0_147] : memref<2x32x8xbf16, #tpu.memory_space<vmem>>, vector<1x32x8xbf16>
    %168 = vector.shape_cast %167 : vector<1x32x8xbf16> to vector<32x8xbf16>
    %c1_148 = arith.constant 1 : index
    %c0_149 = arith.constant 0 : index
    %c0_150 = arith.constant 0 : index
    %169 = vector.load %arg12[%c1_148, %c0_149, %c0_150] : memref<2x1x8xf32, #tpu.memory_space<vmem>>, vector<1x1x8xf32>
    %170 = vector.shape_cast %169 : vector<1x1x8xf32> to vector<1x8xf32>
    %c5_151 = arith.constant 5 : index
    %c0_152 = arith.constant 0 : index
    %171 = vector.load %arg14[%c5_151, %c0_152] : memref<112x8xf32, #tpu.memory_space<vmem>>, vector<80x8xf32>
    %172 = arith.truncf %171 : vector<80x8xf32> to vector<80x8xbf16>
    %c1_153 = arith.constant 1 : index
    %c0_154 = arith.constant 0 : index
    %c0_155 = arith.constant 0 : index
    %c0_156 = arith.constant 0 : index
    %173 = vector.load %arg9[%c1_153, %c0_154, %c0_155, %c0_156] : memref<2x9x8x32xbf16, #tpu.memory_space<vmem>>, vector<1x1x8x32xbf16>
    %174 = vector.shape_cast %173 : vector<1x1x8x32xbf16> to vector<8x32xbf16>
    %cst_157 = arith.constant dense<0.000000e+00> : vector<80x32xf32>
    %175 = tpu.matmul %172, %174, %cst_157 {dimension_numbers = #tpu.dot_dimension_numbers<[1], [0], [0], [1], [0, 0, 1, 1], [], []>} : vector<80x8xbf16>, vector<8x32xbf16>, vector<80x32xf32> -> vector<80x32xf32>
    %176 = vector.broadcast %166 : vector<1x32xf32> to vector<80x32xf32>
    %177 = arith.addf %176, %175 : vector<80x32xf32>
    %c6_158 = arith.constant 6 : index
    %c0_159 = arith.constant 0 : index
    %178 = vector.load %arg14[%c6_158, %c0_159] : memref<112x8xf32, #tpu.memory_space<vmem>>, vector<80x8xf32>
    %179 = arith.truncf %178 : vector<80x8xf32> to vector<80x8xbf16>
    %c1_160 = arith.constant 1 : index
    %c1_161 = arith.constant 1 : index
    %c0_162 = arith.constant 0 : index
    %c0_163 = arith.constant 0 : index
    %180 = vector.load %arg9[%c1_160, %c1_161, %c0_162, %c0_163] : memref<2x9x8x32xbf16, #tpu.memory_space<vmem>>, vector<1x1x8x32xbf16>
    %181 = vector.shape_cast %180 : vector<1x1x8x32xbf16> to vector<8x32xbf16>
    %cst_164 = arith.constant dense<0.000000e+00> : vector<80x32xf32>
    %182 = tpu.matmul %179, %181, %cst_164 {dimension_numbers = #tpu.dot_dimension_numbers<[1], [0], [0], [1], [0, 0, 1, 1], [], []>} : vector<80x8xbf16>, vector<8x32xbf16>, vector<80x32xf32> -> vector<80x32xf32>
    %183 = arith.addf %177, %182 : vector<80x32xf32>
    %c7_165 = arith.constant 7 : index
    %c0_166 = arith.constant 0 : index
    %184 = vector.load %arg14[%c7_165, %c0_166] : memref<112x8xf32, #tpu.memory_space<vmem>>, vector<80x8xf32>
    %185 = arith.truncf %184 : vector<80x8xf32> to vector<80x8xbf16>
    %c1_167 = arith.constant 1 : index
    %c2_168 = arith.constant 2 : index
    %c0_169 = arith.constant 0 : index
    %c0_170 = arith.constant 0 : index
    %186 = vector.load %arg9[%c1_167, %c2_168, %c0_169, %c0_170] : memref<2x9x8x32xbf16, #tpu.memory_space<vmem>>, vector<1x1x8x32xbf16>
    %187 = vector.shape_cast %186 : vector<1x1x8x32xbf16> to vector<8x32xbf16>
    %cst_171 = arith.constant dense<0.000000e+00> : vector<80x32xf32>
    %188 = tpu.matmul %185, %187, %cst_171 {dimension_numbers = #tpu.dot_dimension_numbers<[1], [0], [0], [1], [0, 0, 1, 1], [], []>} : vector<80x8xbf16>, vector<8x32xbf16>, vector<80x32xf32> -> vector<80x32xf32>
    %189 = arith.addf %183, %188 : vector<80x32xf32>
    %c15_172 = arith.constant 15 : index
    %c0_173 = arith.constant 0 : index
    %190 = vector.load %arg14[%c15_172, %c0_173] : memref<112x8xf32, #tpu.memory_space<vmem>>, vector<80x8xf32>
    %191 = arith.truncf %190 : vector<80x8xf32> to vector<80x8xbf16>
    %c1_174 = arith.constant 1 : index
    %c3_175 = arith.constant 3 : index
    %c0_176 = arith.constant 0 : index
    %c0_177 = arith.constant 0 : index
    %192 = vector.load %arg9[%c1_174, %c3_175, %c0_176, %c0_177] : memref<2x9x8x32xbf16, #tpu.memory_space<vmem>>, vector<1x1x8x32xbf16>
    %193 = vector.shape_cast %192 : vector<1x1x8x32xbf16> to vector<8x32xbf16>
    %cst_178 = arith.constant dense<0.000000e+00> : vector<80x32xf32>
    %194 = tpu.matmul %191, %193, %cst_178 {dimension_numbers = #tpu.dot_dimension_numbers<[1], [0], [0], [1], [0, 0, 1, 1], [], []>} : vector<80x8xbf16>, vector<8x32xbf16>, vector<80x32xf32> -> vector<80x32xf32>
    %195 = arith.addf %189, %194 : vector<80x32xf32>
    %c16_179 = arith.constant 16 : index
    %c0_180 = arith.constant 0 : index
    %196 = vector.load %arg14[%c16_179, %c0_180] : memref<112x8xf32, #tpu.memory_space<vmem>>, vector<80x8xf32>
    %197 = arith.truncf %196 : vector<80x8xf32> to vector<80x8xbf16>
    %c1_181 = arith.constant 1 : index
    %c4_182 = arith.constant 4 : index
    %c0_183 = arith.constant 0 : index
    %c0_184 = arith.constant 0 : index
    %198 = vector.load %arg9[%c1_181, %c4_182, %c0_183, %c0_184] : memref<2x9x8x32xbf16, #tpu.memory_space<vmem>>, vector<1x1x8x32xbf16>
    %199 = vector.shape_cast %198 : vector<1x1x8x32xbf16> to vector<8x32xbf16>
    %cst_185 = arith.constant dense<0.000000e+00> : vector<80x32xf32>
    %200 = tpu.matmul %197, %199, %cst_185 {dimension_numbers = #tpu.dot_dimension_numbers<[1], [0], [0], [1], [0, 0, 1, 1], [], []>} : vector<80x8xbf16>, vector<8x32xbf16>, vector<80x32xf32> -> vector<80x32xf32>
    %201 = arith.addf %195, %200 : vector<80x32xf32>
    %c17_186 = arith.constant 17 : index
    %c0_187 = arith.constant 0 : index
    %202 = vector.load %arg14[%c17_186, %c0_187] : memref<112x8xf32, #tpu.memory_space<vmem>>, vector<80x8xf32>
    %203 = arith.truncf %202 : vector<80x8xf32> to vector<80x8xbf16>
    %c1_188 = arith.constant 1 : index
    %c5_189 = arith.constant 5 : index
    %c0_190 = arith.constant 0 : index
    %c0_191 = arith.constant 0 : index
    %204 = vector.load %arg9[%c1_188, %c5_189, %c0_190, %c0_191] : memref<2x9x8x32xbf16, #tpu.memory_space<vmem>>, vector<1x1x8x32xbf16>
    %205 = vector.shape_cast %204 : vector<1x1x8x32xbf16> to vector<8x32xbf16>
    %cst_192 = arith.constant dense<0.000000e+00> : vector<80x32xf32>
    %206 = tpu.matmul %203, %205, %cst_192 {dimension_numbers = #tpu.dot_dimension_numbers<[1], [0], [0], [1], [0, 0, 1, 1], [], []>} : vector<80x8xbf16>, vector<8x32xbf16>, vector<80x32xf32> -> vector<80x32xf32>
    %207 = arith.addf %201, %206 : vector<80x32xf32>
    %c25_193 = arith.constant 25 : index
    %c0_194 = arith.constant 0 : index
    %208 = vector.load %arg14[%c25_193, %c0_194] : memref<112x8xf32, #tpu.memory_space<vmem>>, vector<80x8xf32>
    %209 = arith.truncf %208 : vector<80x8xf32> to vector<80x8xbf16>
    %c1_195 = arith.constant 1 : index
    %c6_196 = arith.constant 6 : index
    %c0_197 = arith.constant 0 : index
    %c0_198 = arith.constant 0 : index
    %210 = vector.load %arg9[%c1_195, %c6_196, %c0_197, %c0_198] : memref<2x9x8x32xbf16, #tpu.memory_space<vmem>>, vector<1x1x8x32xbf16>
    %211 = vector.shape_cast %210 : vector<1x1x8x32xbf16> to vector<8x32xbf16>
    %cst_199 = arith.constant dense<0.000000e+00> : vector<80x32xf32>
    %212 = tpu.matmul %209, %211, %cst_199 {dimension_numbers = #tpu.dot_dimension_numbers<[1], [0], [0], [1], [0, 0, 1, 1], [], []>} : vector<80x8xbf16>, vector<8x32xbf16>, vector<80x32xf32> -> vector<80x32xf32>
    %213 = arith.addf %207, %212 : vector<80x32xf32>
    %c26_200 = arith.constant 26 : index
    %c0_201 = arith.constant 0 : index
    %214 = vector.load %arg14[%c26_200, %c0_201] : memref<112x8xf32, #tpu.memory_space<vmem>>, vector<80x8xf32>
    %215 = arith.truncf %214 : vector<80x8xf32> to vector<80x8xbf16>
    %c1_202 = arith.constant 1 : index
    %c7_203 = arith.constant 7 : index
    %c0_204 = arith.constant 0 : index
    %c0_205 = arith.constant 0 : index
    %216 = vector.load %arg9[%c1_202, %c7_203, %c0_204, %c0_205] : memref<2x9x8x32xbf16, #tpu.memory_space<vmem>>, vector<1x1x8x32xbf16>
    %217 = vector.shape_cast %216 : vector<1x1x8x32xbf16> to vector<8x32xbf16>
    %cst_206 = arith.constant dense<0.000000e+00> : vector<80x32xf32>
    %218 = tpu.matmul %215, %217, %cst_206 {dimension_numbers = #tpu.dot_dimension_numbers<[1], [0], [0], [1], [0, 0, 1, 1], [], []>} : vector<80x8xbf16>, vector<8x32xbf16>, vector<80x32xf32> -> vector<80x32xf32>
    %219 = arith.addf %213, %218 : vector<80x32xf32>
    %c27_207 = arith.constant 27 : index
    %c0_208 = arith.constant 0 : index
    %220 = vector.load %arg14[%c27_207, %c0_208] : memref<112x8xf32, #tpu.memory_space<vmem>>, vector<80x8xf32>
    %221 = arith.truncf %220 : vector<80x8xf32> to vector<80x8xbf16>
    %c1_209 = arith.constant 1 : index
    %c8_210 = arith.constant 8 : index
    %c0_211 = arith.constant 0 : index
    %c0_212 = arith.constant 0 : index
    %222 = vector.load %arg9[%c1_209, %c8_210, %c0_211, %c0_212] : memref<2x9x8x32xbf16, #tpu.memory_space<vmem>>, vector<1x1x8x32xbf16>
    %223 = vector.shape_cast %222 : vector<1x1x8x32xbf16> to vector<8x32xbf16>
    %cst_213 = arith.constant dense<0.000000e+00> : vector<80x32xf32>
    %224 = tpu.matmul %221, %223, %cst_213 {dimension_numbers = #tpu.dot_dimension_numbers<[1], [0], [0], [1], [0, 0, 1, 1], [], []>} : vector<80x8xbf16>, vector<8x32xbf16>, vector<80x32xf32> -> vector<80x32xf32>
    %225 = arith.addf %219, %224 : vector<80x32xf32>
    %cst_214 = arith.constant 0.000000e+00 : f32
    %226 = vector.broadcast %cst_214 : f32 to vector<80x32xf32>
    %227 = arith.maximumf %225, %226 : vector<80x32xf32>
    %228 = arith.truncf %227 : vector<80x32xf32> to vector<80x32xbf16>
    %cst_215 = arith.constant dense<0.000000e+00> : vector<80x8xf32>
    %229 = tpu.matmul %228, %168, %cst_215 {dimension_numbers = #tpu.dot_dimension_numbers<[1], [0], [0], [1], [0, 0, 1, 1], [], []>} : vector<80x32xbf16>, vector<32x8xbf16>, vector<80x8xf32> -> vector<80x8xf32>
    %230 = vector.broadcast %170 : vector<1x8xf32> to vector<80x8xf32>
    %231 = arith.addf %229, %230 : vector<80x8xf32>
    %232 = arith.addf %161, %231 : vector<80x8xf32>
    %cst_216 = arith.constant 0.000000e+00 : f32
    %233 = vector.shape_cast %18 : vector<80x1xi1> to vector<80x1xi1>
    %234 = vector.broadcast %233 : vector<80x1xi1> to vector<80x8xi1>
    %235 = vector.broadcast %cst_216 : f32 to vector<80x8xf32>
    %236 = arith.select %234, %232, %235 : vector<80x8xi1>, vector<80x8xf32>
    %c0_217 = arith.constant 0 : index
    %c0_218 = arith.constant 0 : index
    %c0_219 = arith.constant 0 : index
    %237 = vector.load %arg13[%c0_217, %c0_218, %c0_219] : memref<1x80x8xf32, #tpu.memory_space<vmem>>, vector<1x80x8xf32>
    %238 = vector.shape_cast %237 : vector<1x80x8xf32> to vector<80x8xf32>
    %239 = vector.shape_cast %236 : vector<80x8xf32> to vector<1x80x8xf32>
    tpu.vector_store %arg13[%c0_217, %c0_218, %c0_219], %239 {strides = array<i32>} : memref<1x80x8xf32, #tpu.memory_space<vmem>>, vector<1x80x8xf32>,
    return
  }
  func.func @transform_0(%arg0: i32) -> (i32, i32, i32) {
    %c0_i32 = arith.constant 0 : i32
    %c0_i32_0 = arith.constant 0 : i32
    %c0_i32_1 = arith.constant 0 : i32
    return %arg0, %c0_i32, %c0_i32_0 : i32, i32, i32
  }
  func.func @transform_1(%arg0: i32) -> (i32, i32, i32) {
    %c0_i32 = arith.constant 0 : i32
    %c0_i32_0 = arith.constant 0 : i32
    %c0_i32_1 = arith.constant 0 : i32
    return %arg0, %c0_i32, %c0_i32_0 : i32, i32, i32
  }
  func.func @transform_2(%arg0: i32) -> (i32, i32, i32) {
    %c0_i32 = arith.constant 0 : i32
    %c0_i32_0 = arith.constant 0 : i32
    %c0_i32_1 = arith.constant 0 : i32
    return %arg0, %c0_i32, %c0_i32_0 : i32, i32, i32
  }
  func.func @transform_3(%arg0: i32) -> (i32, i32, i32) {
    %c0_i32 = arith.constant 0 : i32
    %c0_i32_0 = arith.constant 0 : i32
    %c0_i32_1 = arith.constant 0 : i32
    return %arg0, %c0_i32, %c0_i32_0 : i32, i32, i32
  }
  func.func @transform_4(%arg0: i32) -> (i32, i32, i32) {
    %c0_i32 = arith.constant 0 : i32
    %c0_i32_0 = arith.constant 0 : i32
    %c0_i32_1 = arith.constant 0 : i32
    %c0_i32_2 = arith.constant 0 : i32
    return %c0_i32, %c0_i32_0, %c0_i32_1 : i32, i32, i32
  }
  func.func @transform_5(%arg0: i32) -> (i32, i32) {
    %c0_i32 = arith.constant 0 : i32
    %c0_i32_0 = arith.constant 0 : i32
    %c0_i32_1 = arith.constant 0 : i32
    return %c0_i32, %c0_i32_0 : i32, i32
  }
  func.func @transform_6(%arg0: i32) -> (i32, i32) {
    %c0_i32 = arith.constant 0 : i32
    %c0_i32_0 = arith.constant 0 : i32
    %c0_i32_1 = arith.constant 0 : i32
    return %c0_i32, %c0_i32_0 : i32, i32
  }
  func.func @transform_7(%arg0: i32) -> (i32, i32) {
    %c0_i32 = arith.constant 0 : i32
    %c0_i32_0 = arith.constant 0 : i32
    %c0_i32_1 = arith.constant 0 : i32
    return %c0_i32, %c0_i32_0 : i32, i32
  }
  func.func @transform_8(%arg0: i32) -> (i32, i32, i32, i32) {
    %c0_i32 = arith.constant 0 : i32
    %c0_i32_0 = arith.constant 0 : i32
    %c0_i32_1 = arith.constant 0 : i32
    %c0_i32_2 = arith.constant 0 : i32
    %c0_i32_3 = arith.constant 0 : i32
    return %c0_i32, %c0_i32_0, %c0_i32_1, %c0_i32_2 : i32, i32, i32, i32
  }
  func.func @transform_9(%arg0: i32) -> (i32, i32, i32) {
    %c0_i32 = arith.constant 0 : i32
    %c0_i32_0 = arith.constant 0 : i32
    %c0_i32_1 = arith.constant 0 : i32
    %c0_i32_2 = arith.constant 0 : i32
    return %c0_i32, %c0_i32_0, %c0_i32_1 : i32, i32, i32
  }
  func.func @transform_10(%arg0: i32) -> (i32, i32, i32) {
    %c0_i32 = arith.constant 0 : i32
    %c0_i32_0 = arith.constant 0 : i32
    %c0_i32_1 = arith.constant 0 : i32
    %c0_i32_2 = arith.constant 0 : i32
    return %c0_i32, %c0_i32_0, %c0_i32_1 : i32, i32, i32
  }
  func.func @transform_11(%arg0: i32) -> (i32, i32, i32) {
    %c0_i32 = arith.constant 0 : i32
    %c0_i32_0 = arith.constant 0 : i32
    %c0_i32_1 = arith.constant 0 : i32
    %c0_i32_2 = arith.constant 0 : i32
    return %c0_i32, %c0_i32_0, %c0_i32_1 : i32, i32, i32
  }
  func.func @transform_12(%arg0: i32) -> (i32, i32, i32) {
    %c0_i32 = arith.constant 0 : i32
    %c0_i32_0 = arith.constant 0 : i32
    %c0_i32_1 = arith.constant 0 : i32
    return %arg0, %c0_i32, %c0_i32_0 : i32, i32, i32
  }
}

</mosaic_0001>

<bundles_post_ra>
// kernel: _group_forward.1
= control target key start
LH: loop header
LB: loop body
LE: loop exit
PB: predicated region body
PF: predicated region fallthrough
CT: control target
= control target key end

     0   :  { %s6542_s21 = smov 0   ;;  %s8032_s0 = inlined_call_operand.vmem [shape: bf16[2,100,4], index: 0, kind: input, shape index: {}]   ;;  %s8033_s1 = inlined_call_operand.vmem [shape: bf16[2,100,4], index: 1, kind: input, shape index: {}]   ;;  %s8034_s2 = inlined_call_operand.vmem [shape: bf16[2,100,4], index: 2, kind: input, shape index: {}]   ;;  %s8035_s3 = inlined_call_operand.vmem [shape: bf16[2,100,4], index: 3, kind: input, shape index: {}]   ;;  %s8036_s4 = inlined_call_operand.vmem [shape: bf16[9,4,16], index: 4, kind: input, shape index: {}]   ;;  %s8037_s5 = inlined_call_operand.vmem [shape: f32[1,16], index: 5, kind: input, shape index: {}]   ;;  %s8038_s6 = inlined_call_operand.vmem [shape: bf16[16,8], index: 6, kind: input, shape index: {}]   ;;  %s8039_s7 = inlined_call_operand.vmem [shape: f32[1,8], index: 7, kind: input, shape index: {}]   ;;  %s8040_s8 = inlined_call_operand.vmem [shape: bf16[2,9,8,32], index: 8, kind: input, shape index: {}]   ;;  %s8041_s9 = inlined_call_operand.vmem [shape: f32[2,1,32], index: 9, kind: input, shape index: {}]   ;;  %s8042_s10 = inlined_call_operand.vmem [shape: bf16[2,32,8], index: 10, kind: input, shape index: {}]   ;;  %s8043_s11 = inlined_call_operand.vmem [shape: f32[2,1,8], index: 11, kind: input, shape index: {}]   ;;  %s8044_s12 = inlined_call_operand.vmem [shape: f32[2,80,8], index: 12, kind: output, shape index: {}]  }
   0x1 LB: > { %s4790_s22 = sadd.s32 4294967295, %s6473_s21   ;;  %p4794_p0 = scmp.ge.s32.totalorder %s6473_s21, 1  ;;  %s6473_s21 = sphi %s6542_s21, %s22_s21  }
   0x2   : > { %p392_p1 = scmp.lt.s32.totalorder %s6473_s21, 3 }
   0x4   : > { %p393_p2 = pnand %p4794_p0, %p392_p1 }
   0x6   : > { %396 = sbr.rel (%p393_p2) target bundleno = 2187 (0x88b), region = 68 }
   0xd   : > { %vm712_vm0 = vcmask 1041408   ;;  %v4845_v0 = vld [vmem:[%s8036_s4 + $0x8] sm:$0x3]  ;;  %v670_v1 = vld [vmem:[%s8036_s4] sm:$0x3]  ;;  %v8049_v2 = vmov 0.0  }
   0xe   : > { %5309 = vmatprep.subr.bf16.mxu0 %v8049_v2  ;;  %5221 = vmatprep.subr.bf16.mxu1 %v8049_v2  ;;  %v1321_v3 = vsel %vm712_vm0, %v4845_v0, 0  ;;  %v714_v4 = vsel %vm712_vm0, %v670_v1, 0  ;;  %p449_p3 = scmp.lt.s32.totalorder %s4790_s22, 1  ;;  %vm6476_vm1 = vmmov 0   ;;  %vm696_vm2 = vcmask 31744  }
   0xf   : > { %5310 = vmatpush3.bf16.msra.mxu0 %v1321_v3  ;;  %5222 = vmatpush3.bf16.msra.mxu1 %v714_v4  ;;  %v4856_v5 = vld [vmem:[%s8036_s4 + $0xa] sm:$0x3]  ;;  %v4811_v6 = vld [vmem:[%s8036_s4 + $0x2] sm:$0x3]  ;;  %vm984_vm3 = vsmask.f32 7424 }
  0x10   : > { %5223 = vmatprep.mubr.msk.bf16.mxu1 %vm6476_vm1, %v8049_v2  ;;  %5311 = vmatprep.mubr.msk.bf16.mxu0 %vm6476_vm1, %v8049_v2  ;;  %s8183_s22 = smov (!%p449_p3, %s4790_s22), 1  ;;  %v1507_v9 = vsel %vm712_vm0, %v4856_v5, 0  ;;  %v858_v10 = vsel %vm712_vm0, %v4811_v6, 0  ;;  %v4868_v35 = vld [vmem:[%s8036_s4 + $0xc] sm:$0x3]  ;;  %vm1633_vm4 = vcmask 1046528  }
  0x11   : > { %5331 = vmatprep.subr.bf16.mxu0 %v8049_v2  ;;  %5243 = vmatprep.subr.bf16.mxu1 %v8049_v2  ;;  %s6385_s27 = smul.u32 52, %s8183_s22  ;;  %v4822_v36 = vld [vmem:[%s8036_s4 + $0x4] sm:$0x3]  ;;  %v1661_v46 = vsel %vm712_vm0, %v4868_v35, 0  ;;  %vm1905_vm5 = vsmask.f32 6400 }
  0x12   : > { %v1045_v47 = vsel %vm712_vm0, %v4822_v36, 0  ;;  %vm8045_vm6 = vcmask 1043456   ;;  %vm2087_vm7 = vcmask 130048   ;;  %vm2206_vm8 = vcmask 64512   ;;  %s6386_s15 = smul.u32 80, %s8183_s22 }
  0x13   : > { %s6575_s14 = scalar_lea.vmem %s8032_s0, %s6385_s27  ;;  %s6580_s17 = scalar_lea.vmem %s8035_s3, %s6385_s27  ;;  %2209 = vst.msk [vmem:[#allocation2 + $0x10] sm:$0xff] %vm2206_vm8, %v8049_v2  ;;  %2207 = vst.msk [vmem:[#allocation2] sm:$0xff] %vm2206_vm8, %v8049_v2 }
  0x14   : > { %v6417_v7 = vld [vmem:[%s6575_s14] sm:$0xff]   ;;  %v6419_v11 = vld [vmem:[%s6575_s14 + $0x8] sm:$0xff]   ;;  %s6602_s24 = scalar_lea.vmem %s8033_s1, %s6385_s27  ;;  %s6608_s28 = scalar_lea.vmem %s8034_s2, %s6385_s27  ;;  %v6421_v13 = vld [vmem:[%s6575_s14 + $0x10] sm:$0xff]   ;;  %2208 = vst.msk [vmem:[#allocation2 + $0x8] sm:$0xff] %vm2206_vm8, %v8049_v2 }
  0x15   : > { %v6418_v8 = vld [vmem:[%s6580_s17] sm:$0xff]   ;;  %5224 = vmatmul.mubr.msk.bf16.vlgmr.msra.gmra.mrb[0].mxu1 %vm696_vm2, %v6417_v7  ;;  %v6420_v12 = vld [vmem:[%s6580_s17 + $0x8] sm:$0xff]   ;;  %v6422_v14 = vld [vmem:[%s6580_s17 + $0x10] sm:$0xff]   ;;  %2210 = vst.msk [vmem:[#allocation2 + $0x18] sm:$0xff] %vm2206_vm8, %v8049_v2  ;;  %s7977_s18 = scalar_lea.vmem %s8044_s12, %s6386_s15 }
  0x16   : > { %5312 = vmatmul.mubr.msk.bf16.vlgmr.msra.gmra.mrb[0].mxu0 %vm696_vm2, %v6418_v8  ;;  %5227 = vmatprep.mubr.msk.bf16.mxu1 %vm6476_vm1, %v8049_v2  ;;  %v6423_v15 = vld [vmem:[%s6575_s14 + $0x18] sm:$0xff]   ;;  %v6428_v17 = vld [vmem:[%s6608_s28] sm:$0xff]   ;;  %v6429_v18 = vld [vmem:[%s6608_s28 + $0x8] sm:$0xff]   ;;  %2211 = vst.msk [vmem:[#allocation2 + $0x20] sm:$0xff] %vm2206_vm8, %v8049_v2 }
  0x17   : > { %5332 = vmatpush3.bf16.msra.mxu0 %v1507_v9  ;;  %5315 = vmatprep.mubr.msk.bf16.mxu0 %vm6476_vm1, %v8049_v2  ;;  %v6424_v16 = vld [vmem:[%s6580_s17 + $0x18] sm:$0xff]   ;;  %v1450_v19 = vshll.u32 %v6428_v17, 16  ;;  %v6425_v20 = vld [vmem:[%s6575_s14 + $0x20] sm:$0xff]   ;;  %v1448_v22 = vshrl.u32 %v6428_v17, 16  ;;  %v1455_v25 = vshll.u32 %v6429_v18, 16  ;;  %v6642_v28 = vld [vmem:[%s6608_s28 + $0x10] sm:$0xff]  }
  0x18   : > { %5244 = vmatpush3.bf16.msra.mxu1 %v858_v10  ;;  %5353 = vmatprep.subr.bf16.mxu0 %v8049_v2  ;;  %v6426_v21 = vld [vmem:[%s6580_s17 + $0x20] sm:$0xff]   ;;  %v6448_v27 = vld [vmem:[%s6575_s14 + $0x28] ss:$0 sps:$4 sm:$0x11]   ;;  %v6645_v29 = vld [vmem:[%s6608_s28 + $0x18] sm:$0xff]   ;;  %v1459_v39 = vshrl.u32 %v6429_v18, 16 }
  0x19   : > { %5265 = vmatprep.subr.bf16.mxu1 %v8049_v2  ;;  %v6446_v23 = vld [vmem:[%s6575_s14 + $0x20] sm:$0xff]   ;;  %v1452_v24 = vrot.slane %v1450_v19, 1  ;;  %v1457_v34 = vrot.slane %v1455_v25, 1  ;;  %v1025_v37 = vshll.u32 %v6448_v27, 16  ;;  %v1463_v41 = vshll.u32 %v6642_v28, 16  ;;  %v6430_v53 = vld [vmem:[%s6602_s24 + $0x8] sm:$0xff]  }
  0x1a   : > { %v1017_v26 = vshll.u32 %v6446_v23, 16  ;;  %v1021_v31 = vshrl.u32 %v6446_v23, 16  ;;  %v6427_v32 = vld [vmem:[%s6602_s24] sm:$0xff]   ;;  %v1471_v42 = vshll.u32 %v6645_v29, 16  ;;  %v1467_v48 = vshrl.u32 %v6642_v28, 16  ;;  %v6683_v55 = vld [vmem:[%s6575_s14 + $0xc] sm:$0xff]  }
  0x1b   : > { %v1453_v33 = vor.u32 %v1452_v24, %v1448_v22  ;;  %v1027_v40 = vrot.slane %v1025_v37, 1  ;;  %v6662_v43 = vld [vmem:[%s6575_s14 + $0x4] sm:$0xfe]   ;;  %v1461_v50 = vor.u32 %v1459_v39, %v1457_v34  ;;  %v1465_v51 = vrot.slane %v1463_v41, 1  ;;  %v6677_v52 = vld [vmem:[%s6602_s24 + $0x1c] sm:$0xff]   ;;  %v6686_v56 = vld [vmem:[%s6575_s14 + $0x14] sm:$0xff]  }
  0x1c   : > { %v6647_v30 = vrot.slane %v1017_v26, 1  ;;  %v1907_v49 = vshrl.u32 %v6662_v43, 16  ;;  %v1473_v54 = vrot.slane %v1471_v42, 1  ;;  %v6690_v57 = vld [vmem:[%s6575_s14 + $0x1c] sm:$0xff]   ;;  %v6458_v58 = vld [vmem:[%s6602_s24 + $0x24] sm:$0xff]   ;;  %v1792_v60 = vrot.slane %v6677_v52, 1 }
  0x1d   : > { %5228 = vmatmul.mubr.msk.bf16.gmra.mrb[4].mxu1 %vm696_vm2, %v6419_v11  ;;  %v1458_v44 = vsel %vm984_vm3, %v1453_v33, %v1457_v34  ;;  %v6460_v61 = vld [vmem:[%s6602_s24 + $0x2c] ss:$0 sps:$4 sm:$0x11]   ;;  %v1466_v62 = vsel %vm984_vm3, %v1461_v50, %v1465_v51  ;;  %v1794_v63 = vrot.slane %v6458_v58, 1  ;;  %v1910_v0 = vshll.u32 %v6662_v43, 16  ;;  %v6710_v10 = vld [vmem:[%s6575_s14 + $0x24] sm:$0xff]  }
  0x1e   : > { %5316 = vmatmul.mubr.msk.bf16.gmra.mrb[4].mxu0 %vm696_vm2, %v6420_v12  ;;  %5231 = vmatprep.mubr.msk.bf16.mxu1 %vm6476_vm1, %v8049_v2  ;;  %v1023_v38 = vor.u32 %v1021_v31, %v6647_v30  ;;  %v1909_v59 = vrot.slane %v1907_v49, 1  ;;  %v1796_v1 = vrot.slane %v6460_v61, 1  ;;  %v1915_v3 = vshrl.u32 %v6683_v55, 16  ;;  %v6432_v26 = vld [vmem:[%s6602_s24 + $0x10] sm:$0xff]   ;;  %v6438_v50 = vld [vmem:[%s6575_s14] sm:$0xff]   ;;  %2212 = vst.msk [vmem:[#allocation2 + $0x28] sm:$0xff] %vm2206_vm8, %v8049_v2 }
  0x1f   : > { %5319 = vmatprep.mubr.msk.bf16.mxu0 %vm6476_vm1, %v8049_v2  ;;  %v1918_v4 = vshll.u32 %v6683_v55, 16  ;;  %v1924_v5 = vshrl.u32 %v6686_v56, 16  ;;  %v6704_v6 = vsel %vm1633_vm4, %v1792_v60, %v1794_v63  ;;  %v1912_v7 = vrot.slane %v1910_v0, 2  ;;  %v6437_v42 = vld [vmem:[%s6608_s28 + $0x28] ss:$0 sps:$4 sm:$0x11]  }
  0x20   : > { %v6666_v45 = vsel %vm984_vm3, %v1023_v38, %v1027_v40  ;;  %v1927_v8 = vshll.u32 %v6686_v56, 16  ;;  %v1933_v9 = vshrl.u32 %v6690_v57, 16  ;;  %v6713_v11 = vsel %vm1633_vm4, %v1794_v63, %v1796_v1  ;;  %v6461_v40 = vld [vmem:[%s6575_s14 + $0x2c] ss:$0 sps:$4 sm:$0x33]   ;;  %v6436_v1 = vld [vmem:[%s6602_s24 + $0x20] sm:$0xff]  }
  0x21   : > { %v1917_v12 = vrot.slane %v1915_v3, 1  ;;  %v1936_v19 = vshll.u32 %v6690_v57, 16  ;;  %v1942_v22 = vshrl.u32 %v6710_v10, 16  ;;  %v1945_v23 = vshll.u32 %v6710_v10, 16  ;;  %v6459_v52 = vld [vmem:[%s6608_s28 + $0x20] sm:$0xff]   ;;  %2213 = vst.msk [vmem:[#allocation2 + $0x30] sm:$0xff] %vm2206_vm8, %v8049_v2 }
  0x22   : > { %v1929_v17 = vrot.slane %v1927_v8, 2  ;;  %v1935_v18 = vrot.slane %v1933_v9, 1  ;;  %v1475_v35 = vshrl.u32 %v6645_v29, 16  ;;  %v1487_v58 = vshll.u32 %v6437_v42, 16  ;;  %2214 = vst.msk [vmem:[#allocation2 + $0x38] sm:$0xff] %vm2206_vm8, %v8049_v2  ;;  %2215 = vst.msk [vmem:[#allocation2 + $0x40] sm:$0xff] %vm2206_vm8, %v8049_v2 }
  0x23   : > { %v1938_v25 = vrot.slane %v1936_v19, 2  ;;  %v1944_v28 = vrot.slane %v1942_v22, 1  ;;  %v1947_v31 = vrot.slane %v1945_v23, 2  ;;  %v986_v3 = vshrl.u32 %v6438_v50, 16  ;;  %v4834_v19 = vld [vmem:[%s8036_s4 + $0x6] sm:$0x3] }
  0x24   : > { %v1477_v29 = vor.u32 %v1475_v35, %v1473_v54  ;;  %v1489_v0 = vrot.slane %v1487_v58, 1  ;;  %v6444_v23 = vld [vmem:[%s6575_s14 + $0x18] sm:$0xff]   ;;  %v6449_v42 = vld [vmem:[%s6575_s14 + $0x2c] ss:$0 sps:$4 sm:$0x11]   ;;  %2216 = vst.msk [vmem:[#allocation2 + $0x48] sm:$0xff] %vm2206_vm8, %v8049_v2 }
  0x25   : > { %5232 = vmatmul.mubr.msk.bf16.gmra.mrb[8].mxu1 %vm696_vm2, %v6421_v13  ;;  %v1920_v13 = vrot.slane %v1918_v4, 2  ;;  %v1939_v33 = vor.u32 %v1938_v25, %v1935_v18  ;;  %v1948_v37 = vor.u32 %v1947_v31, %v1944_v28  ;;  %v1009_v28 = vshll.u32 %v6444_v23, 16  ;;  %2217 = vst.msk [vmem:[#allocation2 + $0x50] sm:$0xff] %vm2206_vm8, %v8049_v2  ;;  %2218 = vst.msk [vmem:[#allocation2 + $0x58] sm:$0xff] %vm2206_vm8, %v8049_v2 }
  0x26   : > { %5320 = vmatmul.mubr.msk.bf16.gmra.mrb[8].mxu0 %vm696_vm2, %v6422_v14  ;;  %5235 = vmatprep.mubr.msk.bf16.mxu1 %vm6476_vm1, %v8049_v2  ;;  %v1926_v14 = vrot.slane %v1924_v5, 1  ;;  %2219 = vst.msk [vmem:[#allocation2 + $0x60] sm:$0xff] %vm2206_vm8, %v8049_v2  ;;  %2220 = vst.msk [vmem:[#allocation2 + $0x68] sm:$0xff] %vm2206_vm8, %v8049_v2 }
  0x27   : > { %5323 = vmatprep.mubr.msk.bf16.mxu0 %vm6476_vm1, %v8049_v2  ;;  %v6738_v39 = vsel %vm1905_vm5, %v1939_v33, %v1948_v37 }
  0x28   : > { %v1930_v24 = vor.u32 %v1929_v17, %v1926_v14  ;;  %v1635_v14 = vrot.slane %v6683_v55, 1 }
  0x2a   : > { %v6734_v38 = vsel %vm1905_vm5, %v1930_v24, %v1939_v33  ;;  %v1011_v33 = vrot.slane %v1009_v28, 1 }
  0x2d   : > { %5236 = vmatmul.mubr.msk.bf16.gmra.mrb[12].mxu1 %vm696_vm2, %v6423_v15  ;;  %v6435_v15 = vld [vmem:[%s6608_s28 + $0x20] sm:$0xff]  }
  0x2e   : > { %5324 = vmatmul.mubr.msk.bf16.gmra.mrb[12].mxu0 %vm696_vm2, %v6424_v16  ;;  %5239 = vmatprep.mubr.msk.bf16.mxu1 %vm6476_vm1, %v8049_v2  ;;  %v1913_v16 = vor.u32 %v1912_v7, %v1909_v59  ;;  %v1479_v36 = vshll.u32 %v6435_v15, 16 }
  0x2f   : > { %5327 = vmatprep.mubr.msk.bf16.mxu0 %vm6476_vm1, %v8049_v2 }
  0x30   : > { %v1481_v41 = vrot.slane %v1479_v36, 1  ;;  %v1013_v36 = vshrl.u32 %v6444_v23, 16 }
  0x35   : > { %5240 = vmatmul.mubr.msk.bf16.gmra.mrb[16].mxu1 %vm696_vm2, %v6425_v20  ;;  %v1469_v20 = vor.u32 %v1467_v48, %v1465_v51  ;;  %v1482_v51 = vsel %vm984_vm3, %v1477_v29, %v1481_v41 }
  0x36   : > { %5328 = vmatmul.mubr.msk.bf16.gmra.mrb[16].mxu0 %vm696_vm2, %v6426_v21  ;;  %5245 = vmatprep.mubr.msk.bf16.mxu1 %vm6476_vm1, %v8049_v2  ;;  %v1921_v21 = vor.u32 %v1920_v13, %v1917_v12  ;;  %v6442_v12 = vld [vmem:[%s6575_s14 + $0x10] sm:$0xff]   ;;  %v1634_v13 = vrot.slane %v6662_v43, 1  ;;  %v1183_v43 = vsel %vm712_vm0, %v4834_v19, 0 }
  0x37   : > { %5333 = vmatprep.mubr.msk.bf16.mxu0 %vm6476_vm1, %v8049_v2  ;;  %v1474_v34 = vsel %vm984_vm3, %v1469_v20, %v1473_v54  ;;  %v6439_v54 = vld [vmem:[%s6575_s14 + $0x8] sm:$0xff]   ;;  %v1001_v18 = vshll.u32 %v6442_v12, 16 }
  0x38   : > { %v6726_v27 = vsel %vm1905_vm5, %v1913_v16, %v1921_v21  ;;  %v993_v5 = vshll.u32 %v6439_v54, 16  ;;  %v997_v17 = vshrl.u32 %v6439_v54, 16  ;;  %v1636_v20 = vsel %vm1633_vm4, %v1634_v13, %v1635_v14 }
  0x39   : > { %v1003_v22 = vrot.slane %v1001_v18, 1  ;;  %v4810_v18 = vld [vmem:[%s8037_s5] ss:$0 sm:$0xff] }
  0x3a   : > { %v995_v9 = vrot.slane %v993_v5, 1 }
  0x3c   : > { %v999_v55 = vor.u32 %v997_v17, %v995_v9 }
  0x3d   : > { %5246 = vmatmul.mubr.msk.bf16.vlgmr.msra.gmra.mrb[0].mxu1 %vm696_vm2, %v6427_v32  ;;  %v6729_v32 = vsel %vm1905_vm5, %v1921_v21, %v1930_v24  ;;  %v1637_v24 = vrot.slane %v6686_v56, 1 }
  0x3e   : > { %5334 = vmatmul.mubr.msk.bf16.vlgmr.msra.gmra.mrb[0].mxu0 %vm696_vm2, %v1458_v44  ;;  %5249 = vmatprep.mubr.msk.bf16.mxu1 %vm6476_vm1, %v8049_v2  ;;  %v1951_v44 = vshrl.u32 %v6461_v40, 16  ;;  %v1004_v25 = vsel %vm984_vm3, %v999_v55, %v1003_v22 }
  0x3f   : > { %5354 = vmatpush3.bf16.msra.mxu0 %v1661_v46  ;;  %5337 = vmatprep.mubr.msk.bf16.mxu0 %vm6476_vm1, %v8049_v2  ;;  %v1954_v46 = vshll.u32 %v6461_v40, 16  ;;  %v1638_v31 = vsel %vm1633_vm4, %v1635_v14, %v1637_v24  ;;  %v1015_v40 = vor.u32 %v1013_v36, %v1011_v33 }
  0x40   : > { %5266 = vmatpush3.bf16.msra.mxu1 %v1045_v47  ;;  %5375 = vmatprep.subr.bf16.mxu0 %v8049_v2  ;;  %v6434_v47 = vld [vmem:[%s6602_s24 + $0x18] sm:$0xff]   ;;  %v1953_v48 = vrot.slane %v1951_v44, 1  ;;  %v1643_v44 = vrot.slane %v6449_v42, 1 }
  0x41   : > { %5287 = vmatprep.subr.bf16.mxu1 %v8049_v2  ;;  %v1956_v49 = vrot.slane %v1954_v46, 2  ;;  %v1020_v29 = vsel %vm984_vm3, %v1015_v40, %v6647_v30  ;;  %v6451_v46 = vld [vmem:[%s6602_s24 + $0x4] sm:$0xfe]   ;;  %v6452_v30 = vld [vmem:[%s6602_s24 + $0xc] sm:$0xff]  }
  0x43   : > { %v1957_v59 = vor.u32 %v1956_v49, %v1953_v48  ;;  %v1788_v48 = vrot.slane %v6452_v30, 1  ;;  %v6450_v49 = vld [vmem:[%s6608_s28] sm:$0xff]  }
  0x45   : > { %5250 = vmatmul.mubr.msk.bf16.gmra.mrb[4].mxu1 %vm696_vm2, %v6430_v53  ;;  %v1483_v53 = vshrl.u32 %v6435_v15, 16  ;;  %v6752_v61 = vsel %vm1905_vm5, %v1948_v37, %v1957_v59  ;;  %v4880_v15 = vld [vmem:[%s8036_s4 + $0xe] sm:$0x3] }
  0x46   : > { %5338 = vmatmul.mubr.msk.bf16.gmra.mrb[4].mxu0 %vm696_vm2, %v1466_v62  ;;  %5253 = vmatprep.mubr.msk.bf16.mxu1 %vm6476_vm1, %v8049_v2  ;;  %v988_v62 = vshll.u32 %v6438_v50, 16  ;;  %v1814_v21 = vsel %vm712_vm0, %v4880_v15, 0  ;;  %v4892_v50 = vld [vmem:[%s8036_s4 + $0x10] sm:$0x3]  ;;  %v6453_v59 = vld [vmem:[%s6608_s28 + $0x8] sm:$0xff]  }
  0x47   : > { %5341 = vmatprep.mubr.msk.bf16.mxu0 %vm6476_vm1, %v8049_v2  ;;  %v1485_v63 = vor.u32 %v1483_v53, %v1481_v41  ;;  %v1975_v53 = vsel %vm712_vm0, %v4892_v50, 0 }
  0x48   : > { %v990_v4 = vrot.slane %v988_v62, 1  ;;  %v6455_v62 = vld [vmem:[%s6608_s28 + $0x10] sm:$0xff]  }
  0x49   : > { %v1490_v7 = vsel %vm984_vm3, %v1485_v63, %v1489_v0  ;;  %v6457_v0 = vld [vmem:[%s6608_s28 + $0x18] sm:$0xff]  }
  0x4a   : > { %v991_v8 = vor.u32 %v990_v4, %v986_v3 }
  0x4c   : > { %v996_v16 = vsel %vm984_vm3, %v991_v8, %v995_v9 }
  0x4d   : > { %5254 = vmatmul.mubr.msk.bf16.gmra.mrb[8].mxu1 %vm696_vm2, %v6432_v26  ;;  %v1005_v26 = vshrl.u32 %v6442_v12, 16 }
  0x4e   : > { %5342 = vmatmul.mubr.msk.bf16.gmra.mrb[8].mxu0 %vm696_vm2, %v1474_v34  ;;  %5257 = vmatprep.mubr.msk.bf16.mxu1 %vm6476_vm1, %v8049_v2  ;;  %v1639_v34 = vrot.slane %v6690_v57, 1  ;;  %v1641_v57 = vrot.slane %v6710_v10, 1 }
  0x4f   : > { %5345 = vmatprep.mubr.msk.bf16.mxu0 %vm6476_vm1, %v8049_v2  ;;  %v1007_v56 = vor.u32 %v1005_v26, %v1003_v22 }
  0x50   : > { %v1640_v37 = vsel %vm1633_vm4, %v1637_v24, %v1639_v34  ;;  %v1642_v41 = vsel %vm1633_vm4, %v1639_v34, %v1641_v57  ;;  %v1644_v10 = vsel %vm1633_vm4, %v1641_v57, %v1643_v44 }
  0x51   : > { %v1012_v35 = vsel %vm984_vm3, %v1007_v56, %v1011_v33 }
  0x55   : > { %5258 = vmatmul.mubr.msk.bf16.gmra.mrb[12].mxu1 %vm696_vm2, %v6434_v47  ;;  %v1787_v47 = vrot.slane %v6451_v46, 1 }
  0x56   : > { %5346 = vmatmul.mubr.msk.bf16.gmra.mrb[12].mxu0 %vm696_vm2, %v1482_v51  ;;  %5261 = vmatprep.mubr.msk.bf16.mxu1 %vm6476_vm1, %v8049_v2 }
  0x57   : > { %5349 = vmatprep.mubr.msk.bf16.mxu0 %vm6476_vm1, %v8049_v2  ;;  %v1789_v51 = vsel %vm1633_vm4, %v1787_v47, %v1788_v48 }
  0x5d   : > { %5262 = vmatmul.mubr.msk.bf16.gmra.mrb[16].mxu1 %vm696_vm2, %v6436_v1 }
  0x5e   : > { %5350 = vmatmul.mubr.msk.bf16.gmra.mrb[16].mxu0 %vm696_vm2, %v1490_v7  ;;  %5267 = vmatprep.mubr.msk.bf16.mxu1 %vm6476_vm1, %v8049_v2 }
  0x5f   : > { %5355 = vmatprep.mubr.msk.bf16.mxu0 %vm6476_vm1, %v8049_v2 }
  0x65   : > { %5268 = vmatmul.mubr.msk.bf16.vlgmr.msra.gmra.mrb[0].mxu1 %vm696_vm2, %v996_v16 }
  0x66   : > { %5356 = vmatmul.mubr.msk.bf16.vlgmr.msra.gmra.mrb[0].mxu0 %vm696_vm2, %v1636_v20  ;;  %5271 = vmatprep.mubr.msk.bf16.mxu1 %vm6476_vm1, %v8049_v2 }
  0x67   : > { %5376 = vmatpush3.bf16.msra.mxu0 %v1814_v21  ;;  %5359 = vmatprep.mubr.msk.bf16.mxu0 %vm6476_vm1, %v8049_v2 }
  0x68   : > { %5288 = vmatpush3.bf16.msra.mxu1 %v1183_v43  ;;  %5397 = vmatprep.subr.bf16.mxu0 %v8049_v2 }
  0x69   : > { %5419 = vmatprep.subr.bf16.mxu1 %v8049_v2 }
  0x6d   : > { %5272 = vmatmul.mubr.msk.bf16.gmra.mrb[4].mxu1 %vm696_vm2, %v1004_v25  ;;  %v2252_v25 = vld [vmem:[%s8040_s8] sm:$0xf] }
  0x6e   : > { %5360 = vmatmul.mubr.msk.bf16.gmra.mrb[4].mxu0 %vm696_vm2, %v1638_v31  ;;  %5275 = vmatprep.mubr.msk.bf16.mxu1 %vm6476_vm1, %v8049_v2  ;;  %v2270_v33 = vsel %vm8045_vm6, %v2252_v25, 0 }
  0x6f   : > { %5363 = vmatprep.mubr.msk.bf16.mxu0 %vm6476_vm1, %v8049_v2 }
  0x75   : > { %5276 = vmatmul.mubr.msk.bf16.gmra.mrb[8].mxu1 %vm696_vm2, %v1012_v35 }
  0x76   : > { %5364 = vmatmul.mubr.msk.bf16.gmra.mrb[8].mxu0 %vm696_vm2, %v1640_v37  ;;  %5279 = vmatprep.mubr.msk.bf16.mxu1 %vm6476_vm1, %v8049_v2 }
  0x77   : > { %5367 = vmatprep.mubr.msk.bf16.mxu0 %vm6476_vm1, %v8049_v2 }
  0x7d   : > { %5280 = vmatmul.mubr.msk.bf16.gmra.mrb[12].mxu1 %vm696_vm2, %v1020_v29 }
  0x7e   : > { %5368 = vmatmul.mubr.msk.bf16.gmra.mrb[12].mxu0 %vm696_vm2, %v1642_v41  ;;  %5283 = vmatprep.mubr.msk.bf16.mxu1 %vm6476_vm1, %v8049_v2 }
  0x7f   : > { %5371 = vmatprep.mubr.msk.bf16.mxu0 %vm6476_vm1, %v8049_v2 }
  0x85   : > { %5284 = vmatmul.mubr.msk.bf16.gmra.mrb[16].mxu1 %vm696_vm2, %v6666_v45  ;;  %v6454_v45 = vld [vmem:[%s6602_s24 + $0x14] sm:$0xff]  }
  0x86   : > { %5372 = vmatmul.mubr.msk.bf16.gmra.mrb[16].mxu0 %vm696_vm2, %v1644_v10  ;;  %5289 = vmatprep.mubr.msk.bf16.mxu1 %vm6476_vm1, %v8049_v2  ;;  %v1790_v58 = vrot.slane %v6454_v45, 1 }
  0x87   : > { %5377 = vmatprep.mubr.msk.bf16.mxu0 %vm6476_vm1, %v8049_v2 }
  0x88   : > { %v1791_v54 = vsel %vm1633_vm4, %v1788_v48, %v1790_v58  ;;  %v1793_v63 = vsel %vm1633_vm4, %v1790_v58, %v1792_v60  ;;  %v6462_v60 = vld [vmem:[%s8038_s6] sm:$0xff]  }
  0x8d   : > { %5290 = vmatmul.mubr.msk.bf16.vlgmr.msra.gmra.mrb[0].mxu1 %vm696_vm2, %v6450_v49 }
  0x8e   : > { %5378 = vmatmul.mubr.msk.bf16.vlgmr.msra.gmra.mrb[0].mxu0 %vm696_vm2, %v1789_v51  ;;  %5293 = vmatprep.mubr.msk.bf16.mxu1 %vm6476_vm1, %v8049_v2 }
  0x8f   : > { %5398 = vmatpush3.bf16.msra.mxu0 %v1975_v53  ;;  %5381 = vmatprep.mubr.msk.bf16.mxu0 %vm6476_vm1, %v8049_v2 }
  0x90   : > { %5639 = vmatprep.subr.bf16.mxu0 %v8049_v2  ;;  %5420 = vmatpush3.bf16.msra.mxu1 %v6462_v60 }
  0x91   : > { %5441 = vmatprep.subr.bf16.mxu1 %v8049_v2 }
  0x95   : > { %5294 = vmatmul.mubr.msk.bf16.gmra.mrb[4].mxu1 %vm696_vm2, %v6453_v59 }
  0x96   : > { %5382 = vmatmul.mubr.msk.bf16.gmra.mrb[4].mxu0 %vm696_vm2, %v1791_v54  ;;  %5297 = vmatprep.mubr.msk.bf16.mxu1 %vm6476_vm1, %v8049_v2 }
  0x97   : > { %5385 = vmatprep.mubr.msk.bf16.mxu0 %vm6476_vm1, %v8049_v2 }
  0x9d   : > { %5298 = vmatmul.mubr.msk.bf16.gmra.mrb[8].mxu1 %vm696_vm2, %v6455_v62 }
  0x9e   : > { %5386 = vmatmul.mubr.msk.bf16.gmra.mrb[8].mxu0 %vm696_vm2, %v1793_v63  ;;  %5301 = vmatprep.mubr.msk.bf16.mxu1 %vm6476_vm1, %v8049_v2 }
  0x9f   : > { %5389 = vmatprep.mubr.msk.bf16.mxu0 %vm6476_vm1, %v8049_v2 }
  0xa5   : > { %5302 = vmatmul.mubr.msk.bf16.gmra.mrb[12].mxu1 %vm696_vm2, %v6457_v0 }
  0xa6   : > { %5390 = vmatmul.mubr.msk.bf16.gmra.mrb[12].mxu0 %vm696_vm2, %v6704_v6  ;;  %5305 = vmatprep.mubr.msk.bf16.mxu1 %vm6476_vm1, %v8049_v2 }
  0xa7   : > { %5393 = vmatprep.mubr.msk.bf16.mxu0 %vm6476_vm1, %v8049_v2 }
  0xad   : > { %5306 = vmatmul.mubr.msk.bf16.gmra.mrb[16].mxu1 %vm696_vm2, %v6459_v52 }
  0xae   : > { %5394 = vmatmul.mubr.msk.bf16.gmra.mrb[16].mxu0 %vm696_vm2, %v6713_v11  ;;  %5421 = vmatprep.mubr.msk.bf16.mxu1 %vm6476_vm1, %v8049_v2 }
  0xaf   : > { %5399 = vmatprep.mubr.msk.bf16.mxu0 %vm6476_vm1, %v8049_v2 }
  0xb6   : > { %5400 = vmatmul.mubr.msk.bf16.vlgmr.msra.gmra.mrb[0].mxu0 %vm696_vm2, %v6726_v27 }
  0xb7   : > { %5403 = vmatprep.mubr.msk.bf16.mxu0 %vm6476_vm1, %v8049_v2 }
  0xbe   : > { %5404 = vmatmul.mubr.msk.bf16.gmra.mrb[4].mxu0 %vm696_vm2, %v6729_v32 }
  0xbf   : > { %5407 = vmatprep.mubr.msk.bf16.mxu0 %vm6476_vm1, %v8049_v2 }
  0xc6   : > { %5408 = vmatmul.mubr.msk.bf16.gmra.mrb[8].mxu0 %vm696_vm2, %v6734_v38 }
  0xc7   : > { %5411 = vmatprep.mubr.msk.bf16.mxu0 %vm6476_vm1, %v8049_v2 }
  0xce   : > { %5412 = vmatmul.mubr.msk.bf16.gmra.mrb[12].mxu0 %vm696_vm2, %v6738_v39 }
  0xcf   : > { %5415 = vmatprep.mubr.msk.bf16.mxu0 %vm6476_vm1, %v8049_v2 }
  0xd6   : > { %5416 = vmatmul.mubr.msk.bf16.gmra.mrb[16].mxu0 %vm696_vm2, %v6752_v61 }
  0xd7   : > { %5643 = vmatprep.mubr.msk.bf16.mxu0 %vm6476_vm1, %v8049_v2 }
 0x160   : > { %v1219_v6 = vpop.f32.mrb[0].mxu1 }
 0x161   : > { %v5291_v11 = vpop.f32.mrb[1].mxu1  ;;  %v5885_v19 = vadd.f32 %v4810_v18, %v1219_v6 }
 0x162   : > { %v1222_v27 = vpop.f32.mrb[2].mxu1 }
 0x163   : > { %v5292_v32 = vpop.f32.mrb[3].mxu1  ;;  %v5887_v21 = vadd.f32 %v4810_v18, %v1222_v27 }
 0x168   : > { %v1227_v38 = vpop.f32.mrb[4].mxu1 }
 0x169   : > { %v5295_v39 = vpop.f32.mrb[5].mxu1  ;;  %v5889_v31 = vadd.f32 %v4810_v18, %v1227_v38 }
 0x16a   : > { %v1230_v1 = vpop.f32.mrb[6].mxu1 }
 0x16b   : > { %v5296_v3 = vpop.f32.mrb[7].mxu1  ;;  %v5891_v35 = vadd.f32 %v4810_v18, %v1230_v1 }
 0x170   : > { %v1235_v4 = vpop.f32.mrb[8].mxu1 }
 0x171   : > { %v5299_v61 = vpop.f32.mrb[9].mxu1  ;;  %v5893_v44 = vadd.f32 %v4810_v18, %v1235_v4 }
 0x172   : > { %v1238_v5 = vpop.f32.mrb[10].mxu1 }
 0x173   : > { %v5300_v7 = vpop.f32.mrb[11].mxu1  ;;  %v5895_v30 = vadd.f32 %v4810_v18, %v1238_v5 }
 0x178   : > { %v1243_v8 = vpop.f32.mrb[12].mxu1 }
 0x179   : > { %v5303_v9 = vpop.f32.mrb[13].mxu1  ;;  %v5897_v58 = vadd.f32 %v4810_v18, %v1243_v8 }
 0x17a   : > { %v1246_v12 = vpop.f32.mrb[14].mxu1 }
 0x17b   : > { %v5304_v13 = vpop.f32.mrb[15].mxu1  ;;  %v5899_v62 = vadd.f32 %v4810_v18, %v1246_v12 }
 0x17c   : > { %v6952_v13 = vld [vmem:[#allocation2 + $0x5] sm:$0xff] }
 0x180   : > { %v1251_v14 = vpop.f32.mrb[16].mxu1 }
 0x181   : > { %v5307_v15 = vpop.f32.mrb[17].mxu1  ;;  %v5901_v32 = vadd.f32 %v4810_v18, %v1251_v14  ;;  %v6954_v14 = vld [vmem:[#allocation2 + $0x6] sm:$0xff] }
 0x182   : > { %v1254_v16 = vpop.f32.mrb[18].mxu1  ;;  %v6956_v15 = vld [vmem:[#allocation2 + $0x7] sm:$0xff] }
 0x183   : > { %v5308_v17 = vpop.f32.mrb[19].mxu1  ;;  %v5903_v1 = vadd.f32 %v4810_v18, %v1254_v16  ;;  %3447 = vst.msk [vmem:[#allocation2] sm:$0xff] %vm2206_vm8, %v8049_v2  ;;  %v6960_v16 = vld [vmem:[#allocation2 + $0x61] sm:$0xff] }
 0x184   : > { %v6962_v17 = vld [vmem:[#allocation2 + $0x62] sm:$0xff] }
 0x185   : > { %v6964_v18 = vld [vmem:[#allocation2 + $0x63] sm:$0xff] }
 0x186   : > { %8078 = vst [vmem:[#allocation3_spill] sm:$0xff] %v6964_v18  ;;  %3460 = vst.msk [vmem:[#allocation2 + $0x68] sm:$0xff] %vm2206_vm8, %v8049_v2 }
 0x189   : > { %v2011_v20 = vpop.f32.mrb[0].mxu0 }
 0x18a   : > { %v5886_v43 = vadd.f32 %v5885_v19, %v2011_v20  ;;  %v5401_v55 = vpop.f32.mrb[1].mxu0  ;;  %v475_v19 = vlaneseq }
 0x18b   : > { %v2014_v22 = vpop.f32.mrb[2].mxu0 }
 0x18c   : > { %v5888_v23 = vadd.f32 %v5887_v21, %v2014_v22  ;;  %v5402_v24 = vpop.f32.mrb[3].mxu0  ;;  %v2060_v26 = vmax.f32 %v5886_v43, 0.0  ;;  %v6968_v20 = vshrl.u32 %v475_v19, 7 }
 0x18e   : > { %v2061_v28 = vmax.f32 %v5888_v23, 0.0  ;;  %v477_v21 = vadd.s32 8, %v6968_v20  ;;  %v6972_v43 = vmul.u32.u64.low 3435973837, %v6968_v20  ;;  %v6973_v55 = vmul.u32.u64.high 3435973837, %v6968_v20, %v6972_v43 }
 0x18f   : > { %v478_v24 = vadd.s32 16, %v6968_v20 }
 0x190   : > { %v2070_v56 = vpack.c.bf16 %v2061_v28, %v2060_v26  ;;  %v6975_v22 = vmul.u32.u64.low 3435973837, %v477_v21  ;;  %v6976_v23 = vmul.u32.u64.high 3435973837, %v477_v21, %v6975_v22  ;;  %v492_v25 = vshrl.u32 %v6973_v55, 3 }
 0x191   : > { %v2019_v34 = vpop.f32.mrb[4].mxu0  ;;  %v6980_v26 = vmul.u32.u64.low 3435973837, %v478_v24  ;;  %v6981_v28 = vmul.u32.u64.high 3435973837, %v478_v24, %v6980_v26 }
 0x192   : > { %v5890_v36 = vadd.f32 %v5889_v31, %v2019_v34  ;;  %v5405_v37 = vpop.f32.mrb[5].mxu0  ;;  %5422 = vmatmul.mubr.msk.bf16.vlgmr.msra.gmra.mrb[20].mxu1 %vm2087_vm7, %v2070_v56  ;;  %v479_v31 = vadd.s32 24, %v6968_v20  ;;  %v503_v56 = vshrl.u32 %v6976_v23, 3 }
 0x193   : > { %v2022_v40 = vpop.f32.mrb[6].mxu0  ;;  %5425 = vmatprep.mubr.msk.bf16.mxu1 %vm6476_vm1, %v8049_v2  ;;  %5442 = vmatpush3.bf16.msra.mxu1 %v2270_v33  ;;  %v493_v33 = vmul.u32 10, %v492_v25  ;;  %v481_v37 = vadd.s32 40, %v6968_v20 }
 0x194   : > { %v5892_v57 = vadd.f32 %v5891_v35, %v2022_v40  ;;  %v5406_v29 = vpop.f32.mrb[7].mxu0  ;;  %5463 = vmatprep.subr.bf16.mxu1 %v8049_v2  ;;  %v2062_v41 = vmax.f32 %v5890_v36, 0.0  ;;  %v6985_v34 = vmul.u32.u64.low 3435973837, %v479_v31  ;;  %v6986_v35 = vmul.u32.u64.high 3435973837, %v479_v31, %v6985_v34 }
 0x195   : > { %v480_v36 = vadd.s32 32, %v6968_v20  ;;  %v504_v40 = vmul.u32 10, %v503_v56  ;;  %v514_v29 = vshrl.u32 %v6981_v28, 3 }
 0x196   : > { %v2063_v42 = vmax.f32 %v5892_v57, 0.0  ;;  %v494_v57 = vsub.s32 %v6968_v20, %v493_v33 }
 0x198   : > { %v2071_v10 = vpack.c.bf16 %v2063_v42, %v2062_v41  ;;  %v6992_v41 = vmul.u32.u64.low 3435973837, %v480_v36  ;;  %v6993_v42 = vmul.u32.u64.high 3435973837, %v480_v36, %v6992_v41  ;;  %vm596_vm9 = vcmp.ne.s32.totalorder %v494_v57, 0 }
 0x199   : > { %v2027_v46 = vpop.f32.mrb[8].mxu0  ;;  %vm606_vm10 = vcmp.lt.s32.totalorder %v494_v57, 0 }
 0x19a   : > { %v5894_v47 = vadd.f32 %v5893_v44, %v2027_v46  ;;  %v5409_v48 = vpop.f32.mrb[9].mxu0  ;;  %5426 = vmatmul.mubr.msk.bf16.gmra.mrb[24].mxu1 %vm2087_vm7, %v2071_v10  ;;  %v6995_v44 = vmul.u32.u64.low 3435973837, %v481_v37  ;;  %v6996_v10 = vmul.u32.u64.high 3435973837, %v481_v37, %v6995_v44  ;;  %v505_v46 = vsub.s32 %v477_v21, %v504_v40  ;;  %vm7002_vm13 = vmand %vm606_vm10, %vm596_vm9 }
 0x19b   : > { %v2030_v49 = vpop.f32.mrb[10].mxu0  ;;  %5429 = vmatprep.mubr.msk.bf16.mxu1 %vm6476_vm1, %v8049_v2  ;;  %v7000_v48 = vadd.s32 48, %v6968_v20  ;;  %v8095_v40 = vmov 0 }
 0x19c   : > { %v5896_v50 = vadd.f32 %v5895_v30, %v2030_v49  ;;  %v5410_v51 = vpop.f32.mrb[11].mxu0  ;;  %v2064_v45 = vmax.f32 %v5894_v47, 0.0  ;;  %v515_v30 = vmul.u32 10, %v514_v29  ;;  %v525_v47 = vshrl.u32 %v6986_v35, 3 }
 0x19d   : > { %vm597_vm11 = vcmp.ne.s32.totalorder %v505_v46, 0  ;;  %vm607_vm12 = vcmp.lt.s32.totalorder %v505_v46, 0  ;;  %v626_v49 = vadd.s32 10, %v494_v57  ;;  %v627_v51 = vadd.s32 10, %v505_v46 }
 0x19e   : > { %v2065_v53 = vmax.f32 %v5896_v50, 0.0  ;;  %vm7009_vm14 = vmand %vm607_vm12, %vm597_vm11 }
 0x1a0   : > { %v2072_v59 = vpack.c.bf16 %v2065_v53, %v2064_v45  ;;  %v516_v45 = vsub.s32 %v478_v24, %v515_v30  ;;  %v526_v53 = vmul.u32 10, %v525_v47  ;;  %v8100_v30 = vmov 0 }
 0x1a1   : > { %v2035_v54 = vpop.f32.mrb[12].mxu0 }
 0x1a2   : > { %v5898_v63 = vadd.f32 %v5897_v58, %v2035_v54  ;;  %v5413_v0 = vpop.f32.mrb[13].mxu0  ;;  %5430 = vmatmul.mubr.msk.bf16.gmra.mrb[28].mxu1 %vm2087_vm7, %v2072_v59  ;;  %v7007_v58 = vadd.s32 56, %v6968_v20  ;;  %v536_v54 = vshrl.u32 %v6993_v42, 3  ;;  %vm598_vm15 = vcmp.ne.s32.totalorder %v516_v45, 0  ;;  %v4912_v42 = vld [vmem:[%s8040_s8 + $0x4] sm:$0xf] }
 0x1a3   : > { %v2038_v52 = vpop.f32.mrb[14].mxu0  ;;  %5433 = vmatprep.mubr.msk.bf16.mxu1 %vm6476_vm1, %v8049_v2  ;;  %vm608_vm0 = vcmp.lt.s32.totalorder %v516_v45, 0 }
 0x1a4   : > { %v5900_v60 = vadd.f32 %v5899_v62, %v2038_v52  ;;  %v5414_v6 = vpop.f32.mrb[15].mxu0  ;;  %v2066_v11 = vmax.f32 %v5898_v63, 0.0  ;;  %v547_v62 = vshrl.u32 %v6996_v10, 3  ;;  %v636_v52 = vsel %vm7002_vm13, %v626_v49, %v494_v57  ;;  %vm7044_vm4 = vmand %vm608_vm0, %vm598_vm15 }
 0x1a5   : > { %v7016_v63 = vmul.u32.u64.low 3435973837, %v7000_v48  ;;  %v7017_v0 = vmul.u32.u64.high 3435973837, %v7000_v48, %v7016_v63  ;;  %v527_v6 = vsub.s32 %v479_v31, %v526_v53  ;;  %vm7035_vm2 = vcmp.lt.s32.totalorder %v636_v52, 8 }
 0x1a6   : > { %v2067_v27 = vmax.f32 %v5900_v60, 0.0  ;;  %v637_v60 = vsel %vm7009_vm14, %v627_v51, %v505_v46 }
 0x1a7   : > { %vm7039_vm3 = vcmp.lt.s32.totalorder %v637_v60, 8  ;;  %vm599_vm5 = vcmp.ne.s32.totalorder %v527_v6, 0  ;;  %v629_v21 = vadd.s32 10, %v527_v6  ;;  %v558_v22 = vshrl.u32 %v7017_v0, 3 }
 0x1a8   : > { %v2073_v38 = vpack.c.bf16 %v2067_v27, %v2066_v11  ;;  %v7024_v11 = vmul.u32.u64.low 3435973837, %v7007_v58  ;;  %v7025_v27 = vmul.u32.u64.high 3435973837, %v7007_v58, %v7024_v11  ;;  %v2394_v60 = vsel %vm8045_vm6, %v4912_v42, 0 }
 0x1a9   : > { %v2043_v39 = vpop.f32.mrb[16].mxu0 }
 0x1aa   : > { %v5902_v3 = vadd.f32 %v5901_v32, %v2043_v39  ;;  %v5417_v4 = vpop.f32.mrb[17].mxu0  ;;  %5434 = vmatmul.mubr.msk.bf16.gmra.mrb[32].mxu1 %vm2087_vm7, %v2073_v38  ;;  %v7030_v32 = vld [vmem:[%s8039_s7] ss:$0 sm:$0xff]  ;;  %v537_v38 = vmul.u32 10, %v536_v54  ;;  %v548_v39 = vmul.u32 10, %v547_v62  ;;  %v569_v33 = vshrl.u32 %v7025_v27, 3 }
 0x1ab   : > { %v2046_v61 = vpop.f32.mrb[18].mxu0  ;;  %5437 = vmatprep.mubr.msk.bf16.mxu1 %vm6476_vm1, %v8049_v2 }
 0x1ac   : > { %v5904_v5 = vadd.f32 %v5903_v1, %v2046_v61  ;;  %v5418_v7 = vpop.f32.mrb[19].mxu0  ;;  %v2068_v8 = vmax.f32 %v5902_v3, 0.0  ;;  %v7033_v1 = vadd.s32 64, %v6968_v20  ;;  %v8083_v3 = vmov 0 }
 0x1ad   : > { %v8084_v3 = vsel %vm7035_vm2, 4294967295, %v8083_v3  ;;  %v8086_v61 = vmov 0  ;;  %v7051_v43 = vsub.s32 %v480_v36, %v537_v38  ;;  %v7053_v55 = vsub.s32 %v481_v37, %v548_v39 }
 0x1ae   : > { %v2069_v9 = vmax.f32 %v5904_v5, 0.0  ;;  %8085 = vst [vmem:[#allocation4_spill] sm:$0xff] %v8084_v3  ;;  %v8087_v61 = vsel %vm7039_vm3, 4294967295, %v8086_v61  ;;  %v628_v5 = vadd.s32 10, %v516_v45  ;;  %v559_v37 = vmul.u32 10, %v558_v22 }
 0x1af   : > { %8088 = vst [vmem:[#allocation5_spill] sm:$0xff] %v8087_v61  ;;  %v7062_v26 = vmul.u32.u64.low 3435973837, %v7033_v1  ;;  %v7063_v28 = vmul.u32.u64.high 3435973837, %v7033_v1, %v7062_v26  ;;  %vm600_vm10 = vcmp.ne.s32.totalorder %v7051_v43, 0  ;;  %vm610_vm11 = vcmp.lt.s32.totalorder %v7051_v43, 0 }
 0x1b0   : > { %v2074_v12 = vpack.c.bf16 %v2069_v9, %v2068_v8  ;;  %vm601_vm12 = vcmp.ne.s32.totalorder %v7053_v55, 0  ;;  %vm611_vm13 = vcmp.lt.s32.totalorder %v7053_v55, 0  ;;  %vm7099_vm15 = vmand %vm610_vm11, %vm600_vm10  ;;  %v630_v10 = vadd.s32 10, %v7051_v43 }
 0x1b1   : > { %v570_v46 = vmul.u32 10, %v569_v33  ;;  %v631_v50 = vadd.s32 10, %v7053_v55  ;;  %v7121_v54 = vsub.s32 %v7000_v48, %v559_v37  ;;  %v580_v62 = vshrl.u32 %v7063_v28, 3 }
 0x1b2   : > { %5438 = vmatmul.mubr.msk.bf16.gmra.mrb[36].mxu1 %vm2087_vm7, %v2074_v12  ;;  %vm609_vm7 = vcmp.lt.s32.totalorder %v527_v6, 0  ;;  %v7049_v12 = vadd.s32 72, %v6968_v20  ;;  %v638_v20 = vsel %vm7044_vm4, %v628_v5, %v516_v45  ;;  %vm7110_vm4 = vmand %vm611_vm13, %vm601_vm12 }
 0x1b3   : > { %5443 = vmatprep.mubr.msk.bf16.mxu1 %vm6476_vm1, %v8049_v2  ;;  %vm7070_vm9 = vmand %vm609_vm7, %vm599_vm5  ;;  %vm7091_vm14 = vcmp.lt.s32.totalorder %v638_v20, 8  ;;  %v7142_v27 = vsub.s32 %v7007_v58, %v570_v46  ;;  %vm602_vm5 = vcmp.ne.s32.totalorder %v7121_v54, 0  ;;  %vm612_vm7 = vcmp.lt.s32.totalorder %v7121_v54, 0 }
 0x1b4   : > { %v7080_v34 = vmul.u32.u64.low 3435973837, %v7049_v12  ;;  %v7081_v35 = vmul.u32.u64.high 3435973837, %v7049_v12, %v7080_v34  ;;  %v639_v36 = vsel %vm7070_vm9, %v629_v21, %v527_v6  ;;  %v8096_v40 = vsel %vm7091_vm14, 4294967295, %v8095_v40  ;;  %vm7186_vm13 = vmand %vm612_vm7, %vm602_vm5 }
 0x1b5   : > { %8097 = vst [vmem:[#allocation8_spill] sm:$0xff] %v8096_v40  ;;  %vm7104_vm0 = vcmp.lt.s32.totalorder %v639_v36, 8  ;;  %v640_v6 = vsel %vm7099_vm15, %v630_v10, %v7051_v43  ;;  %v632_v43 = vadd.s32 10, %v7121_v54  ;;  %vm603_vm10 = vcmp.ne.s32.totalorder %v7142_v27, 0 }
 0x1b6   : > { %v8101_v30 = vsel %vm7104_vm0, 4294967295, %v8100_v30  ;;  %v591_v38 = vshrl.u32 %v7081_v35, 3  ;;  %vm7169_vm9 = vcmp.lt.s32.totalorder %v640_v6, 8  ;;  %vm613_vm11 = vcmp.lt.s32.totalorder %v7142_v27, 0 }
 0x1b7   : > { %8102 = vst [vmem:[#allocation9_spill] sm:$0xff] %v8101_v30  ;;  %v633_v35 = vadd.s32 10, %v7142_v27  ;;  %vm7201_vm15 = vmand %vm613_vm11, %vm603_vm10  ;;  %v642_v42 = vsel %vm7186_vm13, %v632_v43, %v7121_v54  ;;  %v8119_v6 = vmov 0 }
 0x1b8   : > { %vm7251_vm7 = vcmp.lt.s32.totalorder %v642_v42, 8 }
 0x1b9   : > { %v8120_v6 = vsel %vm7251_vm7, 4294967295, %v8119_v6 }
 0x1ba   : > { %8121 = vst [vmem:[#allocation16_spill] sm:$0xff] %v8120_v6 }
 0x265   : > { %v2137_v4 = vpop.f32.mrb[20].mxu1 }
 0x266   : > { %v2138_v7 = vadd.f32 %v7030_v32, %v2137_v4  ;;  %v5423_v8 = vpop.f32.mrb[21].mxu1  ;;  %v641_v4 = vsel %vm7110_vm4, %v631_v50, %v7053_v55 }
 0x267   : > { %v2140_v19 = vpop.f32.mrb[22].mxu1  ;;  %v581_v8 = vmul.u32 10, %v580_v62  ;;  %vm7178_vm12 = vcmp.lt.s32.totalorder %v641_v4, 8 }
 0x268   : > { %v7058_v23 = vsel %vm7035_vm2, %v2138_v7, 0.0  ;;  %v2141_v24 = vadd.f32 %v7030_v32, %v2140_v19  ;;  %v5424_v25 = vpop.f32.mrb[23].mxu1  ;;  %v8107_v19 = vmov 0 }
 0x269   : > { %8091 = vst [vmem:[#allocation6_spill] sm:$0xff] %v7058_v23  ;;  %2221 = vst.msk [vmem:[#allocation2 + $0x10] sm:$0xff] %vm2206_vm8, %v7058_v23  ;;  %v8108_v19 = vsel %vm7169_vm9, 4294967295, %v8107_v19  ;;  %v8110_v25 = vmov 0  ;;  %v7197_v36 = vsub.s32 %v7033_v1, %v581_v8  ;;  %v8122_v8 = vmov 0 }
 0x26a   : > { %v7076_v56 = vsel %vm7039_vm3, %v2141_v24, 0.0  ;;  %8109 = vst [vmem:[#allocation12_spill] sm:$0xff] %v8108_v19  ;;  %v592_v24 = vmul.u32 10, %v591_v38  ;;  %v8111_v25 = vsel %vm7178_vm12, 4294967295, %v8110_v25  ;;  %v4918_v23 = vld [vmem:[%s8040_s8 + $0x8] sm:$0xf] }
 0x26b   : > { %8094 = vst [vmem:[#allocation7_spill] sm:$0xff] %v7076_v56  ;;  %2222 = vst.msk [vmem:[#allocation2 + $0x18] sm:$0xff] %vm2206_vm8, %v7076_v56  ;;  %vm604_vm4 = vcmp.ne.s32.totalorder %v7197_v36, 0  ;;  %vm614_vm5 = vcmp.lt.s32.totalorder %v7197_v36, 0  ;;  %v634_v4 = vadd.s32 10, %v7197_v36 }
 0x26c   : > { %8112 = vst [vmem:[#allocation13_spill] sm:$0xff] %v8111_v25  ;;  %v7215_v44 = vsub.s32 %v7049_v12, %v592_v24 }
 0x26d   : > { %v2145_v57 = vpop.f32.mrb[24].mxu1 }
 0x26e   : > { %v2146_v29 = vadd.f32 %v7030_v32, %v2145_v57  ;;  %v5427_v41 = vpop.f32.mrb[25].mxu1  ;;  %vm605_vm10 = vcmp.ne.s32.totalorder %v7215_v44, 0  ;;  %vm615_vm11 = vcmp.lt.s32.totalorder %v7215_v44, 0  ;;  %v635_v28 = vadd.s32 10, %v7215_v44 }
 0x26f   : > { %v2148_v47 = vpop.f32.mrb[26].mxu1  ;;  %vm7283_vm6 = vmand %vm615_vm11, %vm605_vm10 }
 0x270   : > { %v7117_v51 = vsel %vm7091_vm14, %v2146_v29, 0.0  ;;  %v2149_v45 = vadd.f32 %v7030_v32, %v2148_v47  ;;  %v5428_v53 = vpop.f32.mrb[27].mxu1  ;;  %v2238_v59 = vld [vmem:[#allocation2 + $0xd] sm:$0xff] }
 0x271   : > { %8105 = vst [vmem:[#allocation10_spill] sm:$0xff] %v7117_v51  ;;  %v7124_v63 = vld [vmem:[#allocation2 + $0xe] sm:$0xff]  ;;  %2223 = vst.msk [vmem:[#allocation2 + $0x20] sm:$0xff] %vm2206_vm8, %v7117_v51  ;;  %v2247_v52 = vpack.c.bf16 %v2238_v59, %v6952_v13  ;;  %v643_v59 = vsel %vm7201_vm15, %v633_v35, %v7142_v27 }
 0x272   : > { %v7126_v0 = vld [vmem:[#allocation2 + $0xf] sm:$0xff]  ;;  %v7136_v48 = vsel %vm7104_vm0, %v2149_v45, 0.0  ;;  %v7155_v5 = vld [vmem:[#allocation2 + $0x17] sm:$0xff]  ;;  %vm7263_vm13 = vcmp.lt.s32.totalorder %v643_v59, 8  ;;  %vm7271_vm15 = vmand %vm614_vm5, %vm604_vm4  ;;  %v2371_v18 = vpack.c.bf16 %v7124_v63, %v6954_v14  ;;  %vm8142_vm5 = vcmask 1043456  }
 0x273   : > { %3448 = vst.msk [vmem:[#allocation2 + $0x8] sm:$0xff] %vm2206_vm8, %v8049_v2  ;;  %8106 = vst [vmem:[#allocation11_spill] sm:$0xff] %v7136_v48  ;;  %v2239_v11 = vld [vmem:[#allocation2 + $0x15] sm:$0xff]  ;;  %5444 = vmatmul.mubr.msk.bf16.vlgmr.msra.gmra.mrb[40].mxu1 %vm2206_vm8, %v2247_v52  ;;  %v8123_v8 = vsel %vm7263_vm13, 4294967295, %v8122_v8 }
 0x274   : > { %v7145_v13 = vld [vmem:[#allocation2 + $0x16] sm:$0xff]  ;;  %2224 = vst.msk [vmem:[#allocation2 + $0x28] sm:$0xff] %vm2206_vm8, %v7136_v48  ;;  %5464 = vmatpush3.bf16.msra.mxu1 %v2394_v60  ;;  %5447 = vmatprep.mubr.msk.bf16.mxu1 %vm6476_vm1, %v8049_v2  ;;  %8124 = vst [vmem:[#allocation17_spill] sm:$0xff] %v8123_v8 }
 0x275   : > { %v7147_v39 = vld [vmem:[#allocation2 + $0x10] sm:$0xff]  ;;  %v7157_v7 = vld [vmem:[#allocation2 + $0x18] sm:$0xff]  ;;  %v2153_v21 = vpop.f32.mrb[28].mxu1  ;;  %5485 = vmatprep.subr.bf16.mxu1 %v8049_v2  ;;  %vm8143_vm10 = vmmov %vm8142_vm5 }
 0x276   : > { %v7159_v58 = vld [vmem:[#allocation2 + $0x11] sm:$0xff]  ;;  %v2154_v55 = vadd.f32 %v7030_v32, %v2153_v21  ;;  %v5431_v22 = vpop.f32.mrb[29].mxu1  ;;  %vm8144_vm11 = vmmov %vm8142_vm5 }
 0x277   : > { %3449 = vst.msk [vmem:[#allocation2 + $0x10] sm:$0xff] %vm2206_vm8, %v8049_v2  ;;  %v2156_v26 = vpop.f32.mrb[30].mxu1 }
 0x278   : > { %v7192_v20 = vsel %vm7169_vm9, %v2154_v55, 0.0  ;;  %v2157_v31 = vadd.f32 %v7030_v32, %v2156_v26  ;;  %v5432_v33 = vpop.f32.mrb[31].mxu1  ;;  %v2240_v34 = vld [vmem:[#allocation2 + $0x1d] sm:$0xff] }
 0x279   : > { %8115 = vst [vmem:[#allocation14_spill] sm:$0xff] %v7192_v20  ;;  %2225 = vst.msk [vmem:[#allocation2 + $0x30] sm:$0xff] %vm2206_vm8, %v7192_v20  ;;  %v2248_v37 = vpack.c.bf16 %v2240_v34, %v2239_v11  ;;  %v7205_v29 = vld [vmem:[#allocation2 + $0x20] sm:$0xff]  ;;  %v8134_v33 = vmov 0 }
 0x27a   : > { %v7209_v41 = vsel %vm7178_vm12, %v2157_v31, 0.0  ;;  %v7217_v10 = vld [vmem:[#allocation2 + $0x1e] sm:$0xff] }
 0x27b   : > { %8118 = vst [vmem:[#allocation15_spill] sm:$0xff] %v7209_v41  ;;  %v2241_v1 = vld [vmem:[#allocation2 + $0x25] sm:$0xff]  ;;  %v7223_v49 = vld [vmem:[#allocation2 + $0x19] sm:$0xff]  ;;  %2226 = vst.msk [vmem:[#allocation2 + $0x38] sm:$0xff] %vm2206_vm8, %v7209_v41  ;;  %5448 = vmatmul.mubr.msk.bf16.gmra.mrb[44].mxu1 %vm2206_vm8, %v2248_v37  ;;  %v644_v37 = vsel %vm7271_vm15, %v634_v4, %v7197_v36  ;;  %v645_v4 = vsel %vm7283_vm6, %v635_v28, %v7215_v44 }
 0x27c   : > { %v7219_v46 = vld [vmem:[#allocation2 + $0x26] sm:$0xff]  ;;  %v7225_v50 = vld [vmem:[#allocation2 + $0x1a] sm:$0xff]  ;;  %5451 = vmatprep.mubr.msk.bf16.mxu1 %vm6476_vm1, %v8049_v2  ;;  %vm7328_vm4 = vcmp.lt.s32.totalorder %v644_v37, 8  ;;  %vm7337_vm6 = vcmp.lt.s32.totalorder %v645_v4, 8  ;;  %vm8145_vm15 = vmmov %vm8142_vm5 }
 0x27d   : > { %v7221_v47 = vld [vmem:[#allocation2 + $0x1f] sm:$0xff]  ;;  %v7230_v45 = vld [vmem:[#allocation2 + $0x27] sm:$0xff]  ;;  %v2161_v11 = vpop.f32.mrb[32].mxu1  ;;  %v8135_v33 = vsel %vm7337_vm6, 4294967295, %v8134_v33 }
 0x27e   : > { %v7232_v53 = vld [vmem:[#allocation2 + $0x28] sm:$0xff]  ;;  %v7247_v52 = vld [vmem:[#allocation2 + $0x1b] sm:$0xff]  ;;  %v2162_v27 = vadd.f32 %v7030_v32, %v2161_v11  ;;  %v5435_v38 = vpop.f32.mrb[33].mxu1  ;;  %8136 = vst [vmem:[#allocation21_spill] sm:$0xff] %v8135_v33 }
 0x27f   : > { %v7234_v12 = vld [vmem:[#allocation2 + $0x21] sm:$0xff]  ;;  %3450 = vst.msk [vmem:[#allocation2 + $0x18] sm:$0xff] %vm2206_vm8, %v8049_v2  ;;  %v2164_v21 = vpop.f32.mrb[34].mxu1 }
 0x280   : > { %v7245_v62 = vld [vmem:[#allocation2 + $0x22] sm:$0xff]  ;;  %v7277_v55 = vsel %vm7251_vm7, %v2162_v27, 0.0  ;;  %v2165_v22 = vadd.f32 %v7030_v32, %v2164_v21  ;;  %v5436_v24 = vpop.f32.mrb[35].mxu1  ;;  %v2242_v26 = vld [vmem:[#allocation2 + $0x2d] sm:$0xff] }
 0x281   : > { %v7249_v60 = vld [vmem:[#allocation2 + $0x23] sm:$0xff]  ;;  %8127 = vst [vmem:[#allocation18_spill] sm:$0xff] %v7277_v55  ;;  %2227 = vst.msk [vmem:[#allocation2 + $0x40] sm:$0xff] %vm2206_vm8, %v7277_v55  ;;  %v2249_v31 = vpack.c.bf16 %v2242_v26, %v2241_v1  ;;  %v7287_v34 = vld [vmem:[#allocation2 + $0x30] sm:$0xff] }
 0x282   : > { %3451 = vst.msk [vmem:[#allocation2 + $0x20] sm:$0xff] %vm2206_vm8, %v8049_v2  ;;  %v7291_v35 = vsel %vm7263_vm13, %v2165_v22, 0.0  ;;  %v2243_v57 = vld [vmem:[#allocation2 + $0x35] sm:$0xff]  ;;  %v7302_v11 = vld [vmem:[#allocation2 + $0x29] sm:$0xff] }
 0x283   : > { %8130 = vst [vmem:[#allocation19_spill] sm:$0xff] %v7291_v35  ;;  %v7296_v42 = vld [vmem:[#allocation2 + $0x2e] sm:$0xff]  ;;  %v7298_v59 = vld [vmem:[#allocation2 + $0x36] sm:$0xff]  ;;  %2228 = vst.msk [vmem:[#allocation2 + $0x48] sm:$0xff] %vm2206_vm8, %v7291_v35  ;;  %5452 = vmatmul.mubr.msk.bf16.gmra.mrb[48].mxu1 %vm2206_vm8, %v2249_v31  ;;  %v8131_v31 = vmov 0 }
 0x284   : > { %v7300_v1 = vld [vmem:[#allocation2 + $0x2f] sm:$0xff]  ;;  %v7309_v38 = vld [vmem:[#allocation2 + $0x37] sm:$0xff]  ;;  %5455 = vmatprep.mubr.msk.bf16.mxu1 %vm6476_vm1, %v8049_v2  ;;  %v8132_v31 = vsel %vm7328_vm4, 4294967295, %v8131_v31  ;;  %v2373_v14 = vpack.c.bf16 %v7296_v42, %v7219_v46 }
 0x285   : > { %v7304_v27 = vld [vmem:[#allocation2 + $0x2a] sm:$0xff]  ;;  %v7311_v21 = vld [vmem:[#allocation2 + $0x38] sm:$0xff]  ;;  %8133 = vst [vmem:[#allocation20_spill] sm:$0xff] %v8132_v31  ;;  %v2169_v54 = vpop.f32.mrb[36].mxu1 }
 0x286   : > { %v7313_v36 = vld [vmem:[#allocation2 + $0x31] sm:$0xff]  ;;  %v2170_v44 = vadd.f32 %v7030_v32, %v2169_v54  ;;  %v5439_v28 = vpop.f32.mrb[37].mxu1 }
 0x287   : > { %v7322_v22 = vld [vmem:[#allocation2 + $0x32] sm:$0xff]  ;;  %v2172_v43 = vpop.f32.mrb[38].mxu1 }
 0x288   : > { %v7324_v24 = vld [vmem:[#allocation2 + $0x2b] sm:$0xff]  ;;  %v7326_v26 = vld [vmem:[#allocation2 + $0x33] sm:$0xff]  ;;  %v7343_v37 = vsel %vm7328_vm4, %v2170_v44, 0.0  ;;  %v2173_v9 = vadd.f32 %v7030_v32, %v2172_v43  ;;  %v5440_v8 = vpop.f32.mrb[39].mxu1  ;;  %v2244_v35 = vld [vmem:[#allocation2 + $0x3d] sm:$0xff] }
 0x289   : > { %3452 = vst.msk [vmem:[#allocation2 + $0x28] sm:$0xff] %vm2206_vm8, %v8049_v2  ;;  %3453 = vst.msk [vmem:[#allocation2 + $0x30] sm:$0xff] %vm2206_vm8, %v8049_v2  ;;  %v2250_v2 = vpack.c.bf16 %v2244_v35, %v2243_v57  ;;  %v7348_v6 = vld [vmem:[#allocation2 + $0x40] sm:$0xff]  ;;  %v8139_v57 = vmov 0.0   ;;  %v4930_v46 = vld [vmem:[%s8040_s8 + $0x10] sm:$0xf] }
 0x28a   : > { %8137 = vst [vmem:[#allocation22_spill] sm:$0xff] %v7343_v37  ;;  %2229 = vst.msk [vmem:[#allocation2 + $0x50] sm:$0xff] %vm2206_vm8, %v7343_v37  ;;  %v7352_v54 = vsel %vm7337_vm6, %v2173_v9, 0.0  ;;  %v2245_v4 = vld [vmem:[#allocation2 + $0x45] sm:$0xff]  ;;  %v7356_v44 = vld [vmem:[#allocation2 + $0x39] sm:$0xff]  ;;  %v2748_v42 = vsel %vm8144_vm11, %v4930_v46, 0 }
 0x28b   : > { %8138 = vst [vmem:[#allocation23_spill] sm:$0xff] %v7352_v54  ;;  %v2368_v28 = vld [vmem:[#allocation2 + $0x3e] sm:$0xff]  ;;  %v2369_v55 = vld [vmem:[#allocation2 + $0x46] sm:$0xff]  ;;  %2230 = vst.msk [vmem:[#allocation2 + $0x58] sm:$0xff] %vm2206_vm8, %v7352_v54  ;;  %5456 = vmatmul.mubr.msk.bf16.gmra.mrb[52].mxu1 %vm2206_vm8, %v2250_v2 }
 0x28c   : > { %v7354_v31 = vld [vmem:[#allocation2 + $0x3f] sm:$0xff]  ;;  %v7363_v8 = vld [vmem:[#allocation2 + $0x47] sm:$0xff]  ;;  %5459 = vmatprep.mubr.msk.bf16.mxu1 %vm6476_vm1, %v8139_v57  ;;  %vm8152_vm11 = vmmov %vm8142_vm5 }
 0x28d   : > { %v7358_v32 = vld [vmem:[#allocation2 + $0x3a] sm:$0xff]  ;;  %v7365_v35 = vld [vmem:[#allocation2 + $0x48] sm:$0xff] }
 0x28e   : > { %v7367_v9 = vld [vmem:[#allocation2 + $0x41] sm:$0xff] }
 0x28f   : > { %v7373_v33 = vld [vmem:[#allocation2 + $0x42] sm:$0xff] }
 0x290   : > { %v7375_v37 = vld [vmem:[#allocation2 + $0x3b] sm:$0xff]  ;;  %v7377_v25 = vld [vmem:[#allocation2 + $0x43] sm:$0xff] }
 0x291   : > { %3454 = vst.msk [vmem:[#allocation2 + $0x38] sm:$0xff] %vm2206_vm8, %v8139_v57  ;;  %3455 = vst.msk [vmem:[#allocation2 + $0x40] sm:$0xff] %vm2206_vm8, %v8139_v57  ;;  %v2246_v2 = vld [vmem:[#allocation2 + $0x4d] sm:$0xff] }
 0x292   : > { %v2251_v54 = vpack.c.bf16 %v2246_v2, %v2245_v4  ;;  %v2370_v41 = vld [vmem:[#allocation2 + $0x4e] sm:$0xff]  ;;  %v7387_v43 = vld [vmem:[#allocation2 + $0x58] sm:$0xff] }
 0x293   : > { %v7383_v19 = vld [vmem:[#allocation2 + $0x4f] sm:$0xff]  ;;  %v7392_v48 = vld [vmem:[#allocation2 + $0x57] sm:$0xff] }
 0x294   : > { %v7385_v20 = vld [vmem:[#allocation2 + $0x50] sm:$0xff]  ;;  %5460 = vmatmul.mubr.msk.bf16.gmra.mrb[56].mxu1 %vm2206_vm8, %v2251_v54  ;;  %v7408_v3 = vld [vmem:[#allocation2 + $0x59] sm:$0xff] }
 0x295   : > { %v7389_v30 = vld [vmem:[#allocation2 + $0x49] sm:$0xff]  ;;  %v7396_v51 = vld [vmem:[#allocation2 + $0x51] sm:$0xff]  ;;  %5465 = vmatprep.mubr.msk.bf16.mxu1 %vm6476_vm1, %v8139_v57  ;;  %v7410_v54 = vld [vmem:[#allocation2 + $0x5a] sm:$0xff] }
 0x296   : > { %v7398_v61 = vld [vmem:[#allocation2 + $0x4a] sm:$0xff]  ;;  %v7402_v4 = vld [vmem:[#allocation2 + $0x52] sm:$0xff]  ;;  %v7416_v40 = vld [vmem:[#allocation2 + $0x5b] sm:$0xff] }
 0x297   : > { %v7404_v2 = vld [vmem:[#allocation2 + $0x4b] sm:$0xff]  ;;  %v7406_v56 = vld [vmem:[#allocation2 + $0x53] sm:$0xff]  ;;  %8141 = vst [vmem:[#allocation25_spill] sm:$0xff] %v7416_v40  ;;  %3459 = vst.msk [vmem:[#allocation2 + $0x60] sm:$0xff] %vm2206_vm8, %v8139_v57  ;;  %v2372_v40 = vpack.c.bf16 %v7217_v10, %v7145_v13  ;;  %v2490_v13 = vpack.c.bf16 %v7221_v47, %v7155_v5  ;;  %v2493_v10 = vpack.c.bf16 %v7383_v19, %v7363_v8 }
 0x298   : > { %8140 = vst [vmem:[#allocation24_spill] sm:$0xff] %v7406_v56  ;;  %3456 = vst.msk [vmem:[#allocation2 + $0x48] sm:$0xff] %vm2206_vm8, %v8139_v57  ;;  %v2512_v56 = vsel %vm8142_vm5, %v4918_v23, 0  ;;  %v2375_v23 = vpack.c.bf16 %v2370_v41, %v2369_v55  ;;  %v2492_v41 = vpack.c.bf16 %v7354_v31, %v7309_v38  ;;  %v2607_v55 = vpack.c.bf16 %v7155_v5, %v7126_v0 }
 0x299   : > { %3457 = vst.msk [vmem:[#allocation2 + $0x50] sm:$0xff] %vm2206_vm8, %v8139_v57  ;;  %3458 = vst.msk [vmem:[#allocation2 + $0x58] sm:$0xff] %vm2206_vm8, %v8139_v57  ;;  %v2610_v5 = vpack.c.bf16 %v7363_v8, %v7354_v31  ;;  %v6464_v31 = vld [vmem:[%s8042_s10 + $0x8] sm:$0xff]   ;;  %v4948_v8 = vld [vmem:[%s8040_s8 + $0x1c] sm:$0xf] }
 0x29c   : > { %5466 = vmatmul.mubr.msk.bf16.vlgmr.msra.gmra.mrb[40].mxu1 %vm2206_vm8, %v2371_v18  ;;  %v2374_v18 = vpack.c.bf16 %v2368_v28, %v7298_v59  ;;  %v2608_v59 = vpack.c.bf16 %v7230_v45, %v7221_v47  ;;  %v2611_v47 = vpack.c.bf16 %v7392_v48, %v7383_v19  ;;  %v8147_v48 = vpack.c.bf16 %v7232_v53, %v7205_v29  ;;  %v4942_v29 = vld [vmem:[%s8040_s8 + $0x18] sm:$0xf] }
 0x29d   : > { %5486 = vmatpush3.bf16.msra.mxu1 %v2512_v56  ;;  %5469 = vmatprep.mubr.msk.bf16.mxu1 %vm6476_vm1, %v8139_v57  ;;  %v4924_v56 = vld [vmem:[%s8040_s8 + $0xc] sm:$0xf]  ;;  %v8148_v19 = vpack.c.bf16 %v7311_v21, %v7287_v34  ;;  %v2843_v53 = vpack.c.bf16 %v7223_v49, %v7159_v58  ;;  %v2845_v58 = vpack.c.bf16 %v7356_v44, %v7313_v36  ;;  %v6463_v21 = vld [vmem:[%s8042_s10] sm:$0xff]  }
 0x29e   : > { %5507 = vmatprep.subr.bf16.mxu1 %v8139_v57  ;;  %v2630_v63 = vsel %vm8143_vm10, %v4924_v56, 0  ;;  %v2846_v34 = vpack.c.bf16 %v7389_v30, %v7367_v9  ;;  %5640 = vmatpush3.bf16.msra.mxu0 %v6463_v21  ;;  %v2847_v28 = vpack.c.bf16 %v7408_v3, %v7396_v51  ;;  %vm8151_vm10 = vmmov %vm8142_vm5 }
 0x29f   : > { %5641 = vmatprep.subr.bf16.mxu0 %v8139_v57 }
 0x2a2   : > { %5642 = vmatpush3.bf16.msra.mxu0 %v6464_v31 }
 0x2a3   : > { %5663 = vmatprep.subr.bf16.mxu0 %v8139_v57 }
 0x2a4   : > { %5470 = vmatmul.mubr.msk.bf16.gmra.mrb[44].mxu1 %vm2206_vm8, %v2372_v40  ;;  %v2489_v40 = vpack.c.bf16 %v7126_v0, %v6956_v15  ;;  %v2491_v15 = vpack.c.bf16 %v7300_v1, %v7230_v45  ;;  %v2609_v0 = vpack.c.bf16 %v7309_v38, %v7300_v1  ;;  %v4936_v45 = vld [vmem:[%s8040_s8 + $0x14] sm:$0xf]  ;;  %v8146_v38 = vpack.c.bf16 %v7157_v7, %v7147_v39 }
 0x2a5   : > { %5473 = vmatprep.mubr.msk.bf16.mxu1 %vm6476_vm1, %v8139_v57  ;;  %v2866_v1 = vsel %vm8145_vm15, %v4936_v45, 0  ;;  %v8149_v39 = vpack.c.bf16 %v7365_v35, %v7348_v6  ;;  %v8150_v7 = vpack.c.bf16 %v7387_v43, %v7385_v20  ;;  %v2984_v6 = vsel %vm8142_vm5, %v4942_v29, 0 }
 0x2a6   : > { %v2844_v20 = vpack.c.bf16 %v7302_v11, %v7234_v12  ;;  %v2961_v35 = vpack.c.bf16 %v7234_v12, %v7223_v49  ;;  %v3102_v43 = vsel %vm8151_vm10, %v4948_v8, 0  ;;  %v2963_v49 = vpack.c.bf16 %v7367_v9, %v7356_v44  ;;  %vm8163_vm10 = vmmov %vm8142_vm5 }
 0x2a7   : > { %v2964_v12 = vpack.c.bf16 %v7396_v51, %v7389_v30  ;;  %v3079_v30 = vpack.c.bf16 %v7245_v62, %v7225_v50  ;;  %v3082_v50 = vpack.c.bf16 %v7402_v4, %v7398_v61  ;;  %v3083_v62 = vpack.c.bf16 %v6962_v17, %v7410_v54 }
 0x2a8   : > { %v3198_v61 = vpack.c.bf16 %v7326_v26, %v7324_v24  ;;  %v3199_v17 = vpack.c.bf16 %v7377_v25, %v7375_v37  ;;  %v8155_v24 = vld [vmem:[#allocation3_spill] sm:$0xff]  ;;  %v4911_v25 = vld [vmem:[%s8041_s9] ss:$0 sm:$0xff]  ;;  %vm3338_vm15 = vcmask 261120  }
 0x2ac   : > { %5474 = vmatmul.mubr.msk.bf16.gmra.mrb[48].mxu1 %vm2206_vm8, %v2373_v14  ;;  %v2962_v14 = vpack.c.bf16 %v7313_v36, %v7302_v11  ;;  %v2965_v11 = vpack.c.bf16 %v6960_v16, %v7408_v3  ;;  %v4954_v36 = vld [vmem:[%s8040_s8 + $0x20] sm:$0xf]  ;;  %v3080_v16 = vpack.c.bf16 %v7322_v22, %v7304_v27  ;;  %v3081_v3 = vpack.c.bf16 %v7373_v33, %v7358_v32 }
 0x2ad   : > { %5477 = vmatprep.mubr.msk.bf16.mxu1 %vm6476_vm1, %v8139_v57  ;;  %v3220_v51 = vsel %vm8152_vm11, %v4954_v36, 0  ;;  %v3197_v27 = vpack.c.bf16 %v7249_v60, %v7247_v52  ;;  %v8153_v52 = vld [vmem:[#allocation24_spill] sm:$0xff]  ;;  %v8154_v22 = vld [vmem:[#allocation25_spill] sm:$0xff]  ;;  %vm8177_vm11 = vmmov %vm8142_vm5 }
 0x2ae   : > { %v3200_v60 = vpack.c.bf16 %v8153_v52, %v7404_v2  ;;  %v3201_v26 = vpack.c.bf16 %v8155_v24, %v8154_v22  ;;  %v4974_v2 = vld [vmem:[%s8040_s8 + $0x24] sm:$0xf]  ;;  %v7693_v36 = vld [vmem:[%s8043_s11] ss:$0 sm:$0xff] }
 0x2af   : > { %v3513_v56 = vsel %vm8142_vm5, %v4974_v2, 0 }
 0x2b4   : > { %5478 = vmatmul.mubr.msk.bf16.gmra.mrb[52].mxu1 %vm2206_vm8, %v2374_v18 }
 0x2b5   : > { %5481 = vmatprep.mubr.msk.bf16.mxu1 %vm6476_vm1, %v8139_v57 }
 0x2bc   : > { %5482 = vmatmul.mubr.msk.bf16.gmra.mrb[56].mxu1 %vm2206_vm8, %v2375_v23 }
 0x2bd   : > { %5487 = vmatprep.mubr.msk.bf16.mxu1 %vm6476_vm1, %v8139_v57 }
 0x2c4   : > { %5488 = vmatmul.mubr.msk.bf16.vlgmr.msra.gmra.mrb[40].mxu1 %vm2206_vm8, %v2489_v40 }
 0x2c5   : > { %5508 = vmatpush3.bf16.msra.mxu1 %v2630_v63  ;;  %5491 = vmatprep.mubr.msk.bf16.mxu1 %vm6476_vm1, %v8139_v57 }
 0x2c6   : > { %5529 = vmatprep.subr.bf16.mxu1 %v8139_v57 }
 0x2cc   : > { %5492 = vmatmul.mubr.msk.bf16.gmra.mrb[44].mxu1 %vm2206_vm8, %v2490_v13 }
 0x2cd   : > { %5495 = vmatprep.mubr.msk.bf16.mxu1 %vm6476_vm1, %v8139_v57 }
 0x2d4   : > { %5496 = vmatmul.mubr.msk.bf16.gmra.mrb[48].mxu1 %vm2206_vm8, %v2491_v15 }
 0x2d5   : > { %5499 = vmatprep.mubr.msk.bf16.mxu1 %vm6476_vm1, %v8139_v57 }
 0x2dc   : > { %5500 = vmatmul.mubr.msk.bf16.gmra.mrb[52].mxu1 %vm2206_vm8, %v2492_v41 }
 0x2dd   : > { %5503 = vmatprep.mubr.msk.bf16.mxu1 %vm6476_vm1, %v8139_v57 }
 0x2e4   : > { %5504 = vmatmul.mubr.msk.bf16.gmra.mrb[56].mxu1 %vm2206_vm8, %v2493_v10 }
 0x2e5   : > { %5509 = vmatprep.mubr.msk.bf16.mxu1 %vm6476_vm1, %v8139_v57 }
 0x2ec   : > { %5510 = vmatmul.mubr.msk.bf16.vlgmr.msra.gmra.mrb[40].mxu1 %vm2206_vm8, %v2607_v55 }
 0x2ed   : > { %5530 = vmatpush3.bf16.msra.mxu1 %v2748_v42  ;;  %5513 = vmatprep.mubr.msk.bf16.mxu1 %vm6476_vm1, %v8139_v57 }
 0x2ee   : > { %5551 = vmatprep.subr.bf16.mxu1 %v8139_v57 }
 0x2f4   : > { %5514 = vmatmul.mubr.msk.bf16.gmra.mrb[44].mxu1 %vm2206_vm8, %v2608_v59 }
 0x2f5   : > { %5517 = vmatprep.mubr.msk.bf16.mxu1 %vm6476_vm1, %v8139_v57 }
 0x2fc   : > { %5518 = vmatmul.mubr.msk.bf16.gmra.mrb[48].mxu1 %vm2206_vm8, %v2609_v0 }
 0x2fd   : > { %5521 = vmatprep.mubr.msk.bf16.mxu1 %vm6476_vm1, %v8139_v57 }
 0x304   : > { %5522 = vmatmul.mubr.msk.bf16.gmra.mrb[52].mxu1 %vm2206_vm8, %v2610_v5 }
 0x305   : > { %5525 = vmatprep.mubr.msk.bf16.mxu1 %vm6476_vm1, %v8139_v57 }
 0x30c   : > { %5526 = vmatmul.mubr.msk.bf16.gmra.mrb[56].mxu1 %vm2206_vm8, %v2611_v47 }
 0x30d   : > { %5531 = vmatprep.mubr.msk.bf16.mxu1 %vm6476_vm1, %v8139_v57 }
 0x314   : > { %5532 = vmatmul.mubr.msk.bf16.vlgmr.msra.gmra.mrb[40].mxu1 %vm2206_vm8, %v8146_v38 }
 0x315   : > { %5552 = vmatpush3.bf16.msra.mxu1 %v2866_v1  ;;  %5535 = vmatprep.mubr.msk.bf16.mxu1 %vm6476_vm1, %v8139_v57 }
 0x316   : > { %5573 = vmatprep.subr.bf16.mxu1 %v8139_v57 }
 0x31c   : > { %5536 = vmatmul.mubr.msk.bf16.gmra.mrb[44].mxu1 %vm2206_vm8, %v8147_v48 }
 0x31d   : > { %5539 = vmatprep.mubr.msk.bf16.mxu1 %vm6476_vm1, %v8139_v57 }
 0x324   : > { %5540 = vmatmul.mubr.msk.bf16.gmra.mrb[48].mxu1 %vm2206_vm8, %v8148_v19 }
 0x325   : > { %5543 = vmatprep.mubr.msk.bf16.mxu1 %vm6476_vm1, %v8139_v57 }
 0x32c   : > { %5544 = vmatmul.mubr.msk.bf16.gmra.mrb[52].mxu1 %vm2206_vm8, %v8149_v39 }
 0x32d   : > { %5547 = vmatprep.mubr.msk.bf16.mxu1 %vm6476_vm1, %v8139_v57 }
 0x334   : > { %5548 = vmatmul.mubr.msk.bf16.gmra.mrb[56].mxu1 %vm2206_vm8, %v8150_v7 }
 0x335   : > { %5553 = vmatprep.mubr.msk.bf16.mxu1 %vm6476_vm1, %v8139_v57 }
 0x33c   : > { %5554 = vmatmul.mubr.msk.bf16.vlgmr.msra.gmra.mrb[40].mxu1 %vm2206_vm8, %v2843_v53 }
 0x33d   : > { %5574 = vmatpush3.bf16.msra.mxu1 %v2984_v6  ;;  %5557 = vmatprep.mubr.msk.bf16.mxu1 %vm6476_vm1, %v8139_v57 }
 0x33e   : > { %5595 = vmatprep.subr.bf16.mxu1 %v8139_v57 }
 0x344   : > { %5558 = vmatmul.mubr.msk.bf16.gmra.mrb[44].mxu1 %vm2206_vm8, %v2844_v20 }
 0x345   : > { %5561 = vmatprep.mubr.msk.bf16.mxu1 %vm6476_vm1, %v8139_v57 }
 0x34c   : > { %5562 = vmatmul.mubr.msk.bf16.gmra.mrb[48].mxu1 %vm2206_vm8, %v2845_v58 }
 0x34d   : > { %5565 = vmatprep.mubr.msk.bf16.mxu1 %vm6476_vm1, %v8139_v57 }
 0x354   : > { %5566 = vmatmul.mubr.msk.bf16.gmra.mrb[52].mxu1 %vm2206_vm8, %v2846_v34 }
 0x355   : > { %5569 = vmatprep.mubr.msk.bf16.mxu1 %vm6476_vm1, %v8139_v57 }
 0x35c   : > { %5570 = vmatmul.mubr.msk.bf16.gmra.mrb[56].mxu1 %vm2206_vm8, %v2847_v28 }
 0x35d   : > { %5575 = vmatprep.mubr.msk.bf16.mxu1 %vm6476_vm1, %v8139_v57 }
 0x364   : > { %5576 = vmatmul.mubr.msk.bf16.vlgmr.msra.gmra.mrb[40].mxu1 %vm2206_vm8, %v2961_v35 }
 0x365   : > { %5596 = vmatpush3.bf16.msra.mxu1 %v3102_v43  ;;  %5579 = vmatprep.mubr.msk.bf16.mxu1 %vm6476_vm1, %v8139_v57 }
 0x366   : > { %5617 = vmatprep.subr.bf16.mxu1 %v8139_v57 }
 0x36c   : > { %5580 = vmatmul.mubr.msk.bf16.gmra.mrb[44].mxu1 %vm2206_vm8, %v2962_v14 }
 0x36d   : > { %5583 = vmatprep.mubr.msk.bf16.mxu1 %vm6476_vm1, %v8139_v57 }
 0x374   : > { %5584 = vmatmul.mubr.msk.bf16.gmra.mrb[48].mxu1 %vm2206_vm8, %v2963_v49 }
 0x375   : > { %5587 = vmatprep.mubr.msk.bf16.mxu1 %vm6476_vm1, %v8139_v57 }
 0x37c   : > { %5588 = vmatmul.mubr.msk.bf16.gmra.mrb[52].mxu1 %vm2206_vm8, %v2964_v12 }
 0x37d   : > { %5591 = vmatprep.mubr.msk.bf16.mxu1 %vm6476_vm1, %v8139_v57 }
 0x384   : > { %5592 = vmatmul.mubr.msk.bf16.gmra.mrb[56].mxu1 %vm2206_vm8, %v2965_v11 }
 0x385   : > { %5597 = vmatprep.mubr.msk.bf16.mxu1 %vm6476_vm1, %v8139_v57 }
 0x38c   : > { %5598 = vmatmul.mubr.msk.bf16.vlgmr.msra.gmra.mrb[40].mxu1 %vm2206_vm8, %v3079_v30 }
 0x38d   : > { %5618 = vmatpush3.bf16.msra.mxu1 %v3220_v51  ;;  %5601 = vmatprep.mubr.msk.bf16.mxu1 %vm6476_vm1, %v8139_v57 }
 0x38e   : > { %5861 = vmatprep.subr.bf16.mxu1 %v8139_v57 }
 0x394   : > { %5602 = vmatmul.mubr.msk.bf16.gmra.mrb[44].mxu1 %vm2206_vm8, %v3080_v16 }
 0x395   : > { %5605 = vmatprep.mubr.msk.bf16.mxu1 %vm6476_vm1, %v8139_v57 }
 0x39c   : > { %5606 = vmatmul.mubr.msk.bf16.gmra.mrb[48].mxu1 %vm2206_vm8, %v3081_v3 }
 0x39d   : > { %5609 = vmatprep.mubr.msk.bf16.mxu1 %vm6476_vm1, %v8139_v57 }
 0x3a4   : > { %5610 = vmatmul.mubr.msk.bf16.gmra.mrb[52].mxu1 %vm2206_vm8, %v3082_v50  ;;  %v8156_v50 = vld [vmem:[#allocation6_spill] sm:$0xff] }
 0x3a5   : > { %5613 = vmatprep.mubr.msk.bf16.mxu1 %vm6476_vm1, %v8139_v57 }
 0x3ac   : > { %5614 = vmatmul.mubr.msk.bf16.gmra.mrb[56].mxu1 %vm2206_vm8, %v3083_v62 }
 0x3ad   : > { %5619 = vmatprep.mubr.msk.bf16.mxu1 %vm6476_vm1, %v8139_v57 }
 0x3b4   : > { %5620 = vmatmul.mubr.msk.bf16.vlgmr.msra.gmra.mrb[40].mxu1 %vm2206_vm8, %v3197_v27 }
 0x3b5   : > { %5623 = vmatprep.mubr.msk.bf16.mxu1 %vm6476_vm1, %v8139_v57 }
 0x3bc   : > { %5624 = vmatmul.mubr.msk.bf16.gmra.mrb[44].mxu1 %vm2206_vm8, %v3198_v61 }
 0x3bd   : > { %5627 = vmatprep.mubr.msk.bf16.mxu1 %vm6476_vm1, %v8139_v57 }
 0x3c4   : > { %5628 = vmatmul.mubr.msk.bf16.gmra.mrb[48].mxu1 %vm2206_vm8, %v3199_v17 }
 0x3c5   : > { %5631 = vmatprep.mubr.msk.bf16.mxu1 %vm6476_vm1, %v8139_v57 }
 0x3cc   : > { %5632 = vmatmul.mubr.msk.bf16.gmra.mrb[52].mxu1 %vm2206_vm8, %v3200_v60  ;;  %v8158_v60 = vld [vmem:[#allocation7_spill] sm:$0xff] }
 0x3cd   : > { %5635 = vmatprep.mubr.msk.bf16.mxu1 %vm6476_vm1, %v8139_v57 }
 0x3d4   : > { %5636 = vmatmul.mubr.msk.bf16.gmra.mrb[56].mxu1 %vm2206_vm8, %v3201_v26 }
 0x3d5   : > { %5865 = vmatprep.mubr.msk.bf16.mxu1 %vm6476_vm1, %v8139_v57 }
 0x487   : > { %v3256_v33 = vpop.f32.mrb[40].mxu1 }
 0x488   : > { %v5905_v37 = vadd.f32 %v4911_v25, %v3256_v33  ;;  %v5621_v44 = vpop.f32.mrb[41].mxu1 }
 0x489   : > { %v3259_v32 = vpop.f32.mrb[42].mxu1 }
 0x48a   : > { %v5906_v9 = vadd.f32 %v4911_v25, %v3259_v32  ;;  %v5622_v4 = vpop.f32.mrb[43].mxu1  ;;  %v3305_v54 = vmax.f32 %v5905_v37, 0.0  ;;  %v8160_v32 = vld [vmem:[#allocation10_spill] sm:$0xff] }
 0x48c   : > { %v3306_v18 = vmax.f32 %v5906_v9, 0.0 }
 0x48e   : > { %v3315_v23 = vpack.c.bf16 %v3306_v18, %v3305_v54  ;;  %v3480_v54 = vld [vmem:[#allocation2 + $0x5] sm:$0xff] }
 0x48f   : > { %v3264_v40 = vpop.f32.mrb[44].mxu1  ;;  %v4981_v18 = vld [vmem:[%s8040_s8 + $0x28] sm:$0xf] }
 0x490   : > { %v5907_v63 = vadd.f32 %v4911_v25, %v3264_v40  ;;  %v5625_v13 = vpop.f32.mrb[45].mxu1  ;;  %5644 = vmatmul.mubr.msk.bf16.vlgmr.msra.gmra.mrb[20].mxu0 %vm3338_vm15, %v3315_v23  ;;  %v8162_v40 = vld [vmem:[#allocation11_spill] sm:$0xff] }
 0x491   : > { %v3267_v15 = vpop.f32.mrb[46].mxu1  ;;  %5647 = vmatprep.mubr.msk.bf16.mxu0 %vm6476_vm1, %v8139_v57  ;;  %5664 = vmatpush3.bf16.msra.mxu0 %v3513_v56 }
 0x492   : > { %v5908_v41 = vadd.f32 %v4911_v25, %v3267_v15  ;;  %v5626_v10 = vpop.f32.mrb[47].mxu1  ;;  %5685 = vmatprep.subr.bf16.mxu0 %v8139_v57  ;;  %v3307_v46 = vmax.f32 %v5907_v63, 0.0 }
 0x494   : > { %v3308_v55 = vmax.f32 %v5908_v41, 0.0  ;;  %v3637_v41 = vsel %vm8163_vm10, %v4981_v18, 0  ;;  %vm8178_vm10 = vmmov %vm8142_vm5 }
 0x496   : > { %v3316_v42 = vpack.c.bf16 %v3308_v55, %v3307_v46 }
 0x497   : > { %v3272_v59 = vpop.f32.mrb[48].mxu1 }
 0x498   : > { %v5909_v0 = vadd.f32 %v4911_v25, %v3272_v59  ;;  %v5629_v5 = vpop.f32.mrb[49].mxu1  ;;  %5648 = vmatmul.mubr.msk.bf16.gmra.mrb[24].mxu0 %vm3338_vm15, %v3316_v42 }
 0x499   : > { %v3275_v47 = vpop.f32.mrb[50].mxu1  ;;  %5651 = vmatprep.mubr.msk.bf16.mxu0 %vm6476_vm1, %v8139_v57  ;;  %v8165_v5 = vld [vmem:[#allocation14_spill] sm:$0xff] }
 0x49a   : > { %v5910_v45 = vadd.f32 %v4911_v25, %v3275_v47  ;;  %v5630_v1 = vpop.f32.mrb[51].mxu1  ;;  %v3309_v38 = vmax.f32 %v5909_v0, 0.0 }
 0x49c   : > { %v3310_v48 = vmax.f32 %v5910_v45, 0.0 }
 0x49e   : > { %v3317_v19 = vpack.c.bf16 %v3310_v48, %v3309_v38 }
 0x49f   : > { %v3280_v39 = vpop.f32.mrb[52].mxu1 }
 0x4a0   : > { %v5911_v7 = vadd.f32 %v4911_v25, %v3280_v39  ;;  %v5633_v29 = vpop.f32.mrb[53].mxu1  ;;  %5652 = vmatmul.mubr.msk.bf16.gmra.mrb[28].mxu0 %vm3338_vm15, %v3317_v19  ;;  %v8167_v19 = vld [vmem:[#allocation15_spill] sm:$0xff] }
 0x4a1   : > { %v3283_v53 = vpop.f32.mrb[54].mxu1  ;;  %5655 = vmatprep.mubr.msk.bf16.mxu0 %vm6476_vm1, %v8139_v57 }
 0x4a2   : > { %v5912_v6 = vadd.f32 %v4911_v25, %v3283_v53  ;;  %v5634_v20 = vpop.f32.mrb[55].mxu1  ;;  %v3311_v58 = vmax.f32 %v5911_v7, 0.0 }
 0x4a4   : > { %v3312_v34 = vmax.f32 %v5912_v6, 0.0 }
 0x4a6   : > { %v3318_v21 = vpack.c.bf16 %v3312_v34, %v3311_v58 }
 0x4a7   : > { %v3288_v31 = vpop.f32.mrb[56].mxu1 }
 0x4a8   : > { %v5913_v28 = vadd.f32 %v4911_v25, %v3288_v31  ;;  %v5637_v8 = vpop.f32.mrb[57].mxu1  ;;  %5656 = vmatmul.mubr.msk.bf16.gmra.mrb[32].mxu0 %vm3338_vm15, %v3318_v21 }
 0x4a9   : > { %v3291_v35 = vpop.f32.mrb[58].mxu1  ;;  %5659 = vmatprep.mubr.msk.bf16.mxu0 %vm6476_vm1, %v8139_v57 }
 0x4aa   : > { %v5914_v43 = vadd.f32 %v4911_v25, %v3291_v35  ;;  %v5638_v14 = vpop.f32.mrb[59].mxu1  ;;  %v3313_v49 = vmax.f32 %v5913_v28, 0.0  ;;  %v8169_v28 = vld [vmem:[#allocation18_spill] sm:$0xff] }
 0x4ac   : > { %v3314_v12 = vmax.f32 %v5914_v43, 0.0 }
 0x4ae   : > { %v3319_v11 = vpack.c.bf16 %v3314_v12, %v3313_v49  ;;  %v8171_v12 = vld [vmem:[#allocation19_spill] sm:$0xff] }
 0x4b0   : > { %5660 = vmatmul.mubr.msk.bf16.gmra.mrb[36].mxu0 %vm3338_vm15, %v3319_v11 }
 0x4b1   : > { %5665 = vmatprep.mubr.msk.bf16.mxu0 %vm6476_vm1, %v8139_v57 }
 0x563   : > { %v3388_v30 = vpop.f32.mrb[20].mxu0 }
 0x564   : > { %v3389_v51 = vadd.f32 %v7693_v36, %v3388_v30  ;;  %v5645_v16 = vpop.f32.mrb[21].mxu0 }
 0x565   : > { %v3391_v3 = vpop.f32.mrb[22].mxu0 }
 0x566   : > { %v3427_v62 = vadd.f32 %v3389_v51, %v8156_v50  ;;  %v3392_v27 = vadd.f32 %v7693_v36, %v3391_v3  ;;  %v5646_v61 = vpop.f32.mrb[23].mxu0 }
 0x568   : > { %v7700_v52 = vsel %vm7035_vm2, %v3427_v62, 0.0  ;;  %v3428_v22 = vadd.f32 %v3392_v27, %v8158_v60 }
 0x569   : > { %3461 = vst.msk [vmem:[#allocation2 + $0x10] sm:$0xff] %vm2206_vm8, %v7700_v52 }
 0x56a   : > { %v7707_v26 = vsel %vm7039_vm3, %v3428_v22, 0.0  ;;  %v8173_v22 = vld [vmem:[#allocation22_spill] sm:$0xff] }
 0x56b   : > { %3462 = vst.msk [vmem:[#allocation2 + $0x18] sm:$0xff] %vm2206_vm8, %v7707_v26  ;;  %v3396_v25 = vpop.f32.mrb[24].mxu0 }
 0x56c   : > { %v3397_v33 = vadd.f32 %v7693_v36, %v3396_v25  ;;  %v5649_v37 = vpop.f32.mrb[25].mxu0 }
 0x56d   : > { %v3399_v44 = vpop.f32.mrb[26].mxu0 }
 0x56e   : > { %v3429_v9 = vadd.f32 %v3397_v33, %v8160_v32  ;;  %v3400_v4 = vadd.f32 %v7693_v36, %v3399_v44  ;;  %v5650_v2 = vpop.f32.mrb[27].mxu0 }
 0x570   : > { %v7719_v56 = vsel %vm7091_vm14, %v3429_v9, 0.0  ;;  %v3430_v63 = vadd.f32 %v3400_v4, %v8162_v40  ;;  %v3481_v13 = vld [vmem:[#allocation2 + $0xd] sm:$0xff] }
 0x571   : > { %3463 = vst.msk [vmem:[#allocation2 + $0x20] sm:$0xff] %vm2206_vm8, %v7719_v56  ;;  %v3490_v15 = vpack.c.bf16 %v3481_v13, %v3480_v54  ;;  %v8175_v9 = vld [vmem:[#allocation23_spill] sm:$0xff] }
 0x572   : > { %v7727_v46 = vsel %vm7104_vm0, %v3430_v63, 0.0  ;;  %v3482_v7 = vld [vmem:[#allocation2 + $0x15] sm:$0xff] }
 0x573   : > { %3464 = vst.msk [vmem:[#allocation2 + $0x28] sm:$0xff] %vm2206_vm8, %v7727_v46  ;;  %v3404_v55 = vpop.f32.mrb[28].mxu0  ;;  %5666 = vmatmul.mubr.msk.bf16.vlgmr.msra.gmra.mrb[40].mxu0 %vm2206_vm8, %v3490_v15 }
 0x574   : > { %v3405_v42 = vadd.f32 %v7693_v36, %v3404_v55  ;;  %5686 = vmatpush3.bf16.msra.mxu0 %v3637_v41  ;;  %v5653_v59 = vpop.f32.mrb[29].mxu0  ;;  %5669 = vmatprep.mubr.msk.bf16.mxu0 %vm6476_vm1, %v8139_v57  ;;  %v3604_v41 = vld [vmem:[#allocation2 + $0x6] sm:$0xff]  ;;  %v3605_v55 = vld [vmem:[#allocation2 + $0xe] sm:$0xff] }
 0x575   : > { %v3407_v0 = vpop.f32.mrb[30].mxu0  ;;  %5707 = vmatprep.subr.bf16.mxu0 %v8139_v57  ;;  %v3614_v59 = vpack.c.bf16 %v3605_v55, %v3604_v41  ;;  %v5005_v41 = vld [vmem:[%s8040_s8 + $0x38] sm:$0xf]  ;;  %v3958_v55 = vld [vmem:[#allocation2 + $0x10] sm:$0xff] }
 0x576   : > { %v3431_v47 = vadd.f32 %v3405_v42, %v8165_v5  ;;  %v3408_v45 = vadd.f32 %v7693_v36, %v3407_v0  ;;  %v5654_v1 = vpop.f32.mrb[31].mxu0  ;;  %v4987_v42 = vld [vmem:[%s8040_s8 + $0x2c] sm:$0xf] }
 0x577   : > { %v3755_v0 = vsel %vm8177_vm11, %v4987_v42, 0  ;;  %vm8179_vm11 = vmmov %vm8142_vm5 }
 0x578   : > { %v7740_v48 = vsel %vm7169_vm9, %v3431_v47, 0.0  ;;  %v3432_v39 = vadd.f32 %v3408_v45, %v8167_v19  ;;  %v3483_v29 = vld [vmem:[#allocation2 + $0x1d] sm:$0xff] }
 0x579   : > { %3465 = vst.msk [vmem:[#allocation2 + $0x30] sm:$0xff] %vm2206_vm8, %v7740_v48  ;;  %v3491_v53 = vpack.c.bf16 %v3483_v29, %v3482_v7  ;;  %v3607_v5 = vld [vmem:[#allocation2 + $0x1e] sm:$0xff]  ;;  %v3606_v47 = vld [vmem:[#allocation2 + $0x16] sm:$0xff] }
 0x57a   : > { %v7747_v20 = vsel %vm7178_vm12, %v3432_v39, 0.0  ;;  %v3484_v30 = vld [vmem:[#allocation2 + $0x25] sm:$0xff]  ;;  %v3615_v45 = vpack.c.bf16 %v3607_v5, %v3606_v47 }
 0x57b   : > { %3466 = vst.msk [vmem:[#allocation2 + $0x38] sm:$0xff] %vm2206_vm8, %v7747_v20  ;;  %v3412_v58 = vpop.f32.mrb[32].mxu0  ;;  %5670 = vmatmul.mubr.msk.bf16.gmra.mrb[44].mxu0 %vm2206_vm8, %v3491_v53  ;;  %v3608_v19 = vld [vmem:[#allocation2 + $0x26] sm:$0xff] }
 0x57c   : > { %v3413_v34 = vadd.f32 %v7693_v36, %v3412_v58  ;;  %v5657_v21 = vpop.f32.mrb[33].mxu0  ;;  %5673 = vmatprep.mubr.msk.bf16.mxu0 %vm6476_vm1, %v8139_v57  ;;  %v3960_v5 = vld [vmem:[#allocation2 + $0x20] sm:$0xff] }
 0x57d   : > { %v3415_v31 = vpop.f32.mrb[34].mxu0 }
 0x57e   : > { %v3433_v8 = vadd.f32 %v3413_v34, %v8169_v28  ;;  %v3416_v35 = vadd.f32 %v7693_v36, %v3415_v31  ;;  %v5658_v43 = vpop.f32.mrb[35].mxu0  ;;  %v3722_v31 = vld [vmem:[#allocation2 + $0x7] sm:$0xff]  ;;  %v3723_v28 = vld [vmem:[#allocation2 + $0xf] sm:$0xff] }
 0x580   : > { %v7759_v49 = vsel %vm7251_vm7, %v3433_v8, 0.0  ;;  %v3434_v11 = vadd.f32 %v3416_v35, %v8171_v12  ;;  %v3485_v51 = vld [vmem:[#allocation2 + $0x2d] sm:$0xff]  ;;  %v3732_v35 = vpack.c.bf16 %v3723_v28, %v3722_v31  ;;  %v3725_v12 = vld [vmem:[#allocation2 + $0x1f] sm:$0xff] }
 0x581   : > { %3467 = vst.msk [vmem:[#allocation2 + $0x40] sm:$0xff] %vm2206_vm8, %v7759_v49  ;;  %v3492_v16 = vpack.c.bf16 %v3485_v51, %v3484_v30  ;;  %v3609_v1 = vld [vmem:[#allocation2 + $0x2e] sm:$0xff]  ;;  %v5011_v31 = vld [vmem:[%s8040_s8 + $0x3c] sm:$0xf] }
 0x582   : > { %v7766_v50 = vsel %vm7263_vm13, %v3434_v11, 0.0  ;;  %v3486_v2 = vld [vmem:[#allocation2 + $0x35] sm:$0xff]  ;;  %v3616_v39 = vpack.c.bf16 %v3609_v1, %v3608_v19  ;;  %v4993_v8 = vld [vmem:[%s8040_s8 + $0x30] sm:$0xf] }
 0x583   : > { %3468 = vst.msk [vmem:[#allocation2 + $0x48] sm:$0xff] %vm2206_vm8, %v7766_v50  ;;  %v3420_v62 = vpop.f32.mrb[36].mxu0  ;;  %5674 = vmatmul.mubr.msk.bf16.gmra.mrb[48].mxu0 %vm2206_vm8, %v3492_v16  ;;  %v3610_v29 = vld [vmem:[#allocation2 + $0x36] sm:$0xff]  ;;  %v3873_v43 = vsel %vm8142_vm5, %v4993_v8, 0  ;;  %v3726_v16 = vld [vmem:[#allocation2 + $0x27] sm:$0xff] }
 0x584   : > { %v3421_v27 = vadd.f32 %v7693_v36, %v3420_v62  ;;  %v5661_v61 = vpop.f32.mrb[37].mxu0  ;;  %5677 = vmatprep.mubr.msk.bf16.mxu0 %vm6476_vm1, %v8139_v57  ;;  %v3724_v11 = vld [vmem:[#allocation2 + $0x17] sm:$0xff]  ;;  %v3727_v51 = vld [vmem:[#allocation2 + $0x2f] sm:$0xff] }
 0x585   : > { %v3423_v60 = vpop.f32.mrb[38].mxu0  ;;  %v3733_v30 = vpack.c.bf16 %v3725_v12, %v3724_v11  ;;  %v3734_v62 = vpack.c.bf16 %v3727_v51, %v3726_v16  ;;  %v3728_v61 = vld [vmem:[#allocation2 + $0x37] sm:$0xff] }
 0x586   : > { %v3435_v25 = vadd.f32 %v3421_v27, %v8173_v22  ;;  %v3424_v33 = vadd.f32 %v7693_v36, %v3423_v60  ;;  %v5662_v37 = vpop.f32.mrb[39].mxu0  ;;  %v3962_v1 = vld [vmem:[#allocation2 + $0x30] sm:$0xff] }
 0x587   : > { %v4999_v37 = vld [vmem:[%s8040_s8 + $0x34] sm:$0xf] }
 0x588   : > { %v7778_v32 = vsel %vm7328_vm4, %v3435_v25, 0.0  ;;  %v3436_v4 = vadd.f32 %v3424_v33, %v8175_v9  ;;  %v3487_v54 = vld [vmem:[#allocation2 + $0x3d] sm:$0xff]  ;;  %v3850_v9 = vpack.c.bf16 %v3724_v11, %v3723_v28  ;;  %v4076_v28 = vld [vmem:[#allocation2 + $0x11] sm:$0xff] }
 0x589   : > { %3469 = vst.msk [vmem:[#allocation2 + $0x50] sm:$0xff] %vm2206_vm8, %v7778_v32  ;;  %v3493_v18 = vpack.c.bf16 %v3487_v54, %v3486_v2  ;;  %v3611_v7 = vld [vmem:[#allocation2 + $0x3e] sm:$0xff]  ;;  %v3851_v2 = vpack.c.bf16 %v3726_v16, %v3725_v12  ;;  %v3852_v54 = vpack.c.bf16 %v3728_v61, %v3727_v51  ;;  %v4080_v51 = vld [vmem:[#allocation2 + $0x31] sm:$0xff] }
 0x58a   : > { %v7785_v63 = vsel %vm7337_vm6, %v3436_v4, 0.0  ;;  %v3488_v36 = vld [vmem:[#allocation2 + $0x45] sm:$0xff]  ;;  %v3617_v53 = vpack.c.bf16 %v3611_v7, %v3610_v29  ;;  %v3991_v4 = vsel %vm8178_vm10, %v4999_v37, 0  ;;  %vm8180_vm10 = vmmov %vm8142_vm5 }
 0x58b   : > { %3470 = vst.msk [vmem:[#allocation2 + $0x58] sm:$0xff] %vm2206_vm8, %v7785_v63  ;;  %5678 = vmatmul.mubr.msk.bf16.gmra.mrb[52].mxu0 %vm2206_vm8, %v3493_v18  ;;  %v3612_v34 = vld [vmem:[#allocation2 + $0x46] sm:$0xff] }
 0x58c   : > { %5681 = vmatprep.mubr.msk.bf16.mxu0 %vm6476_vm1, %v8139_v57  ;;  %v3729_v27 = vld [vmem:[#allocation2 + $0x3f] sm:$0xff]  ;;  %v3730_v25 = vld [vmem:[#allocation2 + $0x47] sm:$0xff] }
 0x58d   : > { %v3735_v60 = vpack.c.bf16 %v3729_v27, %v3728_v61  ;;  %v3853_v18 = vpack.c.bf16 %v3730_v25, %v3729_v27  ;;  %v3964_v7 = vld [vmem:[#allocation2 + $0x40] sm:$0xff] }
 0x58e   : > { %v4078_v12 = vld [vmem:[#allocation2 + $0x21] sm:$0xff] }
 0x58f   : > { %v4082_v27 = vld [vmem:[#allocation2 + $0x41] sm:$0xff] }
 0x590   : > { %v3489_v13 = vld [vmem:[#allocation2 + $0x4d] sm:$0xff] }
 0x591   : > { %v3494_v15 = vpack.c.bf16 %v3489_v13, %v3488_v36  ;;  %v3613_v58 = vld [vmem:[#allocation2 + $0x4e] sm:$0xff] }
 0x592   : > { %v3618_v21 = vpack.c.bf16 %v3613_v58, %v3612_v34  ;;  %v3731_v22 = vld [vmem:[#allocation2 + $0x4f] sm:$0xff]  ;;  %v3849_v36 = vld [vmem:[#allocation2 + $0x57] sm:$0xff] }
 0x593   : > { %5682 = vmatmul.mubr.msk.bf16.gmra.mrb[56].mxu0 %vm2206_vm8, %v3494_v15  ;;  %v3736_v33 = vpack.c.bf16 %v3731_v22, %v3730_v25  ;;  %v3854_v13 = vpack.c.bf16 %v3849_v36, %v3731_v22  ;;  %v3959_v15 = vld [vmem:[#allocation2 + $0x18] sm:$0xff]  ;;  %v3966_v58 = vld [vmem:[#allocation2 + $0x50] sm:$0xff] }
 0x594   : > { %5687 = vmatprep.mubr.msk.bf16.mxu0 %vm6476_vm1, %v8139_v57  ;;  %v3968_v42 = vpack.c.bf16 %v3959_v15, %v3958_v55  ;;  %v6466_v22 = vld [vmem:[%s8042_s10 + $0x18] sm:$0xff]   ;;  %v5023_v55 = vld [vmem:[%s8040_s8 + $0x44] sm:$0xf] }
 0x595   : > { %v4084_v25 = vld [vmem:[#allocation2 + $0x51] sm:$0xff] }
 0x59b   : > { %5688 = vmatmul.mubr.msk.bf16.vlgmr.msra.gmra.mrb[40].mxu0 %vm2206_vm8, %v3614_v59  ;;  %v4109_v59 = vsel %vm8179_vm11, %v5005_v41, 0  ;;  %v4313_v41 = vld [vmem:[#allocation2 + $0x22] sm:$0xff]  ;;  %vm8181_vm11 = vmmov %vm8142_vm5 }
 0x59c   : > { %5708 = vmatpush3.bf16.msra.mxu0 %v3755_v0  ;;  %5691 = vmatprep.mubr.msk.bf16.mxu0 %vm6476_vm1, %v8139_v57  ;;  %v3961_v0 = vld [vmem:[#allocation2 + $0x28] sm:$0xff] }
 0x59d   : > { %5729 = vmatprep.subr.bf16.mxu0 %v8139_v57  ;;  %v3969_v47 = vpack.c.bf16 %v3961_v0, %v3960_v5  ;;  %v4463_v0 = vsel %vm8181_vm11, %v5023_v55, 0  ;;  %v4315_v5 = vld [vmem:[#allocation2 + $0x32] sm:$0xff] }
 0x5a3   : > { %5692 = vmatmul.mubr.msk.bf16.gmra.mrb[44].mxu0 %vm2206_vm8, %v3615_v45  ;;  %v3963_v45 = vld [vmem:[#allocation2 + $0x38] sm:$0xff] }
 0x5a4   : > { %5695 = vmatprep.mubr.msk.bf16.mxu0 %vm6476_vm1, %v8139_v57  ;;  %v3970_v19 = vpack.c.bf16 %v3963_v45, %v3962_v1  ;;  %v4317_v1 = vld [vmem:[#allocation2 + $0x42] sm:$0xff] }
 0x5ab   : > { %5696 = vmatmul.mubr.msk.bf16.gmra.mrb[48].mxu0 %vm2206_vm8, %v3616_v39  ;;  %v3965_v39 = vld [vmem:[#allocation2 + $0x48] sm:$0xff] }
 0x5ac   : > { %5699 = vmatprep.mubr.msk.bf16.mxu0 %vm6476_vm1, %v8139_v57  ;;  %v3971_v29 = vpack.c.bf16 %v3965_v39, %v3964_v7  ;;  %v4319_v7 = vld [vmem:[#allocation2 + $0x52] sm:$0xff] }
 0x5b3   : > { %5700 = vmatmul.mubr.msk.bf16.gmra.mrb[52].mxu0 %vm2206_vm8, %v3617_v53  ;;  %v3967_v53 = vld [vmem:[#allocation2 + $0x58] sm:$0xff] }
 0x5b4   : > { %5703 = vmatprep.mubr.msk.bf16.mxu0 %vm6476_vm1, %v8139_v57  ;;  %v3972_v34 = vpack.c.bf16 %v3967_v53, %v3966_v58  ;;  %v4320_v58 = vld [vmem:[#allocation2 + $0x5a] sm:$0xff] }
 0x5bb   : > { %5704 = vmatmul.mubr.msk.bf16.gmra.mrb[56].mxu0 %vm2206_vm8, %v3618_v21  ;;  %v4077_v21 = vld [vmem:[#allocation2 + $0x19] sm:$0xff] }
 0x5bc   : > { %5709 = vmatprep.mubr.msk.bf16.mxu0 %vm6476_vm1, %v8139_v57  ;;  %v4086_v8 = vpack.c.bf16 %v4077_v21, %v4076_v28  ;;  %v4430_v28 = vld [vmem:[#allocation2 + $0x1b] sm:$0xff] }
 0x5c3   : > { %5710 = vmatmul.mubr.msk.bf16.vlgmr.msra.gmra.mrb[40].mxu0 %vm2206_vm8, %v3732_v35  ;;  %v4227_v35 = vsel %vm8142_vm5, %v5011_v31, 0  ;;  %v4431_v31 = vld [vmem:[#allocation2 + $0x23] sm:$0xff] }
 0x5c4   : > { %5730 = vmatpush3.bf16.msra.mxu0 %v3873_v43  ;;  %5713 = vmatprep.mubr.msk.bf16.mxu0 %vm6476_vm1, %v8139_v57  ;;  %v4079_v43 = vld [vmem:[#allocation2 + $0x29] sm:$0xff] }
 0x5c5   : > { %5751 = vmatprep.subr.bf16.mxu0 %v8139_v57  ;;  %v4087_v11 = vpack.c.bf16 %v4079_v43, %v4078_v12 }
 0x5cb   : > { %5714 = vmatmul.mubr.msk.bf16.gmra.mrb[44].mxu0 %vm2206_vm8, %v3733_v30  ;;  %v4081_v30 = vld [vmem:[#allocation2 + $0x39] sm:$0xff] }
 0x5cc   : > { %5717 = vmatprep.mubr.msk.bf16.mxu0 %vm6476_vm1, %v8139_v57  ;;  %v4088_v16 = vpack.c.bf16 %v4081_v30, %v4080_v51 }
 0x5d3   : > { %5718 = vmatmul.mubr.msk.bf16.gmra.mrb[48].mxu0 %vm2206_vm8, %v3734_v62  ;;  %v4083_v62 = vld [vmem:[#allocation2 + $0x49] sm:$0xff] }
 0x5d4   : > { %5721 = vmatprep.mubr.msk.bf16.mxu0 %vm6476_vm1, %v8139_v57  ;;  %v4089_v61 = vpack.c.bf16 %v4083_v62, %v4082_v27  ;;  %v4207_v36 = vpack.c.bf16 %v4084_v25, %v4083_v62  ;;  %v4436_v62 = vld [vmem:[#allocation2 + $0x4b] sm:$0xff] }
 0x5db   : > { %5722 = vmatmul.mubr.msk.bf16.gmra.mrb[52].mxu0 %vm2206_vm8, %v3735_v60  ;;  %v6465_v60 = vld [vmem:[%s8042_s10 + $0x10] sm:$0xff]  }
 0x5dc   : > { %5725 = vmatprep.mubr.msk.bf16.mxu0 %vm6476_vm1, %v8139_v57  ;;  %5862 = vmatpush3.bf16.msra.mxu1 %v6465_v60  ;;  %v4439_v60 = vld [vmem:[#allocation2 + $0x63] sm:$0xff] }
 0x5dd   : > { %5863 = vmatprep.subr.bf16.mxu1 %v8139_v57 }
 0x5e0   : > { %5864 = vmatpush3.bf16.msra.mxu1 %v6466_v22 }
 0x5e3   : > { %5726 = vmatmul.mubr.msk.bf16.gmra.mrb[56].mxu0 %vm2206_vm8, %v3736_v33  ;;  %v4085_v33 = vld [vmem:[#allocation2 + $0x59] sm:$0xff] }
 0x5e4   : > { %5731 = vmatprep.mubr.msk.bf16.mxu0 %vm6476_vm1, %v8139_v57  ;;  %v4090_v37 = vpack.c.bf16 %v4085_v33, %v4084_v25  ;;  %v4980_v25 = vld [vmem:[%s8041_s9 + $0x1] ss:$0 sm:$0xff] }
 0x5eb   : > { %5732 = vmatmul.mubr.msk.bf16.vlgmr.msra.gmra.mrb[40].mxu0 %vm2206_vm8, %v3850_v9  ;;  %v5017_v9 = vld [vmem:[%s8040_s8 + $0x40] sm:$0xf] }
 0x5ec   : > { %5752 = vmatpush3.bf16.msra.mxu0 %v3991_v4  ;;  %5735 = vmatprep.mubr.msk.bf16.mxu0 %vm6476_vm1, %v8139_v57  ;;  %v4204_v4 = vpack.c.bf16 %v4078_v12, %v4077_v21 }
 0x5ed   : > { %5773 = vmatprep.subr.bf16.mxu0 %v8139_v57 }
 0x5f3   : > { %5736 = vmatmul.mubr.msk.bf16.gmra.mrb[44].mxu0 %vm2206_vm8, %v3851_v2  ;;  %v4345_v2 = vsel %vm8180_vm10, %v5017_v9, 0 }
 0x5f4   : > { %5739 = vmatprep.mubr.msk.bf16.mxu0 %vm6476_vm1, %v8139_v57 }
 0x5fb   : > { %5740 = vmatmul.mubr.msk.bf16.gmra.mrb[48].mxu0 %vm2206_vm8, %v3852_v54  ;;  %v4205_v54 = vpack.c.bf16 %v4080_v51, %v4079_v43  ;;  %v4432_v43 = vld [vmem:[#allocation2 + $0x2b] sm:$0xff] }
 0x5fc   : > { %5743 = vmatprep.mubr.msk.bf16.mxu0 %vm6476_vm1, %v8139_v57 }
 0x603   : > { %5744 = vmatmul.mubr.msk.bf16.gmra.mrb[52].mxu0 %vm2206_vm8, %v3853_v18  ;;  %v4206_v18 = vpack.c.bf16 %v4082_v27, %v4081_v30  ;;  %v4434_v30 = vld [vmem:[#allocation2 + $0x3b] sm:$0xff] }
 0x604   : > { %5747 = vmatprep.mubr.msk.bf16.mxu0 %vm6476_vm1, %v8139_v57 }
 0x60b   : > { %5748 = vmatmul.mubr.msk.bf16.gmra.mrb[56].mxu0 %vm2206_vm8, %v3854_v13  ;;  %v4203_v13 = vld [vmem:[#allocation2 + $0x61] sm:$0xff] }
 0x60c   : > { %5753 = vmatprep.mubr.msk.bf16.mxu0 %vm6476_vm1, %v8139_v57  ;;  %v4208_v15 = vpack.c.bf16 %v4203_v13, %v4085_v33 }
 0x613   : > { %5754 = vmatmul.mubr.msk.bf16.vlgmr.msra.gmra.mrb[40].mxu0 %vm2206_vm8, %v3968_v42  ;;  %v4312_v42 = vld [vmem:[#allocation2 + $0x1a] sm:$0xff] }
 0x614   : > { %5774 = vmatpush3.bf16.msra.mxu0 %v4109_v59  ;;  %5757 = vmatprep.mubr.msk.bf16.mxu0 %vm6476_vm1, %v8139_v57  ;;  %v4322_v59 = vpack.c.bf16 %v4313_v41, %v4312_v42 }
 0x615   : > { %5795 = vmatprep.subr.bf16.mxu0 %v8139_v57 }
 0x61b   : > { %5758 = vmatmul.mubr.msk.bf16.gmra.mrb[44].mxu0 %vm2206_vm8, %v3969_v47  ;;  %v4314_v47 = vld [vmem:[#allocation2 + $0x2a] sm:$0xff] }
 0x61c   : > { %5761 = vmatprep.mubr.msk.bf16.mxu0 %vm6476_vm1, %v8139_v57  ;;  %v4323_v45 = vpack.c.bf16 %v4315_v5, %v4314_v47 }
 0x623   : > { %5762 = vmatmul.mubr.msk.bf16.gmra.mrb[48].mxu0 %vm2206_vm8, %v3970_v19  ;;  %v4316_v19 = vld [vmem:[#allocation2 + $0x3a] sm:$0xff] }
 0x624   : > { %5765 = vmatprep.mubr.msk.bf16.mxu0 %vm6476_vm1, %v8139_v57  ;;  %v4324_v39 = vpack.c.bf16 %v4317_v1, %v4316_v19 }
 0x62b   : > { %5766 = vmatmul.mubr.msk.bf16.gmra.mrb[52].mxu0 %vm2206_vm8, %v3971_v29  ;;  %v4318_v29 = vld [vmem:[#allocation2 + $0x4a] sm:$0xff] }
 0x62c   : > { %5769 = vmatprep.mubr.msk.bf16.mxu0 %vm6476_vm1, %v8139_v57  ;;  %v4325_v53 = vpack.c.bf16 %v4319_v7, %v4318_v29 }
 0x633   : > { %5770 = vmatmul.mubr.msk.bf16.gmra.mrb[56].mxu0 %vm2206_vm8, %v3972_v34  ;;  %v4321_v34 = vld [vmem:[#allocation2 + $0x62] sm:$0xff] }
 0x634   : > { %5775 = vmatprep.mubr.msk.bf16.mxu0 %vm6476_vm1, %v8139_v57  ;;  %v4326_v21 = vpack.c.bf16 %v4321_v34, %v4320_v58 }
 0x63b   : > { %5776 = vmatmul.mubr.msk.bf16.vlgmr.msra.gmra.mrb[40].mxu0 %vm2206_vm8, %v4086_v8  ;;  %v4440_v8 = vpack.c.bf16 %v4431_v31, %v4430_v28 }
 0x63c   : > { %5796 = vmatpush3.bf16.msra.mxu0 %v4227_v35  ;;  %5779 = vmatprep.mubr.msk.bf16.mxu0 %vm6476_vm1, %v8139_v57  ;;  %v4433_v35 = vld [vmem:[#allocation2 + $0x33] sm:$0xff] }
 0x63d   : > { %5817 = vmatprep.subr.bf16.mxu0 %v8139_v57  ;;  %v4441_v12 = vpack.c.bf16 %v4433_v35, %v4432_v43 }
 0x643   : > { %5780 = vmatmul.mubr.msk.bf16.gmra.mrb[44].mxu0 %vm2206_vm8, %v4087_v11  ;;  %v4435_v11 = vld [vmem:[#allocation2 + $0x43] sm:$0xff] }
 0x644   : > { %5783 = vmatprep.mubr.msk.bf16.mxu0 %vm6476_vm1, %v8139_v57  ;;  %v4442_v51 = vpack.c.bf16 %v4435_v11, %v4434_v30 }
 0x64b   : > { %5784 = vmatmul.mubr.msk.bf16.gmra.mrb[48].mxu0 %vm2206_vm8, %v4088_v16  ;;  %v4437_v16 = vld [vmem:[#allocation2 + $0x53] sm:$0xff] }
 0x64c   : > { %5787 = vmatprep.mubr.msk.bf16.mxu0 %vm6476_vm1, %v8139_v57  ;;  %v4443_v27 = vpack.c.bf16 %v4437_v16, %v4436_v62 }
 0x653   : > { %5788 = vmatmul.mubr.msk.bf16.gmra.mrb[52].mxu0 %vm2206_vm8, %v4089_v61  ;;  %v4438_v61 = vld [vmem:[#allocation2 + $0x5b] sm:$0xff] }
 0x654   : > { %5791 = vmatprep.mubr.msk.bf16.mxu0 %vm6476_vm1, %v8139_v57  ;;  %v4444_v22 = vpack.c.bf16 %v4439_v60, %v4438_v61 }
 0x65b   : > { %5792 = vmatmul.mubr.msk.bf16.gmra.mrb[56].mxu0 %vm2206_vm8, %v4090_v37 }
 0x65c   : > { %5797 = vmatprep.mubr.msk.bf16.mxu0 %vm6476_vm1, %v8139_v57 }
 0x663   : > { %5798 = vmatmul.mubr.msk.bf16.vlgmr.msra.gmra.mrb[40].mxu0 %vm2206_vm8, %v4204_v4 }
 0x664   : > { %5818 = vmatpush3.bf16.msra.mxu0 %v4345_v2  ;;  %5801 = vmatprep.mubr.msk.bf16.mxu0 %vm6476_vm1, %v8139_v57 }
 0x665   : > { %5839 = vmatprep.subr.bf16.mxu0 %v8139_v57 }
 0x66b   : > { %5802 = vmatmul.mubr.msk.bf16.gmra.mrb[44].mxu0 %vm2206_vm8, %v4205_v54 }
 0x66c   : > { %5805 = vmatprep.mubr.msk.bf16.mxu0 %vm6476_vm1, %v8139_v57 }
 0x673   : > { %5806 = vmatmul.mubr.msk.bf16.gmra.mrb[48].mxu0 %vm2206_vm8, %v4206_v18 }
 0x674   : > { %5809 = vmatprep.mubr.msk.bf16.mxu0 %vm6476_vm1, %v8139_v57 }
 0x67b   : > { %5810 = vmatmul.mubr.msk.bf16.gmra.mrb[52].mxu0 %vm2206_vm8, %v4207_v36 }
 0x67c   : > { %5813 = vmatprep.mubr.msk.bf16.mxu0 %vm6476_vm1, %v8139_v57 }
 0x683   : > { %5814 = vmatmul.mubr.msk.bf16.gmra.mrb[56].mxu0 %vm2206_vm8, %v4208_v15 }
 0x684   : > { %5819 = vmatprep.mubr.msk.bf16.mxu0 %vm6476_vm1, %v8139_v57 }
 0x68b   : > { %5820 = vmatmul.mubr.msk.bf16.vlgmr.msra.gmra.mrb[40].mxu0 %vm2206_vm8, %v4322_v59 }
 0x68c   : > { %5840 = vmatpush3.bf16.msra.mxu0 %v4463_v0  ;;  %5823 = vmatprep.mubr.msk.bf16.mxu0 %vm6476_vm1, %v8139_v57 }
 0x693   : > { %5824 = vmatmul.mubr.msk.bf16.gmra.mrb[44].mxu0 %vm2206_vm8, %v4323_v45 }
 0x694   : > { %5827 = vmatprep.mubr.msk.bf16.mxu0 %vm6476_vm1, %v8139_v57 }
 0x69b   : > { %5828 = vmatmul.mubr.msk.bf16.gmra.mrb[48].mxu0 %vm2206_vm8, %v4324_v39 }
 0x69c   : > { %5831 = vmatprep.mubr.msk.bf16.mxu0 %vm6476_vm1, %v8139_v57 }
 0x6a3   : > { %5832 = vmatmul.mubr.msk.bf16.gmra.mrb[52].mxu0 %vm2206_vm8, %v4325_v53 }
 0x6a4   : > { %5835 = vmatprep.mubr.msk.bf16.mxu0 %vm6476_vm1, %v8139_v57 }
 0x6ab   : > { %5836 = vmatmul.mubr.msk.bf16.gmra.mrb[56].mxu0 %vm2206_vm8, %v4326_v21 }
 0x6ac   : > { %5841 = vmatprep.mubr.msk.bf16.mxu0 %vm6476_vm1, %v8139_v57 }
 0x6b3   : > { %5842 = vmatmul.mubr.msk.bf16.vlgmr.msra.gmra.mrb[40].mxu0 %vm2206_vm8, %v4440_v8 }
 0x6b4   : > { %5845 = vmatprep.mubr.msk.bf16.mxu0 %vm6476_vm1, %v8139_v57 }
 0x6bb   : > { %5846 = vmatmul.mubr.msk.bf16.gmra.mrb[44].mxu0 %vm2206_vm8, %v4441_v12 }
 0x6bc   : > { %5849 = vmatprep.mubr.msk.bf16.mxu0 %vm6476_vm1, %v8139_v57 }
 0x6c3   : > { %5850 = vmatmul.mubr.msk.bf16.gmra.mrb[48].mxu0 %vm2206_vm8, %v4442_v51 }
 0x6c4   : > { %5853 = vmatprep.mubr.msk.bf16.mxu0 %vm6476_vm1, %v8139_v57 }
 0x6cb   : > { %5854 = vmatmul.mubr.msk.bf16.gmra.mrb[52].mxu0 %vm2206_vm8, %v4443_v27 }
 0x6cc   : > { %5857 = vmatprep.mubr.msk.bf16.mxu0 %vm6476_vm1, %v8139_v57 }
 0x6d3   : > { %5858 = vmatmul.mubr.msk.bf16.gmra.mrb[56].mxu0 %vm2206_vm8, %v4444_v22 }
 0x786   : > { %v4499_v33 = vpop.f32.mrb[40].mxu0 }
 0x787   : > { %v5915_v37 = vadd.f32 %v4980_v25, %v4499_v33  ;;  %v5843_v9 = vpop.f32.mrb[41].mxu0 }
 0x788   : > { %v4502_v4 = vpop.f32.mrb[42].mxu0 }
 0x789   : > { %v5916_v2 = vadd.f32 %v4980_v25, %v4502_v4  ;;  %v5844_v54 = vpop.f32.mrb[43].mxu0  ;;  %v4548_v18 = vmax.f32 %v5915_v37, 0.0  ;;  %v5029_v4 = vld [vmem:[%s8043_s11 + $0x1] ss:$0 sm:$0xff] }
 0x78b   : > { %v4549_v36 = vmax.f32 %v5916_v2, 0.0 }
 0x78d   : > { %v4558_v13 = vpack.c.bf16 %v4549_v36, %v4548_v18 }
 0x78e   : > { %v4507_v15 = vpop.f32.mrb[44].mxu0 }
 0x78f   : > { %v5917_v41 = vadd.f32 %v4980_v25, %v4507_v15  ;;  %v5847_v55 = vpop.f32.mrb[45].mxu0  ;;  %5866 = vmatmul.mubr.msk.bf16.vlgmr.msra.gmra.mrb[60].mxu1 %vm3338_vm15, %v4558_v13 }
 0x790   : > { %v4510_v42 = vpop.f32.mrb[46].mxu0  ;;  %5869 = vmatprep.mubr.msk.bf16.mxu1 %vm6476_vm1, %v8139_v57 }
 0x791   : > { %v5918_v59 = vadd.f32 %v4980_v25, %v4510_v42  ;;  %v5848_v0 = vpop.f32.mrb[47].mxu0  ;;  %v4550_v5 = vmax.f32 %v5917_v41, 0.0 }
 0x793   : > { %v4551_v47 = vmax.f32 %v5918_v59, 0.0 }
 0x795   : > { %v4559_v45 = vpack.c.bf16 %v4551_v47, %v4550_v5 }
 0x796   : > { %v4515_v1 = vpop.f32.mrb[48].mxu0 }
 0x797   : > { %v5919_v19 = vadd.f32 %v4980_v25, %v4515_v1  ;;  %v5851_v39 = vpop.f32.mrb[49].mxu0  ;;  %5870 = vmatmul.mubr.msk.bf16.gmra.mrb[64].mxu1 %vm3338_vm15, %v4559_v45 }
 0x798   : > { %v4518_v7 = vpop.f32.mrb[50].mxu0  ;;  %5873 = vmatprep.mubr.msk.bf16.mxu1 %vm6476_vm1, %v8139_v57 }
 0x799   : > { %v5920_v29 = vadd.f32 %v4980_v25, %v4518_v7  ;;  %v5852_v53 = vpop.f32.mrb[51].mxu0  ;;  %v4552_v58 = vmax.f32 %v5919_v19, 0.0 }
 0x79b   : > { %v4553_v34 = vmax.f32 %v5920_v29, 0.0 }
 0x79d   : > { %v4560_v21 = vpack.c.bf16 %v4553_v34, %v4552_v58 }
 0x79e   : > { %v4523_v31 = vpop.f32.mrb[52].mxu0 }
 0x79f   : > { %v5921_v28 = vadd.f32 %v4980_v25, %v4523_v31  ;;  %v5855_v8 = vpop.f32.mrb[53].mxu0  ;;  %5874 = vmatmul.mubr.msk.bf16.gmra.mrb[68].mxu1 %vm3338_vm15, %v4560_v21 }
 0x7a0   : > { %v4526_v35 = vpop.f32.mrb[54].mxu0  ;;  %5877 = vmatprep.mubr.msk.bf16.mxu1 %vm6476_vm1, %v8139_v57 }
 0x7a1   : > { %v5922_v43 = vadd.f32 %v4980_v25, %v4526_v35  ;;  %v5856_v12 = vpop.f32.mrb[55].mxu0  ;;  %v4554_v11 = vmax.f32 %v5921_v28, 0.0 }
 0x7a3   : > { %v4555_v30 = vmax.f32 %v5922_v43, 0.0 }
 0x7a5   : > { %v4561_v51 = vpack.c.bf16 %v4555_v30, %v4554_v11 }
 0x7a6   : > { %v4531_v16 = vpop.f32.mrb[56].mxu0 }
 0x7a7   : > { %v5923_v62 = vadd.f32 %v4980_v25, %v4531_v16  ;;  %v5859_v27 = vpop.f32.mrb[57].mxu0  ;;  %5878 = vmatmul.mubr.msk.bf16.gmra.mrb[72].mxu1 %vm3338_vm15, %v4561_v51 }
 0x7a8   : > { %v4534_v61 = vpop.f32.mrb[58].mxu0  ;;  %5881 = vmatprep.mubr.msk.bf16.mxu1 %vm6476_vm1, %v8139_v57 }
 0x7a9   : > { %v5924_v60 = vadd.f32 %v4980_v25, %v4534_v61  ;;  %v5860_v22 = vpop.f32.mrb[59].mxu0  ;;  %v4556_v33 = vmax.f32 %v5923_v62, 0.0 }
 0x7ab   : > { %v4557_v37 = vmax.f32 %v5924_v60, 0.0 }
 0x7ad   : > { %v4562_v9 = vpack.c.bf16 %v4557_v37, %v4556_v33 }
 0x7af   : > { %5882 = vmatmul.mubr.msk.bf16.gmra.mrb[76].mxu1 %vm3338_vm15, %v4562_v9 }
 0x862   : > { %v4630_v2 = vpop.f32.mrb[60].mxu1 }
 0x863   : > { %v4631_v54 = vadd.f32 %v5029_v4, %v4630_v2  ;;  %v5867_v18 = vpop.f32.mrb[61].mxu1 }
 0x864   : > { %v4633_v36 = vpop.f32.mrb[62].mxu1 }
 0x865   : > { %v4669_v57 = vadd.f32 %v4631_v54, %v7700_v52  ;;  %v4634_v25 = vadd.f32 %v5029_v4, %v4633_v36  ;;  %v5868_v13 = vpop.f32.mrb[63].mxu1 }
 0x867   : > { %v4679_v15 = vsel %vm7035_vm2, %v4669_v57, 0.0  ;;  %v4670_v41 = vadd.f32 %v4634_v25, %v7707_v26 }
 0x868   : > { %4689 = vst.msk [vmem:[%s7977_s18] sm:$0xff] %vm2206_vm8, %v4679_v15 }
 0x869   : > { %v4680_v55 = vsel %vm7039_vm3, %v4670_v41, 0.0 }
 0x86a   : > { %4690 = vst.msk [vmem:[%s7977_s18 + $0x8] sm:$0xff] %vm2206_vm8, %v4680_v55  ;;  %v4638_v42 = vpop.f32.mrb[64].mxu1 }
 0x86b   : > { %v4639_v59 = vadd.f32 %v5029_v4, %v4638_v42  ;;  %v5871_v0 = vpop.f32.mrb[65].mxu1 }
 0x86c   : > { %v4641_v52 = vpop.f32.mrb[66].mxu1 }
 0x86d   : > { %v4671_v5 = vadd.f32 %v4639_v59, %v7719_v56  ;;  %v4642_v47 = vadd.f32 %v5029_v4, %v4641_v52  ;;  %v5872_v17 = vpop.f32.mrb[67].mxu1 }
 0x86f   : > { %v4681_v45 = vsel %vm7091_vm14, %v4671_v5, 0.0  ;;  %v4672_v26 = vadd.f32 %v4642_v47, %v7727_v46 }
 0x870   : > { %4691 = vst.msk [vmem:[%s7977_s18 + $0x10] sm:$0xff] %vm2206_vm8, %v4681_v45 }
 0x871   : > { %v4682_v24 = vsel %vm7104_vm0, %v4672_v26, 0.0 }
 0x872   : > { %4692 = vst.msk [vmem:[%s7977_s18 + $0x18] sm:$0xff] %vm2206_vm8, %v4682_v24  ;;  %v4646_v1 = vpop.f32.mrb[68].mxu1 }
 0x873   : > { %v4647_v19 = vadd.f32 %v5029_v4, %v4646_v1  ;;  %v5875_v39 = vpop.f32.mrb[69].mxu1 }
 0x874   : > { %v4649_v56 = vpop.f32.mrb[70].mxu1 }
 0x875   : > { %v4673_v7 = vadd.f32 %v4647_v19, %v7740_v48  ;;  %v4650_v29 = vadd.f32 %v5029_v4, %v4649_v56  ;;  %v5876_v23 = vpop.f32.mrb[71].mxu1 }
 0x877   : > { %v4683_v53 = vsel %vm7169_vm9, %v4673_v7, 0.0  ;;  %v4674_v46 = vadd.f32 %v4650_v29, %v7747_v20 }
 0x878   : > { %4693 = vst.msk [vmem:[%s7977_s18 + $0x20] sm:$0xff] %vm2206_vm8, %v4683_v53 }
 0x879   : > { %v4684_v10 = vsel %vm7178_vm12, %v4674_v46, 0.0 }
 0x87a   : > { %4694 = vst.msk [vmem:[%s7977_s18 + $0x28] sm:$0xff] %vm2206_vm8, %v4684_v10  ;;  %v4654_v58 = vpop.f32.mrb[72].mxu1 }
 0x87b   : > { %v4655_v34 = vadd.f32 %v5029_v4, %v4654_v58  ;;  %v5879_v21 = vpop.f32.mrb[73].mxu1 }
 0x87c   : > { %v4657_v48 = vpop.f32.mrb[74].mxu1 }
 0x87d   : > { %v4675_v31 = vadd.f32 %v4655_v34, %v7759_v49  ;;  %v4658_v28 = vadd.f32 %v5029_v4, %v4657_v48  ;;  %v5880_v38 = vpop.f32.mrb[75].mxu1 }
 0x87f   : > { %v4685_v8 = vsel %vm7251_vm7, %v4675_v31, 0.0  ;;  %v4676_v20 = vadd.f32 %v4658_v28, %v7766_v50 }
 0x880   : > { %4695 = vst.msk [vmem:[%s7977_s18 + $0x30] sm:$0xff] %vm2206_vm8, %v4685_v8 }
 0x881   : > { %v4686_v6 = vsel %vm7263_vm13, %v4676_v20, 0.0 }
 0x882   : > { %4696 = vst.msk [vmem:[%s7977_s18 + $0x38] sm:$0xff] %vm2206_vm8, %v4686_v6  ;;  %v4662_v35 = vpop.f32.mrb[76].mxu1 }
 0x883   : > { %v4663_v43 = vadd.f32 %v5029_v4, %v4662_v35  ;;  %v5883_v12 = vpop.f32.mrb[77].mxu1 }
 0x884   : > { %v4665_v49 = vpop.f32.mrb[78].mxu1 }
 0x885   : > { %v4677_v11 = vadd.f32 %v4663_v43, %v7778_v32  ;;  %v4666_v30 = vadd.f32 %v5029_v4, %v4665_v49  ;;  %v5884_v51 = vpop.f32.mrb[79].mxu1 }
 0x887   : > { %v4687_v14 = vsel %vm7328_vm4, %v4677_v11, 0.0  ;;  %v4678_v50 = vadd.f32 %v4666_v30, %v7785_v63 }
 0x888   : > { %4697 = vst.msk [vmem:[%s7977_s18 + $0x40] sm:$0xff] %vm2206_vm8, %v4687_v14 }
 0x889   : > { %v4688_v3 = vsel %vm7337_vm6, %v4678_v50, 0.0 }
 0x88a   : > { %4698 = vst.msk [vmem:[%s7977_s18 + $0x48] sm:$0xff] %vm2206_vm8, %v4688_v3 }
 0x88b PF: > { %s22_s21 = sadd.s32 1, %s6473_s21  }
 0x88c   : > { %p19_p4 = scmp.ge.s32.totalorder %s22_s21, 4  }
 0x88e   :  { %21 = sbr.rel (!%p19_p4) target bundleno = 1 (0x1), region = 135 }

</bundles_post_ra>
